<compile_context>
chip_gen: v5e
topology: v5e:2x2
jax: 0.10.0
libtpu: 0.0.40
codegen_flags: <defaults>
</compile_context>

<pallas_src>
import math
import jax
import jax.numpy as jnp
from jax import lax
from jax.experimental import pallas as pl
from jax.experimental.pallas import tpu as pltpu

IMG_SIZE = 256         # stand-in for BEV's 512x512 network input (kept small)
CIN = 3
HIDDEN = 32
NUM_PARAMS = 146       # 3 cam + 6 global-orient(6D) + 21*6 body-pose(6D) + 11 betas
HEAD_OUT = 1 + NUM_PARAMS
MAX_PEOPLE = 8         # static top-K stand-in for thresholded center parsing
NUM_JOINTS = 22        # global orient + 21 body joints
FOV = 60.0
TAN_FOV = math.tan(math.radians(FOV / 2.0))
CENTER_THRESH = 0.1
LANES = 512            # lane-dense slab width (wide unmasked vst bursts)
SUB_R = 16             # rows per in-register sub-chunk; bf16 sublane-tile aligned,
                       # live set ~ 5 * SUB_R*LANES/1024 = 40 vregs < 64-vreg file


# ----------------------------------------------------------------------------
# Kernel: center-heatmap head (logit only).
#   x_ref  : [CIN, tile_r, LANES] bf16 (VMEM)  raw 0..255 pixels, /255 folded into w1
#   o_ref  : [tile_r, LANES]      f32  (VMEM)  center logits, lane+sublane dense
#   w1_ref : [CIN*HIDDEN] f32 (SMEM, row-major c*HIDDEN+j, pre-scaled by 1/255)
#   b1_ref / w2c_ref : [HIDDEN] f32 (SMEM),   b2c_ref : [1] f32 (SMEM)
# The K=3 and K=32 contractions are VPU scalar-broadcast FMAs; the hidden
# activation never touches HBM and the 146 param channels are not computed here.
# ----------------------------------------------------------------------------
def _heatmap_kernel(w1_ref, b1_ref, w2c_ref, b2c_ref, x_ref, o_ref):
    # Hoist all ~161 SMEM scalar weight loads once per grid step (loop-invariant).
    w1 = [[w1_ref[c * HIDDEN + j] for c in range(CIN)] for j in range(HIDDEN)]
    b1 = [b1_ref[j] for j in range(HIDDEN)]
    w2 = [w2c_ref[j] for j in range(HIDDEN)]
    b2 = b2c_ref[0]

    tile_r = o_ref.shape[0]
    n_sub = tile_r // SUB_R

    def sub_chunk(s, carry):
        r0 = pl.multiple_of(s * SUB_R, SUB_R)
        # Upcast each bf16 channel sub-chunk to f32 once; held in vregs across all j.
        xs = [x_ref[c, pl.ds(r0, SUB_R), :].astype(jnp.float32) for c in range(CIN)]
        acc = jnp.zeros((SUB_R, LANES), jnp.float32)
        for j in range(HIDDEN):                      # unrolled at trace time
            h = xs[0] * w1[j][0] + b1[j]             # scalar-broadcast FMA chain
            for c in range(1, CIN):
                h = h + xs[c] * w1[j][c]
            acc = acc + w2[j] * jnp.maximum(h, 0.0)  # ReLU + output FMA
        o_ref[pl.ds(r0, SUB_R), :] = acc + b2
        return carry

    lax.fori_loop(0, n_sub, sub_chunk, 0)


def bev_center_heatmap(x_cf, w1_flat, b1_vec, w2c, b2c, *, tile_r=None):
    cin, R, lanes = x_cf.shape
    assert cin == CIN and lanes == LANES
    if tile_r is None:
        # tile_r <= R/2 keeps grid >= 2 (both v7x TensorCores busy); multiple of
        # SUB_R; capped at 256 rows so double-buffered VMEM stays a few MB
        # (VMEM is not the limit — the chunked inner loop handles vreg pressure).
        half = (R // 2) // SUB_R * SUB_R
        tile_r = min(max(SUB_R, half), 256)
    grid_r = pl.cdiv(R, tile_r)                      # no dropped tail tiles
    R_pad = grid_r * tile_r
    if R_pad != R:
        x_cf = jnp.pad(x_cf, ((0, 0), (0, R_pad - R), (0, 0)))

    out = pl.pallas_call(
        _heatmap_kernel,
        out_shape=jax.ShapeDtypeStruct((R_pad, LANES), jnp.float32),
        grid=(grid_r,),
        in_specs=[
            pl.BlockSpec(memory_space=pltpu.MemorySpace.SMEM),   # w1 (flat, /255 folded)
            pl.BlockSpec(memory_space=pltpu.MemorySpace.SMEM),   # b1
            pl.BlockSpec(memory_space=pltpu.MemorySpace.SMEM),   # w2 center column
            pl.BlockSpec(memory_space=pltpu.MemorySpace.SMEM),   # b2 center
            pl.BlockSpec((CIN, tile_r, LANES), lambda i: (0, i, 0)),
        ],
        out_specs=pl.BlockSpec((tile_r, LANES), lambda i: (i, 0)),
        compiler_params=pltpu.CompilerParams(
            dimension_semantics=("parallel",),       # shards row tiles over v7x TCs
            vmem_limit_bytes=32 * 1024 * 1024),
    )(w1_flat, b1_vec, w2c, b2c, x_cf)
    return out[:R]


# ----------------------------------------------------------------------------
# Glue (plain JAX): preprocessing, top-K params head, pack_params_dict core
# (rot6d -> rotmat -> quaternion -> angle-axis) and cam -> translation.
# These touch only MAX_PEOPLE*O(100) elements; XLA fuses them.
# ----------------------------------------------------------------------------
def img_preprocess(image_u8, img_size=IMG_SIZE):
    # Pad to square and resize (stand-in for simple_romp's 512x512 preprocessing).
    # Channels-first is produced here so the layout change fuses with the resize
    # and no separate full-image transpose pass hits HBM later.  The /255 scaling
    # is folded into w1 downstream.
    h, w, _ = image_u8.shape
    s = max(h, w)
    img_chw = jnp.transpose(image_u8.astype(jnp.float32), (2, 0, 1))     # [3, h, w]
    padded = jnp.zeros((CIN, s, s), jnp.float32).at[:, :h, :w].set(img_chw)
    resized = jax.image.resize(padded, (CIN, img_size, img_size), method="bilinear")
    image_pad_info = jnp.asarray([0, h, 0, w, h, w], jnp.float32)
    return resized, image_pad_info                   # f32, raw 0..255 scale


def denormalize_cam_params_to_trans(cam):
    # cam = (scale, ty, tx)
    scale = cam[:, 0:1]
    depth = 1.0 / (scale * TAN_FOV + 1e-3)
    txy = cam[:, 1:3][:, ::-1]                       # flip -> (tx, ty)
    return jnp.concatenate([txy * depth * TAN_FOV, depth], axis=1)


def pack_params_dict(params_pred):
    # params_pred: [K, 146] = cam(3) | global_orient 6D(6) | body 6D(126) | betas(11)
    K = params_pred.shape[0]
    cam = params_pred[:, 0:3]
    betas = params_pred[:, 135:146]
    rot6 = params_pred[:, 3:135].reshape(K * NUM_JOINTS, 3, 2)   # .view(-1,3,2)
    a1, a2 = rot6[..., 0], rot6[..., 1]                          # [N, 3]

    # rot6d_to_rotmat (F.normalize eps = 1e-12)
    n1 = jnp.maximum(jnp.sqrt(jnp.sum(a1 * a1, -1, keepdims=True)), 1e-12)
    b1 = a1 / n1
    d = jnp.sum(b1 * a2, -1, keepdims=True)
    u2 = a2 - d * b1
    n2 = jnp.maximum(jnp.sqrt(jnp.sum(u2 * u2, -1, keepdims=True)), 1e-12)
    b2 = u2 / n2
    b3 = jnp.cross(b1, b2)

    # torchgeometry transposes R before the quaternion formulas:
    # rmat_t rows == columns of R == (b1, b2, b3)
    m00, m01, m02 = b1[:, 0], b1[:, 1], b1[:, 2]
    m10, m11, m12 = b2[:, 0], b2[:, 1], b2[:, 2]
    m20, m21, m22 = b3[:, 0], b3[:, 1], b3[:, 2]

    eps = 1e-6
    mask_d2 = m22 < eps
    mask_d0_d1 = m00 > m11
    mask_d0_nd1 = m00 < -m11
    t0 = 1.0 + m00 - m11 - m22
    t1 = 1.0 - m00 + m11 - m22
    t2 = 1.0 - m00 - m11 + m22
    t3 = 1.0 + m00 + m11 + m22
    c0 = (mask_d2 & mask_d0_d1).astype(jnp.float32)
    c1 = (mask_d2 & (~mask_d0_d1)).astype(jnp.float32)
    c2 = ((~mask_d2) & mask_d0_nd1).astype(jnp.float32)
    c3 = ((~mask_d2) & (~mask_d0_nd1)).astype(jnp.float32)

    t_sel = jnp.maximum(t0 * c0 + t1 * c1 + t2 * c2 + t3 * c3, 1e-12)
    inv = 0.5 / jnp.sqrt(t_sel)
    qw = ((m12 - m21) * c0 + (m20 - m02) * c1 + (m01 - m10) * c2 + t3 * c3) * inv
    qx = (t0 * c0 + (m01 + m10) * c1 + (m20 + m02) * c2 + (m12 - m21) * c3) * inv
    qy = ((m01 + m10) * c0 + t1 * c1 + (m12 + m21) * c2 + (m20 - m02) * c3) * inv
    qz = ((m20 + m02) * c0 + (m12 + m21) * c1 + t2 * c2 + (m01 - m10) * c3) * inv

    # quaternion -> angle-axis (safe denominator so no nan even on the dead branch)
    sin2 = qx * qx + qy * qy + qz * qz
    sin_t = jnp.sqrt(sin2)
    sin_t_safe = jnp.where(sin2 > 0.0, sin_t, 1.0)
    two_theta = 2.0 * jnp.where(qw < 0.0,
                                jnp.arctan2(-sin_t, -qw),
                                jnp.arctan2(sin_t, qw))
    k = jnp.where(sin2 > 0.0, two_theta / sin_t_safe, 2.0)
    aa = jnp.stack([qx * k, qy * k, qz * k], axis=-1)
    aa = jnp.where(jnp.isnan(aa), 0.0, aa).reshape(K, NUM_JOINTS * 3)

    # smpl_thetas = [global_orient(3) | body_pose(63) | 2 hand joints zeroed(6)]
    smpl_thetas = jnp.concatenate([aa, jnp.zeros((K, 6), jnp.float32)], axis=1)
    return {"cam": cam, "smpl_betas": betas, "smpl_thetas": smpl_thetas,
            "cam_trans": denormalize_cam_params_to_trans(cam)}


def bev_forward(image_u8, weights, center_thresh=CENTER_THRESH):
    x_chw, image_pad_info = img_preprocess(image_u8)        # [3, H, W] f32, 0..255
    _, H, W = x_chw.shape
    M = H * W

    # Fold 1/255 into the first-layer weights (used by both the kernel and the
    # top-K params path) so no full-image scale pass happens in the wrapper.
    w1 = weights["w1"] * (1.0 / 255.0)
    b1, w2, b2 = weights["b1"], weights["w2"], weights["b2"]

    # bf16 input slab halves the dominant input DMA; logits stay f32 so top_k
    # ordering is unaffected.
    x_flat_cf = x_chw.reshape(CIN, M)
    M_pad = pl.cdiv(M, LANES) * LANES
    if M_pad != M:
        x_flat_cf = jnp.pad(x_flat_cf, ((0, 0), (0, M_pad - M)))
    R = M_pad // LANES
    x_cf = x_flat_cf.reshape(CIN, R, LANES).astype(jnp.bfloat16)

    # --- Pallas: center-heatmap logits only ---
    heat = bev_center_heatmap(x_cf, w1.reshape(-1), b1.reshape(-1),
                              w2[:, 0], b2[0, 0:1])          # [R, LANES] f32
    logits = heat.reshape(-1)[:M]

    # sigmoid is monotonic -> run top_k directly on logits (no full-map
    # transcendental / extra HBM pass); sigmoid only the K selected values.
    # TODO(synk): optional further refactor would compute a per-block top-K
    # inside the kernel and drop the heatmap writeback entirely.
    top_logits, idx = jax.lax.top_k(logits, MAX_PEOPLE)
    confs = jax.nn.sigmoid(top_logits)
    # TODO(synk): the real BEV keeps a variable number of detections above
    # center_thresh (and returns None when empty); here: static top-K + mask.
    valid = confs > center_thresh

    # --- params head only for the top-K pixels (tiny, XLA-fused) ---
    x_sel = jnp.take(x_flat_cf, idx, axis=1).T               # [K, 3] f32 (0..255)
    h_sel = jnp.maximum(x_sel @ w1 + b1, 0.0)                # [K, 32]
    params_pred = h_sel @ w2[:, 1:] + b2[:, 1:]              # [K, 146]

    parsed = pack_params_dict(params_pred)
    outputs = {
        "smpl_thetas": parsed["smpl_thetas"],
        "smpl_betas": parsed["smpl_betas"],
        "cam": parsed["cam"],
        "cam_trans": parsed["cam_trans"],
        "params_pred": params_pred,
        "center_confs": confs,
        "pred_batch_ids": jnp.zeros((MAX_PEOPLE,), jnp.int32),
        "valid_mask": valid,
    }
    # TODO(synk): SMPL mesh recovery, image projection, NMS, outlier removal,
    # rendering and temporal tracking require external assets / host code and
    # are not translated.
    return outputs, image_pad_info


if __name__ == "__main__":
    key = jax.random.PRNGKey(0)
    k1, k2, k3, k4, k5 = jax.random.split(key, 5)
    weights = {
        "w1": jax.random.normal(k1, (CIN, HIDDEN), jnp.float32) * 0.1,
        "b1": jax.random.normal(k2, (1, HIDDEN), jnp.float32) * 0.01,
        "w2": jax.random.normal(k3, (HIDDEN, HEAD_OUT), jnp.float32) * 0.1,
        "b2": jax.random.normal(k4, (1, HEAD_OUT), jnp.float32) * 0.01,
    }
    # a small synthetic BGR-ish image (the module's forward takes a cv2 HxWx3 image)
    image = jax.random.randint(k5, (48, 64, 3), 0, 256, dtype=jnp.int32).astype(jnp.uint8)

    outputs, image_pad_info = jax.jit(bev_forward)(image, weights)
    jax.block_until_ready(outputs)
    assert outputs["smpl_thetas"].shape == (MAX_PEOPLE, 72)
    assert outputs["smpl_betas"].shape == (MAX_PEOPLE, 11)
    assert outputs["cam"].shape == (MAX_PEOPLE, 3)
    assert outputs["cam_trans"].shape == (MAX_PEOPLE, 3)
    assert outputs["params_pred"].shape == (MAX_PEOPLE, NUM_PARAMS)
    print("KERNEL_OK")
</pallas_src>

<mosaic_0001>
module attributes {stable_mosaic.version = 11 : i64} {
  func.func @_heatmap_kernel(%arg0: i32, %arg1: memref<96xf32, #tpu.memory_space<smem>>, %arg2: memref<32xf32, #tpu.memory_space<smem>>, %arg3: memref<32xf32, #tpu.memory_space<smem>>, %arg4: memref<1xf32, #tpu.memory_space<smem>>, %arg5: memref<3x64x512xbf16, #tpu.memory_space<vmem>>, %arg6: memref<64x512xf32, #tpu.memory_space<vmem>>) attributes {dimension_semantics = [#tpu.dimension_semantics<parallel>], iteration_bounds = array<i64: 2>, scalar_prefetch = 0 : i64, scratch_operands = 0 : i64, tpu.core_type = #tpu.core_type<tc>, window_params = [{transform_indices = @transform_0, window_bounds = array<i64: 96>}, {transform_indices = @transform_1, window_bounds = array<i64: 32>}, {transform_indices = @transform_2, window_bounds = array<i64: 32>}, {transform_indices = @transform_3, window_bounds = array<i64: 1>}, {transform_indices = @transform_4, window_bounds = array<i64: 3, 64, 512>}, {transform_indices = @transform_5, window_bounds = array<i64: 64, 512>}]} {
    %c0 = arith.constant 0 : index
    %0 = memref.load %arg1[%c0] : memref<96xf32, #tpu.memory_space<smem>>
    %c32 = arith.constant 32 : index
    %1 = memref.load %arg1[%c32] : memref<96xf32, #tpu.memory_space<smem>>
    %c64 = arith.constant 64 : index
    %2 = memref.load %arg1[%c64] : memref<96xf32, #tpu.memory_space<smem>>
    %c1 = arith.constant 1 : index
    %3 = memref.load %arg1[%c1] : memref<96xf32, #tpu.memory_space<smem>>
    %c33 = arith.constant 33 : index
    %4 = memref.load %arg1[%c33] : memref<96xf32, #tpu.memory_space<smem>>
    %c65 = arith.constant 65 : index
    %5 = memref.load %arg1[%c65] : memref<96xf32, #tpu.memory_space<smem>>
    %c2 = arith.constant 2 : index
    %6 = memref.load %arg1[%c2] : memref<96xf32, #tpu.memory_space<smem>>
    %c34 = arith.constant 34 : index
    %7 = memref.load %arg1[%c34] : memref<96xf32, #tpu.memory_space<smem>>
    %c66 = arith.constant 66 : index
    %8 = memref.load %arg1[%c66] : memref<96xf32, #tpu.memory_space<smem>>
    %c3 = arith.constant 3 : index
    %9 = memref.load %arg1[%c3] : memref<96xf32, #tpu.memory_space<smem>>
    %c35 = arith.constant 35 : index
    %10 = memref.load %arg1[%c35] : memref<96xf32, #tpu.memory_space<smem>>
    %c67 = arith.constant 67 : index
    %11 = memref.load %arg1[%c67] : memref<96xf32, #tpu.memory_space<smem>>
    %c4 = arith.constant 4 : index
    %12 = memref.load %arg1[%c4] : memref<96xf32, #tpu.memory_space<smem>>
    %c36 = arith.constant 36 : index
    %13 = memref.load %arg1[%c36] : memref<96xf32, #tpu.memory_space<smem>>
    %c68 = arith.constant 68 : index
    %14 = memref.load %arg1[%c68] : memref<96xf32, #tpu.memory_space<smem>>
    %c5 = arith.constant 5 : index
    %15 = memref.load %arg1[%c5] : memref<96xf32, #tpu.memory_space<smem>>
    %c37 = arith.constant 37 : index
    %16 = memref.load %arg1[%c37] : memref<96xf32, #tpu.memory_space<smem>>
    %c69 = arith.constant 69 : index
    %17 = memref.load %arg1[%c69] : memref<96xf32, #tpu.memory_space<smem>>
    %c6 = arith.constant 6 : index
    %18 = memref.load %arg1[%c6] : memref<96xf32, #tpu.memory_space<smem>>
    %c38 = arith.constant 38 : index
    %19 = memref.load %arg1[%c38] : memref<96xf32, #tpu.memory_space<smem>>
    %c70 = arith.constant 70 : index
    %20 = memref.load %arg1[%c70] : memref<96xf32, #tpu.memory_space<smem>>
    %c7 = arith.constant 7 : index
    %21 = memref.load %arg1[%c7] : memref<96xf32, #tpu.memory_space<smem>>
    %c39 = arith.constant 39 : index
    %22 = memref.load %arg1[%c39] : memref<96xf32, #tpu.memory_space<smem>>
    %c71 = arith.constant 71 : index
    %23 = memref.load %arg1[%c71] : memref<96xf32, #tpu.memory_space<smem>>
    %c8 = arith.constant 8 : index
    %24 = memref.load %arg1[%c8] : memref<96xf32, #tpu.memory_space<smem>>
    %c40 = arith.constant 40 : index
    %25 = memref.load %arg1[%c40] : memref<96xf32, #tpu.memory_space<smem>>
    %c72 = arith.constant 72 : index
    %26 = memref.load %arg1[%c72] : memref<96xf32, #tpu.memory_space<smem>>
    %c9 = arith.constant 9 : index
    %27 = memref.load %arg1[%c9] : memref<96xf32, #tpu.memory_space<smem>>
    %c41 = arith.constant 41 : index
    %28 = memref.load %arg1[%c41] : memref<96xf32, #tpu.memory_space<smem>>
    %c73 = arith.constant 73 : index
    %29 = memref.load %arg1[%c73] : memref<96xf32, #tpu.memory_space<smem>>
    %c10 = arith.constant 10 : index
    %30 = memref.load %arg1[%c10] : memref<96xf32, #tpu.memory_space<smem>>
    %c42 = arith.constant 42 : index
    %31 = memref.load %arg1[%c42] : memref<96xf32, #tpu.memory_space<smem>>
    %c74 = arith.constant 74 : index
    %32 = memref.load %arg1[%c74] : memref<96xf32, #tpu.memory_space<smem>>
    %c11 = arith.constant 11 : index
    %33 = memref.load %arg1[%c11] : memref<96xf32, #tpu.memory_space<smem>>
    %c43 = arith.constant 43 : index
    %34 = memref.load %arg1[%c43] : memref<96xf32, #tpu.memory_space<smem>>
    %c75 = arith.constant 75 : index
    %35 = memref.load %arg1[%c75] : memref<96xf32, #tpu.memory_space<smem>>
    %c12 = arith.constant 12 : index
    %36 = memref.load %arg1[%c12] : memref<96xf32, #tpu.memory_space<smem>>
    %c44 = arith.constant 44 : index
    %37 = memref.load %arg1[%c44] : memref<96xf32, #tpu.memory_space<smem>>
    %c76 = arith.constant 76 : index
    %38 = memref.load %arg1[%c76] : memref<96xf32, #tpu.memory_space<smem>>
    %c13 = arith.constant 13 : index
    %39 = memref.load %arg1[%c13] : memref<96xf32, #tpu.memory_space<smem>>
    %c45 = arith.constant 45 : index
    %40 = memref.load %arg1[%c45] : memref<96xf32, #tpu.memory_space<smem>>
    %c77 = arith.constant 77 : index
    %41 = memref.load %arg1[%c77] : memref<96xf32, #tpu.memory_space<smem>>
    %c14 = arith.constant 14 : index
    %42 = memref.load %arg1[%c14] : memref<96xf32, #tpu.memory_space<smem>>
    %c46 = arith.constant 46 : index
    %43 = memref.load %arg1[%c46] : memref<96xf32, #tpu.memory_space<smem>>
    %c78 = arith.constant 78 : index
    %44 = memref.load %arg1[%c78] : memref<96xf32, #tpu.memory_space<smem>>
    %c15 = arith.constant 15 : index
    %45 = memref.load %arg1[%c15] : memref<96xf32, #tpu.memory_space<smem>>
    %c47 = arith.constant 47 : index
    %46 = memref.load %arg1[%c47] : memref<96xf32, #tpu.memory_space<smem>>
    %c79 = arith.constant 79 : index
    %47 = memref.load %arg1[%c79] : memref<96xf32, #tpu.memory_space<smem>>
    %c16 = arith.constant 16 : index
    %48 = memref.load %arg1[%c16] : memref<96xf32, #tpu.memory_space<smem>>
    %c48 = arith.constant 48 : index
    %49 = memref.load %arg1[%c48] : memref<96xf32, #tpu.memory_space<smem>>
    %c80 = arith.constant 80 : index
    %50 = memref.load %arg1[%c80] : memref<96xf32, #tpu.memory_space<smem>>
    %c17 = arith.constant 17 : index
    %51 = memref.load %arg1[%c17] : memref<96xf32, #tpu.memory_space<smem>>
    %c49 = arith.constant 49 : index
    %52 = memref.load %arg1[%c49] : memref<96xf32, #tpu.memory_space<smem>>
    %c81 = arith.constant 81 : index
    %53 = memref.load %arg1[%c81] : memref<96xf32, #tpu.memory_space<smem>>
    %c18 = arith.constant 18 : index
    %54 = memref.load %arg1[%c18] : memref<96xf32, #tpu.memory_space<smem>>
    %c50 = arith.constant 50 : index
    %55 = memref.load %arg1[%c50] : memref<96xf32, #tpu.memory_space<smem>>
    %c82 = arith.constant 82 : index
    %56 = memref.load %arg1[%c82] : memref<96xf32, #tpu.memory_space<smem>>
    %c19 = arith.constant 19 : index
    %57 = memref.load %arg1[%c19] : memref<96xf32, #tpu.memory_space<smem>>
    %c51 = arith.constant 51 : index
    %58 = memref.load %arg1[%c51] : memref<96xf32, #tpu.memory_space<smem>>
    %c83 = arith.constant 83 : index
    %59 = memref.load %arg1[%c83] : memref<96xf32, #tpu.memory_space<smem>>
    %c20 = arith.constant 20 : index
    %60 = memref.load %arg1[%c20] : memref<96xf32, #tpu.memory_space<smem>>
    %c52 = arith.constant 52 : index
    %61 = memref.load %arg1[%c52] : memref<96xf32, #tpu.memory_space<smem>>
    %c84 = arith.constant 84 : index
    %62 = memref.load %arg1[%c84] : memref<96xf32, #tpu.memory_space<smem>>
    %c21 = arith.constant 21 : index
    %63 = memref.load %arg1[%c21] : memref<96xf32, #tpu.memory_space<smem>>
    %c53 = arith.constant 53 : index
    %64 = memref.load %arg1[%c53] : memref<96xf32, #tpu.memory_space<smem>>
    %c85 = arith.constant 85 : index
    %65 = memref.load %arg1[%c85] : memref<96xf32, #tpu.memory_space<smem>>
    %c22 = arith.constant 22 : index
    %66 = memref.load %arg1[%c22] : memref<96xf32, #tpu.memory_space<smem>>
    %c54 = arith.constant 54 : index
    %67 = memref.load %arg1[%c54] : memref<96xf32, #tpu.memory_space<smem>>
    %c86 = arith.constant 86 : index
    %68 = memref.load %arg1[%c86] : memref<96xf32, #tpu.memory_space<smem>>
    %c23 = arith.constant 23 : index
    %69 = memref.load %arg1[%c23] : memref<96xf32, #tpu.memory_space<smem>>
    %c55 = arith.constant 55 : index
    %70 = memref.load %arg1[%c55] : memref<96xf32, #tpu.memory_space<smem>>
    %c87 = arith.constant 87 : index
    %71 = memref.load %arg1[%c87] : memref<96xf32, #tpu.memory_space<smem>>
    %c24 = arith.constant 24 : index
    %72 = memref.load %arg1[%c24] : memref<96xf32, #tpu.memory_space<smem>>
    %c56 = arith.constant 56 : index
    %73 = memref.load %arg1[%c56] : memref<96xf32, #tpu.memory_space<smem>>
    %c88 = arith.constant 88 : index
    %74 = memref.load %arg1[%c88] : memref<96xf32, #tpu.memory_space<smem>>
    %c25 = arith.constant 25 : index
    %75 = memref.load %arg1[%c25] : memref<96xf32, #tpu.memory_space<smem>>
    %c57 = arith.constant 57 : index
    %76 = memref.load %arg1[%c57] : memref<96xf32, #tpu.memory_space<smem>>
    %c89 = arith.constant 89 : index
    %77 = memref.load %arg1[%c89] : memref<96xf32, #tpu.memory_space<smem>>
    %c26 = arith.constant 26 : index
    %78 = memref.load %arg1[%c26] : memref<96xf32, #tpu.memory_space<smem>>
    %c58 = arith.constant 58 : index
    %79 = memref.load %arg1[%c58] : memref<96xf32, #tpu.memory_space<smem>>
    %c90 = arith.constant 90 : index
    %80 = memref.load %arg1[%c90] : memref<96xf32, #tpu.memory_space<smem>>
    %c27 = arith.constant 27 : index
    %81 = memref.load %arg1[%c27] : memref<96xf32, #tpu.memory_space<smem>>
    %c59 = arith.constant 59 : index
    %82 = memref.load %arg1[%c59] : memref<96xf32, #tpu.memory_space<smem>>
    %c91 = arith.constant 91 : index
    %83 = memref.load %arg1[%c91] : memref<96xf32, #tpu.memory_space<smem>>
    %c28 = arith.constant 28 : index
    %84 = memref.load %arg1[%c28] : memref<96xf32, #tpu.memory_space<smem>>
    %c60 = arith.constant 60 : index
    %85 = memref.load %arg1[%c60] : memref<96xf32, #tpu.memory_space<smem>>
    %c92 = arith.constant 92 : index
    %86 = memref.load %arg1[%c92] : memref<96xf32, #tpu.memory_space<smem>>
    %c29 = arith.constant 29 : index
    %87 = memref.load %arg1[%c29] : memref<96xf32, #tpu.memory_space<smem>>
    %c61 = arith.constant 61 : index
    %88 = memref.load %arg1[%c61] : memref<96xf32, #tpu.memory_space<smem>>
    %c93 = arith.constant 93 : index
    %89 = memref.load %arg1[%c93] : memref<96xf32, #tpu.memory_space<smem>>
    %c30 = arith.constant 30 : index
    %90 = memref.load %arg1[%c30] : memref<96xf32, #tpu.memory_space<smem>>
    %c62 = arith.constant 62 : index
    %91 = memref.load %arg1[%c62] : memref<96xf32, #tpu.memory_space<smem>>
    %c94 = arith.constant 94 : index
    %92 = memref.load %arg1[%c94] : memref<96xf32, #tpu.memory_space<smem>>
    %c31 = arith.constant 31 : index
    %93 = memref.load %arg1[%c31] : memref<96xf32, #tpu.memory_space<smem>>
    %c63 = arith.constant 63 : index
    %94 = memref.load %arg1[%c63] : memref<96xf32, #tpu.memory_space<smem>>
    %c95 = arith.constant 95 : index
    %95 = memref.load %arg1[%c95] : memref<96xf32, #tpu.memory_space<smem>>
    %c0_0 = arith.constant 0 : index
    %96 = memref.load %arg2[%c0_0] : memref<32xf32, #tpu.memory_space<smem>>
    %c1_1 = arith.constant 1 : index
    %97 = memref.load %arg2[%c1_1] : memref<32xf32, #tpu.memory_space<smem>>
    %c2_2 = arith.constant 2 : index
    %98 = memref.load %arg2[%c2_2] : memref<32xf32, #tpu.memory_space<smem>>
    %c3_3 = arith.constant 3 : index
    %99 = memref.load %arg2[%c3_3] : memref<32xf32, #tpu.memory_space<smem>>
    %c4_4 = arith.constant 4 : index
    %100 = memref.load %arg2[%c4_4] : memref<32xf32, #tpu.memory_space<smem>>
    %c5_5 = arith.constant 5 : index
    %101 = memref.load %arg2[%c5_5] : memref<32xf32, #tpu.memory_space<smem>>
    %c6_6 = arith.constant 6 : index
    %102 = memref.load %arg2[%c6_6] : memref<32xf32, #tpu.memory_space<smem>>
    %c7_7 = arith.constant 7 : index
    %103 = memref.load %arg2[%c7_7] : memref<32xf32, #tpu.memory_space<smem>>
    %c8_8 = arith.constant 8 : index
    %104 = memref.load %arg2[%c8_8] : memref<32xf32, #tpu.memory_space<smem>>
    %c9_9 = arith.constant 9 : index
    %105 = memref.load %arg2[%c9_9] : memref<32xf32, #tpu.memory_space<smem>>
    %c10_10 = arith.constant 10 : index
    %106 = memref.load %arg2[%c10_10] : memref<32xf32, #tpu.memory_space<smem>>
    %c11_11 = arith.constant 11 : index
    %107 = memref.load %arg2[%c11_11] : memref<32xf32, #tpu.memory_space<smem>>
    %c12_12 = arith.constant 12 : index
    %108 = memref.load %arg2[%c12_12] : memref<32xf32, #tpu.memory_space<smem>>
    %c13_13 = arith.constant 13 : index
    %109 = memref.load %arg2[%c13_13] : memref<32xf32, #tpu.memory_space<smem>>
    %c14_14 = arith.constant 14 : index
    %110 = memref.load %arg2[%c14_14] : memref<32xf32, #tpu.memory_space<smem>>
    %c15_15 = arith.constant 15 : index
    %111 = memref.load %arg2[%c15_15] : memref<32xf32, #tpu.memory_space<smem>>
    %c16_16 = arith.constant 16 : index
    %112 = memref.load %arg2[%c16_16] : memref<32xf32, #tpu.memory_space<smem>>
    %c17_17 = arith.constant 17 : index
    %113 = memref.load %arg2[%c17_17] : memref<32xf32, #tpu.memory_space<smem>>
    %c18_18 = arith.constant 18 : index
    %114 = memref.load %arg2[%c18_18] : memref<32xf32, #tpu.memory_space<smem>>
    %c19_19 = arith.constant 19 : index
    %115 = memref.load %arg2[%c19_19] : memref<32xf32, #tpu.memory_space<smem>>
    %c20_20 = arith.constant 20 : index
    %116 = memref.load %arg2[%c20_20] : memref<32xf32, #tpu.memory_space<smem>>
    %c21_21 = arith.constant 21 : index
    %117 = memref.load %arg2[%c21_21] : memref<32xf32, #tpu.memory_space<smem>>
    %c22_22 = arith.constant 22 : index
    %118 = memref.load %arg2[%c22_22] : memref<32xf32, #tpu.memory_space<smem>>
    %c23_23 = arith.constant 23 : index
    %119 = memref.load %arg2[%c23_23] : memref<32xf32, #tpu.memory_space<smem>>
    %c24_24 = arith.constant 24 : index
    %120 = memref.load %arg2[%c24_24] : memref<32xf32, #tpu.memory_space<smem>>
    %c25_25 = arith.constant 25 : index
    %121 = memref.load %arg2[%c25_25] : memref<32xf32, #tpu.memory_space<smem>>
    %c26_26 = arith.constant 26 : index
    %122 = memref.load %arg2[%c26_26] : memref<32xf32, #tpu.memory_space<smem>>
    %c27_27 = arith.constant 27 : index
    %123 = memref.load %arg2[%c27_27] : memref<32xf32, #tpu.memory_space<smem>>
    %c28_28 = arith.constant 28 : index
    %124 = memref.load %arg2[%c28_28] : memref<32xf32, #tpu.memory_space<smem>>
    %c29_29 = arith.constant 29 : index
    %125 = memref.load %arg2[%c29_29] : memref<32xf32, #tpu.memory_space<smem>>
    %c30_30 = arith.constant 30 : index
    %126 = memref.load %arg2[%c30_30] : memref<32xf32, #tpu.memory_space<smem>>
    %c31_31 = arith.constant 31 : index
    %127 = memref.load %arg2[%c31_31] : memref<32xf32, #tpu.memory_space<smem>>
    %c0_32 = arith.constant 0 : index
    %128 = memref.load %arg3[%c0_32] : memref<32xf32, #tpu.memory_space<smem>>
    %c1_33 = arith.constant 1 : index
    %129 = memref.load %arg3[%c1_33] : memref<32xf32, #tpu.memory_space<smem>>
    %c2_34 = arith.constant 2 : index
    %130 = memref.load %arg3[%c2_34] : memref<32xf32, #tpu.memory_space<smem>>
    %c3_35 = arith.constant 3 : index
    %131 = memref.load %arg3[%c3_35] : memref<32xf32, #tpu.memory_space<smem>>
    %c4_36 = arith.constant 4 : index
    %132 = memref.load %arg3[%c4_36] : memref<32xf32, #tpu.memory_space<smem>>
    %c5_37 = arith.constant 5 : index
    %133 = memref.load %arg3[%c5_37] : memref<32xf32, #tpu.memory_space<smem>>
    %c6_38 = arith.constant 6 : index
    %134 = memref.load %arg3[%c6_38] : memref<32xf32, #tpu.memory_space<smem>>
    %c7_39 = arith.constant 7 : index
    %135 = memref.load %arg3[%c7_39] : memref<32xf32, #tpu.memory_space<smem>>
    %c8_40 = arith.constant 8 : index
    %136 = memref.load %arg3[%c8_40] : memref<32xf32, #tpu.memory_space<smem>>
    %c9_41 = arith.constant 9 : index
    %137 = memref.load %arg3[%c9_41] : memref<32xf32, #tpu.memory_space<smem>>
    %c10_42 = arith.constant 10 : index
    %138 = memref.load %arg3[%c10_42] : memref<32xf32, #tpu.memory_space<smem>>
    %c11_43 = arith.constant 11 : index
    %139 = memref.load %arg3[%c11_43] : memref<32xf32, #tpu.memory_space<smem>>
    %c12_44 = arith.constant 12 : index
    %140 = memref.load %arg3[%c12_44] : memref<32xf32, #tpu.memory_space<smem>>
    %c13_45 = arith.constant 13 : index
    %141 = memref.load %arg3[%c13_45] : memref<32xf32, #tpu.memory_space<smem>>
    %c14_46 = arith.constant 14 : index
    %142 = memref.load %arg3[%c14_46] : memref<32xf32, #tpu.memory_space<smem>>
    %c15_47 = arith.constant 15 : index
    %143 = memref.load %arg3[%c15_47] : memref<32xf32, #tpu.memory_space<smem>>
    %c16_48 = arith.constant 16 : index
    %144 = memref.load %arg3[%c16_48] : memref<32xf32, #tpu.memory_space<smem>>
    %c17_49 = arith.constant 17 : index
    %145 = memref.load %arg3[%c17_49] : memref<32xf32, #tpu.memory_space<smem>>
    %c18_50 = arith.constant 18 : index
    %146 = memref.load %arg3[%c18_50] : memref<32xf32, #tpu.memory_space<smem>>
    %c19_51 = arith.constant 19 : index
    %147 = memref.load %arg3[%c19_51] : memref<32xf32, #tpu.memory_space<smem>>
    %c20_52 = arith.constant 20 : index
    %148 = memref.load %arg3[%c20_52] : memref<32xf32, #tpu.memory_space<smem>>
    %c21_53 = arith.constant 21 : index
    %149 = memref.load %arg3[%c21_53] : memref<32xf32, #tpu.memory_space<smem>>
    %c22_54 = arith.constant 22 : index
    %150 = memref.load %arg3[%c22_54] : memref<32xf32, #tpu.memory_space<smem>>
    %c23_55 = arith.constant 23 : index
    %151 = memref.load %arg3[%c23_55] : memref<32xf32, #tpu.memory_space<smem>>
    %c24_56 = arith.constant 24 : index
    %152 = memref.load %arg3[%c24_56] : memref<32xf32, #tpu.memory_space<smem>>
    %c25_57 = arith.constant 25 : index
    %153 = memref.load %arg3[%c25_57] : memref<32xf32, #tpu.memory_space<smem>>
    %c26_58 = arith.constant 26 : index
    %154 = memref.load %arg3[%c26_58] : memref<32xf32, #tpu.memory_space<smem>>
    %c27_59 = arith.constant 27 : index
    %155 = memref.load %arg3[%c27_59] : memref<32xf32, #tpu.memory_space<smem>>
    %c28_60 = arith.constant 28 : index
    %156 = memref.load %arg3[%c28_60] : memref<32xf32, #tpu.memory_space<smem>>
    %c29_61 = arith.constant 29 : index
    %157 = memref.load %arg3[%c29_61] : memref<32xf32, #tpu.memory_space<smem>>
    %c30_62 = arith.constant 30 : index
    %158 = memref.load %arg3[%c30_62] : memref<32xf32, #tpu.memory_space<smem>>
    %c31_63 = arith.constant 31 : index
    %159 = memref.load %arg3[%c31_63] : memref<32xf32, #tpu.memory_space<smem>>
    %c0_64 = arith.constant 0 : index
    %160 = memref.load %arg4[%c0_64] : memref<1xf32, #tpu.memory_space<smem>>
    %c0_i32 = arith.constant 0 : i32
    %c4_i32 = arith.constant 4 : i32
    %161 = arith.addi %c0_i32, %c4_i32 : i32
    %c1_i32 = arith.constant 1 : i32
    scf.for %arg7 = %c0_i32 to %161 step %c1_i32  : i32 {
      %c16_i32 = arith.constant 16 : i32
      %162 = arith.muli %arg7, %c16_i32 : i32
      %163 = tpu.assume_multiple %162, 16 : i32
      %c0_66 = arith.constant 0 : index
      %164 = arith.index_cast %163 : i32 to index
      %c0_67 = arith.constant 0 : index
      %165 = vector.load %arg5[%c0_66, %164, %c0_67] : memref<3x64x512xbf16, #tpu.memory_space<vmem>>, vector<1x16x512xbf16>
      %166 = vector.shape_cast %165 : vector<1x16x512xbf16> to vector<16x512xbf16>
      %167 = arith.extf %166 : vector<16x512xbf16> to vector<16x512xf32>
      %c1_68 = arith.constant 1 : index
      %168 = arith.index_cast %163 : i32 to index
      %c0_69 = arith.constant 0 : index
      %169 = vector.load %arg5[%c1_68, %168, %c0_69] : memref<3x64x512xbf16, #tpu.memory_space<vmem>>, vector<1x16x512xbf16>
      %170 = vector.shape_cast %169 : vector<1x16x512xbf16> to vector<16x512xbf16>
      %171 = arith.extf %170 : vector<16x512xbf16> to vector<16x512xf32>
      %c2_70 = arith.constant 2 : index
      %172 = arith.index_cast %163 : i32 to index
      %c0_71 = arith.constant 0 : index
      %173 = vector.load %arg5[%c2_70, %172, %c0_71] : memref<3x64x512xbf16, #tpu.memory_space<vmem>>, vector<1x16x512xbf16>
      %174 = vector.shape_cast %173 : vector<1x16x512xbf16> to vector<16x512xbf16>
      %175 = arith.extf %174 : vector<16x512xbf16> to vector<16x512xf32>
      %cst = arith.constant 0.000000e+00 : f32
      %176 = vector.broadcast %cst : f32 to vector<16x512xf32>
      %177 = vector.broadcast %0 : f32 to vector<16x512xf32>
      %178 = arith.mulf %167, %177 : vector<16x512xf32>
      %179 = vector.broadcast %96 : f32 to vector<16x512xf32>
      %180 = arith.addf %178, %179 : vector<16x512xf32>
      %181 = vector.broadcast %1 : f32 to vector<16x512xf32>
      %182 = arith.mulf %171, %181 : vector<16x512xf32>
      %183 = arith.addf %180, %182 : vector<16x512xf32>
      %184 = vector.broadcast %2 : f32 to vector<16x512xf32>
      %185 = arith.mulf %175, %184 : vector<16x512xf32>
      %186 = arith.addf %183, %185 : vector<16x512xf32>
      %cst_72 = arith.constant 0.000000e+00 : f32
      %187 = vector.broadcast %cst_72 : f32 to vector<16x512xf32>
      %188 = arith.maximumf %186, %187 : vector<16x512xf32>
      %189 = vector.broadcast %128 : f32 to vector<16x512xf32>
      %190 = arith.mulf %189, %188 : vector<16x512xf32>
      %191 = arith.addf %176, %190 : vector<16x512xf32>
      %192 = vector.broadcast %3 : f32 to vector<16x512xf32>
      %193 = arith.mulf %167, %192 : vector<16x512xf32>
      %194 = vector.broadcast %97 : f32 to vector<16x512xf32>
      %195 = arith.addf %193, %194 : vector<16x512xf32>
      %196 = vector.broadcast %4 : f32 to vector<16x512xf32>
      %197 = arith.mulf %171, %196 : vector<16x512xf32>
      %198 = arith.addf %195, %197 : vector<16x512xf32>
      %199 = vector.broadcast %5 : f32 to vector<16x512xf32>
      %200 = arith.mulf %175, %199 : vector<16x512xf32>
      %201 = arith.addf %198, %200 : vector<16x512xf32>
      %cst_73 = arith.constant 0.000000e+00 : f32
      %202 = vector.broadcast %cst_73 : f32 to vector<16x512xf32>
      %203 = arith.maximumf %201, %202 : vector<16x512xf32>
      %204 = vector.broadcast %129 : f32 to vector<16x512xf32>
      %205 = arith.mulf %204, %203 : vector<16x512xf32>
      %206 = arith.addf %191, %205 : vector<16x512xf32>
      %207 = vector.broadcast %6 : f32 to vector<16x512xf32>
      %208 = arith.mulf %167, %207 : vector<16x512xf32>
      %209 = vector.broadcast %98 : f32 to vector<16x512xf32>
      %210 = arith.addf %208, %209 : vector<16x512xf32>
      %211 = vector.broadcast %7 : f32 to vector<16x512xf32>
      %212 = arith.mulf %171, %211 : vector<16x512xf32>
      %213 = arith.addf %210, %212 : vector<16x512xf32>
      %214 = vector.broadcast %8 : f32 to vector<16x512xf32>
      %215 = arith.mulf %175, %214 : vector<16x512xf32>
      %216 = arith.addf %213, %215 : vector<16x512xf32>
      %cst_74 = arith.constant 0.000000e+00 : f32
      %217 = vector.broadcast %cst_74 : f32 to vector<16x512xf32>
      %218 = arith.maximumf %216, %217 : vector<16x512xf32>
      %219 = vector.broadcast %130 : f32 to vector<16x512xf32>
      %220 = arith.mulf %219, %218 : vector<16x512xf32>
      %221 = arith.addf %206, %220 : vector<16x512xf32>
      %222 = vector.broadcast %9 : f32 to vector<16x512xf32>
      %223 = arith.mulf %167, %222 : vector<16x512xf32>
      %224 = vector.broadcast %99 : f32 to vector<16x512xf32>
      %225 = arith.addf %223, %224 : vector<16x512xf32>
      %226 = vector.broadcast %10 : f32 to vector<16x512xf32>
      %227 = arith.mulf %171, %226 : vector<16x512xf32>
      %228 = arith.addf %225, %227 : vector<16x512xf32>
      %229 = vector.broadcast %11 : f32 to vector<16x512xf32>
      %230 = arith.mulf %175, %229 : vector<16x512xf32>
      %231 = arith.addf %228, %230 : vector<16x512xf32>
      %cst_75 = arith.constant 0.000000e+00 : f32
      %232 = vector.broadcast %cst_75 : f32 to vector<16x512xf32>
      %233 = arith.maximumf %231, %232 : vector<16x512xf32>
      %234 = vector.broadcast %131 : f32 to vector<16x512xf32>
      %235 = arith.mulf %234, %233 : vector<16x512xf32>
      %236 = arith.addf %221, %235 : vector<16x512xf32>
      %237 = vector.broadcast %12 : f32 to vector<16x512xf32>
      %238 = arith.mulf %167, %237 : vector<16x512xf32>
      %239 = vector.broadcast %100 : f32 to vector<16x512xf32>
      %240 = arith.addf %238, %239 : vector<16x512xf32>
      %241 = vector.broadcast %13 : f32 to vector<16x512xf32>
      %242 = arith.mulf %171, %241 : vector<16x512xf32>
      %243 = arith.addf %240, %242 : vector<16x512xf32>
      %244 = vector.broadcast %14 : f32 to vector<16x512xf32>
      %245 = arith.mulf %175, %244 : vector<16x512xf32>
      %246 = arith.addf %243, %245 : vector<16x512xf32>
      %cst_76 = arith.constant 0.000000e+00 : f32
      %247 = vector.broadcast %cst_76 : f32 to vector<16x512xf32>
      %248 = arith.maximumf %246, %247 : vector<16x512xf32>
      %249 = vector.broadcast %132 : f32 to vector<16x512xf32>
      %250 = arith.mulf %249, %248 : vector<16x512xf32>
      %251 = arith.addf %236, %250 : vector<16x512xf32>
      %252 = vector.broadcast %15 : f32 to vector<16x512xf32>
      %253 = arith.mulf %167, %252 : vector<16x512xf32>
      %254 = vector.broadcast %101 : f32 to vector<16x512xf32>
      %255 = arith.addf %253, %254 : vector<16x512xf32>
      %256 = vector.broadcast %16 : f32 to vector<16x512xf32>
      %257 = arith.mulf %171, %256 : vector<16x512xf32>
      %258 = arith.addf %255, %257 : vector<16x512xf32>
      %259 = vector.broadcast %17 : f32 to vector<16x512xf32>
      %260 = arith.mulf %175, %259 : vector<16x512xf32>
      %261 = arith.addf %258, %260 : vector<16x512xf32>
      %cst_77 = arith.constant 0.000000e+00 : f32
      %262 = vector.broadcast %cst_77 : f32 to vector<16x512xf32>
      %263 = arith.maximumf %261, %262 : vector<16x512xf32>
      %264 = vector.broadcast %133 : f32 to vector<16x512xf32>
      %265 = arith.mulf %264, %263 : vector<16x512xf32>
      %266 = arith.addf %251, %265 : vector<16x512xf32>
      %267 = vector.broadcast %18 : f32 to vector<16x512xf32>
      %268 = arith.mulf %167, %267 : vector<16x512xf32>
      %269 = vector.broadcast %102 : f32 to vector<16x512xf32>
      %270 = arith.addf %268, %269 : vector<16x512xf32>
      %271 = vector.broadcast %19 : f32 to vector<16x512xf32>
      %272 = arith.mulf %171, %271 : vector<16x512xf32>
      %273 = arith.addf %270, %272 : vector<16x512xf32>
      %274 = vector.broadcast %20 : f32 to vector<16x512xf32>
      %275 = arith.mulf %175, %274 : vector<16x512xf32>
      %276 = arith.addf %273, %275 : vector<16x512xf32>
      %cst_78 = arith.constant 0.000000e+00 : f32
      %277 = vector.broadcast %cst_78 : f32 to vector<16x512xf32>
      %278 = arith.maximumf %276, %277 : vector<16x512xf32>
      %279 = vector.broadcast %134 : f32 to vector<16x512xf32>
      %280 = arith.mulf %279, %278 : vector<16x512xf32>
      %281 = arith.addf %266, %280 : vector<16x512xf32>
      %282 = vector.broadcast %21 : f32 to vector<16x512xf32>
      %283 = arith.mulf %167, %282 : vector<16x512xf32>
      %284 = vector.broadcast %103 : f32 to vector<16x512xf32>
      %285 = arith.addf %283, %284 : vector<16x512xf32>
      %286 = vector.broadcast %22 : f32 to vector<16x512xf32>
      %287 = arith.mulf %171, %286 : vector<16x512xf32>
      %288 = arith.addf %285, %287 : vector<16x512xf32>
      %289 = vector.broadcast %23 : f32 to vector<16x512xf32>
      %290 = arith.mulf %175, %289 : vector<16x512xf32>
      %291 = arith.addf %288, %290 : vector<16x512xf32>
      %cst_79 = arith.constant 0.000000e+00 : f32
      %292 = vector.broadcast %cst_79 : f32 to vector<16x512xf32>
      %293 = arith.maximumf %291, %292 : vector<16x512xf32>
      %294 = vector.broadcast %135 : f32 to vector<16x512xf32>
      %295 = arith.mulf %294, %293 : vector<16x512xf32>
      %296 = arith.addf %281, %295 : vector<16x512xf32>
      %297 = vector.broadcast %24 : f32 to vector<16x512xf32>
      %298 = arith.mulf %167, %297 : vector<16x512xf32>
      %299 = vector.broadcast %104 : f32 to vector<16x512xf32>
      %300 = arith.addf %298, %299 : vector<16x512xf32>
      %301 = vector.broadcast %25 : f32 to vector<16x512xf32>
      %302 = arith.mulf %171, %301 : vector<16x512xf32>
      %303 = arith.addf %300, %302 : vector<16x512xf32>
      %304 = vector.broadcast %26 : f32 to vector<16x512xf32>
      %305 = arith.mulf %175, %304 : vector<16x512xf32>
      %306 = arith.addf %303, %305 : vector<16x512xf32>
      %cst_80 = arith.constant 0.000000e+00 : f32
      %307 = vector.broadcast %cst_80 : f32 to vector<16x512xf32>
      %308 = arith.maximumf %306, %307 : vector<16x512xf32>
      %309 = vector.broadcast %136 : f32 to vector<16x512xf32>
      %310 = arith.mulf %309, %308 : vector<16x512xf32>
      %311 = arith.addf %296, %310 : vector<16x512xf32>
      %312 = vector.broadcast %27 : f32 to vector<16x512xf32>
      %313 = arith.mulf %167, %312 : vector<16x512xf32>
      %314 = vector.broadcast %105 : f32 to vector<16x512xf32>
      %315 = arith.addf %313, %314 : vector<16x512xf32>
      %316 = vector.broadcast %28 : f32 to vector<16x512xf32>
      %317 = arith.mulf %171, %316 : vector<16x512xf32>
      %318 = arith.addf %315, %317 : vector<16x512xf32>
      %319 = vector.broadcast %29 : f32 to vector<16x512xf32>
      %320 = arith.mulf %175, %319 : vector<16x512xf32>
      %321 = arith.addf %318, %320 : vector<16x512xf32>
      %cst_81 = arith.constant 0.000000e+00 : f32
      %322 = vector.broadcast %cst_81 : f32 to vector<16x512xf32>
      %323 = arith.maximumf %321, %322 : vector<16x512xf32>
      %324 = vector.broadcast %137 : f32 to vector<16x512xf32>
      %325 = arith.mulf %324, %323 : vector<16x512xf32>
      %326 = arith.addf %311, %325 : vector<16x512xf32>
      %327 = vector.broadcast %30 : f32 to vector<16x512xf32>
      %328 = arith.mulf %167, %327 : vector<16x512xf32>
      %329 = vector.broadcast %106 : f32 to vector<16x512xf32>
      %330 = arith.addf %328, %329 : vector<16x512xf32>
      %331 = vector.broadcast %31 : f32 to vector<16x512xf32>
      %332 = arith.mulf %171, %331 : vector<16x512xf32>
      %333 = arith.addf %330, %332 : vector<16x512xf32>
      %334 = vector.broadcast %32 : f32 to vector<16x512xf32>
      %335 = arith.mulf %175, %334 : vector<16x512xf32>
      %336 = arith.addf %333, %335 : vector<16x512xf32>
      %cst_82 = arith.constant 0.000000e+00 : f32
      %337 = vector.broadcast %cst_82 : f32 to vector<16x512xf32>
      %338 = arith.maximumf %336, %337 : vector<16x512xf32>
      %339 = vector.broadcast %138 : f32 to vector<16x512xf32>
      %340 = arith.mulf %339, %338 : vector<16x512xf32>
      %341 = arith.addf %326, %340 : vector<16x512xf32>
      %342 = vector.broadcast %33 : f32 to vector<16x512xf32>
      %343 = arith.mulf %167, %342 : vector<16x512xf32>
      %344 = vector.broadcast %107 : f32 to vector<16x512xf32>
      %345 = arith.addf %343, %344 : vector<16x512xf32>
      %346 = vector.broadcast %34 : f32 to vector<16x512xf32>
      %347 = arith.mulf %171, %346 : vector<16x512xf32>
      %348 = arith.addf %345, %347 : vector<16x512xf32>
      %349 = vector.broadcast %35 : f32 to vector<16x512xf32>
      %350 = arith.mulf %175, %349 : vector<16x512xf32>
      %351 = arith.addf %348, %350 : vector<16x512xf32>
      %cst_83 = arith.constant 0.000000e+00 : f32
      %352 = vector.broadcast %cst_83 : f32 to vector<16x512xf32>
      %353 = arith.maximumf %351, %352 : vector<16x512xf32>
      %354 = vector.broadcast %139 : f32 to vector<16x512xf32>
      %355 = arith.mulf %354, %353 : vector<16x512xf32>
      %356 = arith.addf %341, %355 : vector<16x512xf32>
      %357 = vector.broadcast %36 : f32 to vector<16x512xf32>
      %358 = arith.mulf %167, %357 : vector<16x512xf32>
      %359 = vector.broadcast %108 : f32 to vector<16x512xf32>
      %360 = arith.addf %358, %359 : vector<16x512xf32>
      %361 = vector.broadcast %37 : f32 to vector<16x512xf32>
      %362 = arith.mulf %171, %361 : vector<16x512xf32>
      %363 = arith.addf %360, %362 : vector<16x512xf32>
      %364 = vector.broadcast %38 : f32 to vector<16x512xf32>
      %365 = arith.mulf %175, %364 : vector<16x512xf32>
      %366 = arith.addf %363, %365 : vector<16x512xf32>
      %cst_84 = arith.constant 0.000000e+00 : f32
      %367 = vector.broadcast %cst_84 : f32 to vector<16x512xf32>
      %368 = arith.maximumf %366, %367 : vector<16x512xf32>
      %369 = vector.broadcast %140 : f32 to vector<16x512xf32>
      %370 = arith.mulf %369, %368 : vector<16x512xf32>
      %371 = arith.addf %356, %370 : vector<16x512xf32>
      %372 = vector.broadcast %39 : f32 to vector<16x512xf32>
      %373 = arith.mulf %167, %372 : vector<16x512xf32>
      %374 = vector.broadcast %109 : f32 to vector<16x512xf32>
      %375 = arith.addf %373, %374 : vector<16x512xf32>
      %376 = vector.broadcast %40 : f32 to vector<16x512xf32>
      %377 = arith.mulf %171, %376 : vector<16x512xf32>
      %378 = arith.addf %375, %377 : vector<16x512xf32>
      %379 = vector.broadcast %41 : f32 to vector<16x512xf32>
      %380 = arith.mulf %175, %379 : vector<16x512xf32>
      %381 = arith.addf %378, %380 : vector<16x512xf32>
      %cst_85 = arith.constant 0.000000e+00 : f32
      %382 = vector.broadcast %cst_85 : f32 to vector<16x512xf32>
      %383 = arith.maximumf %381, %382 : vector<16x512xf32>
      %384 = vector.broadcast %141 : f32 to vector<16x512xf32>
      %385 = arith.mulf %384, %383 : vector<16x512xf32>
      %386 = arith.addf %371, %385 : vector<16x512xf32>
      %387 = vector.broadcast %42 : f32 to vector<16x512xf32>
      %388 = arith.mulf %167, %387 : vector<16x512xf32>
      %389 = vector.broadcast %110 : f32 to vector<16x512xf32>
      %390 = arith.addf %388, %389 : vector<16x512xf32>
      %391 = vector.broadcast %43 : f32 to vector<16x512xf32>
      %392 = arith.mulf %171, %391 : vector<16x512xf32>
      %393 = arith.addf %390, %392 : vector<16x512xf32>
      %394 = vector.broadcast %44 : f32 to vector<16x512xf32>
      %395 = arith.mulf %175, %394 : vector<16x512xf32>
      %396 = arith.addf %393, %395 : vector<16x512xf32>
      %cst_86 = arith.constant 0.000000e+00 : f32
      %397 = vector.broadcast %cst_86 : f32 to vector<16x512xf32>
      %398 = arith.maximumf %396, %397 : vector<16x512xf32>
      %399 = vector.broadcast %142 : f32 to vector<16x512xf32>
      %400 = arith.mulf %399, %398 : vector<16x512xf32>
      %401 = arith.addf %386, %400 : vector<16x512xf32>
      %402 = vector.broadcast %45 : f32 to vector<16x512xf32>
      %403 = arith.mulf %167, %402 : vector<16x512xf32>
      %404 = vector.broadcast %111 : f32 to vector<16x512xf32>
      %405 = arith.addf %403, %404 : vector<16x512xf32>
      %406 = vector.broadcast %46 : f32 to vector<16x512xf32>
      %407 = arith.mulf %171, %406 : vector<16x512xf32>
      %408 = arith.addf %405, %407 : vector<16x512xf32>
      %409 = vector.broadcast %47 : f32 to vector<16x512xf32>
      %410 = arith.mulf %175, %409 : vector<16x512xf32>
      %411 = arith.addf %408, %410 : vector<16x512xf32>
      %cst_87 = arith.constant 0.000000e+00 : f32
      %412 = vector.broadcast %cst_87 : f32 to vector<16x512xf32>
      %413 = arith.maximumf %411, %412 : vector<16x512xf32>
      %414 = vector.broadcast %143 : f32 to vector<16x512xf32>
      %415 = arith.mulf %414, %413 : vector<16x512xf32>
      %416 = arith.addf %401, %415 : vector<16x512xf32>
      %417 = vector.broadcast %48 : f32 to vector<16x512xf32>
      %418 = arith.mulf %167, %417 : vector<16x512xf32>
      %419 = vector.broadcast %112 : f32 to vector<16x512xf32>
      %420 = arith.addf %418, %419 : vector<16x512xf32>
      %421 = vector.broadcast %49 : f32 to vector<16x512xf32>
      %422 = arith.mulf %171, %421 : vector<16x512xf32>
      %423 = arith.addf %420, %422 : vector<16x512xf32>
      %424 = vector.broadcast %50 : f32 to vector<16x512xf32>
      %425 = arith.mulf %175, %424 : vector<16x512xf32>
      %426 = arith.addf %423, %425 : vector<16x512xf32>
      %cst_88 = arith.constant 0.000000e+00 : f32
      %427 = vector.broadcast %cst_88 : f32 to vector<16x512xf32>
      %428 = arith.maximumf %426, %427 : vector<16x512xf32>
      %429 = vector.broadcast %144 : f32 to vector<16x512xf32>
      %430 = arith.mulf %429, %428 : vector<16x512xf32>
      %431 = arith.addf %416, %430 : vector<16x512xf32>
      %432 = vector.broadcast %51 : f32 to vector<16x512xf32>
      %433 = arith.mulf %167, %432 : vector<16x512xf32>
      %434 = vector.broadcast %113 : f32 to vector<16x512xf32>
      %435 = arith.addf %433, %434 : vector<16x512xf32>
      %436 = vector.broadcast %52 : f32 to vector<16x512xf32>
      %437 = arith.mulf %171, %436 : vector<16x512xf32>
      %438 = arith.addf %435, %437 : vector<16x512xf32>
      %439 = vector.broadcast %53 : f32 to vector<16x512xf32>
      %440 = arith.mulf %175, %439 : vector<16x512xf32>
      %441 = arith.addf %438, %440 : vector<16x512xf32>
      %cst_89 = arith.constant 0.000000e+00 : f32
      %442 = vector.broadcast %cst_89 : f32 to vector<16x512xf32>
      %443 = arith.maximumf %441, %442 : vector<16x512xf32>
      %444 = vector.broadcast %145 : f32 to vector<16x512xf32>
      %445 = arith.mulf %444, %443 : vector<16x512xf32>
      %446 = arith.addf %431, %445 : vector<16x512xf32>
      %447 = vector.broadcast %54 : f32 to vector<16x512xf32>
      %448 = arith.mulf %167, %447 : vector<16x512xf32>
      %449 = vector.broadcast %114 : f32 to vector<16x512xf32>
      %450 = arith.addf %448, %449 : vector<16x512xf32>
      %451 = vector.broadcast %55 : f32 to vector<16x512xf32>
      %452 = arith.mulf %171, %451 : vector<16x512xf32>
      %453 = arith.addf %450, %452 : vector<16x512xf32>
      %454 = vector.broadcast %56 : f32 to vector<16x512xf32>
      %455 = arith.mulf %175, %454 : vector<16x512xf32>
      %456 = arith.addf %453, %455 : vector<16x512xf32>
      %cst_90 = arith.constant 0.000000e+00 : f32
      %457 = vector.broadcast %cst_90 : f32 to vector<16x512xf32>
      %458 = arith.maximumf %456, %457 : vector<16x512xf32>
      %459 = vector.broadcast %146 : f32 to vector<16x512xf32>
      %460 = arith.mulf %459, %458 : vector<16x512xf32>
      %461 = arith.addf %446, %460 : vector<16x512xf32>
      %462 = vector.broadcast %57 : f32 to vector<16x512xf32>
      %463 = arith.mulf %167, %462 : vector<16x512xf32>
      %464 = vector.broadcast %115 : f32 to vector<16x512xf32>
      %465 = arith.addf %463, %464 : vector<16x512xf32>
      %466 = vector.broadcast %58 : f32 to vector<16x512xf32>
      %467 = arith.mulf %171, %466 : vector<16x512xf32>
      %468 = arith.addf %465, %467 : vector<16x512xf32>
      %469 = vector.broadcast %59 : f32 to vector<16x512xf32>
      %470 = arith.mulf %175, %469 : vector<16x512xf32>
      %471 = arith.addf %468, %470 : vector<16x512xf32>
      %cst_91 = arith.constant 0.000000e+00 : f32
      %472 = vector.broadcast %cst_91 : f32 to vector<16x512xf32>
      %473 = arith.maximumf %471, %472 : vector<16x512xf32>
      %474 = vector.broadcast %147 : f32 to vector<16x512xf32>
      %475 = arith.mulf %474, %473 : vector<16x512xf32>
      %476 = arith.addf %461, %475 : vector<16x512xf32>
      %477 = vector.broadcast %60 : f32 to vector<16x512xf32>
      %478 = arith.mulf %167, %477 : vector<16x512xf32>
      %479 = vector.broadcast %116 : f32 to vector<16x512xf32>
      %480 = arith.addf %478, %479 : vector<16x512xf32>
      %481 = vector.broadcast %61 : f32 to vector<16x512xf32>
      %482 = arith.mulf %171, %481 : vector<16x512xf32>
      %483 = arith.addf %480, %482 : vector<16x512xf32>
      %484 = vector.broadcast %62 : f32 to vector<16x512xf32>
      %485 = arith.mulf %175, %484 : vector<16x512xf32>
      %486 = arith.addf %483, %485 : vector<16x512xf32>
      %cst_92 = arith.constant 0.000000e+00 : f32
      %487 = vector.broadcast %cst_92 : f32 to vector<16x512xf32>
      %488 = arith.maximumf %486, %487 : vector<16x512xf32>
      %489 = vector.broadcast %148 : f32 to vector<16x512xf32>
      %490 = arith.mulf %489, %488 : vector<16x512xf32>
      %491 = arith.addf %476, %490 : vector<16x512xf32>
      %492 = vector.broadcast %63 : f32 to vector<16x512xf32>
      %493 = arith.mulf %167, %492 : vector<16x512xf32>
      %494 = vector.broadcast %117 : f32 to vector<16x512xf32>
      %495 = arith.addf %493, %494 : vector<16x512xf32>
      %496 = vector.broadcast %64 : f32 to vector<16x512xf32>
      %497 = arith.mulf %171, %496 : vector<16x512xf32>
      %498 = arith.addf %495, %497 : vector<16x512xf32>
      %499 = vector.broadcast %65 : f32 to vector<16x512xf32>
      %500 = arith.mulf %175, %499 : vector<16x512xf32>
      %501 = arith.addf %498, %500 : vector<16x512xf32>
      %cst_93 = arith.constant 0.000000e+00 : f32
      %502 = vector.broadcast %cst_93 : f32 to vector<16x512xf32>
      %503 = arith.maximumf %501, %502 : vector<16x512xf32>
      %504 = vector.broadcast %149 : f32 to vector<16x512xf32>
      %505 = arith.mulf %504, %503 : vector<16x512xf32>
      %506 = arith.addf %491, %505 : vector<16x512xf32>
      %507 = vector.broadcast %66 : f32 to vector<16x512xf32>
      %508 = arith.mulf %167, %507 : vector<16x512xf32>
      %509 = vector.broadcast %118 : f32 to vector<16x512xf32>
      %510 = arith.addf %508, %509 : vector<16x512xf32>
      %511 = vector.broadcast %67 : f32 to vector<16x512xf32>
      %512 = arith.mulf %171, %511 : vector<16x512xf32>
      %513 = arith.addf %510, %512 : vector<16x512xf32>
      %514 = vector.broadcast %68 : f32 to vector<16x512xf32>
      %515 = arith.mulf %175, %514 : vector<16x512xf32>
      %516 = arith.addf %513, %515 : vector<16x512xf32>
      %cst_94 = arith.constant 0.000000e+00 : f32
      %517 = vector.broadcast %cst_94 : f32 to vector<16x512xf32>
      %518 = arith.maximumf %516, %517 : vector<16x512xf32>
      %519 = vector.broadcast %150 : f32 to vector<16x512xf32>
      %520 = arith.mulf %519, %518 : vector<16x512xf32>
      %521 = arith.addf %506, %520 : vector<16x512xf32>
      %522 = vector.broadcast %69 : f32 to vector<16x512xf32>
      %523 = arith.mulf %167, %522 : vector<16x512xf32>
      %524 = vector.broadcast %119 : f32 to vector<16x512xf32>
      %525 = arith.addf %523, %524 : vector<16x512xf32>
      %526 = vector.broadcast %70 : f32 to vector<16x512xf32>
      %527 = arith.mulf %171, %526 : vector<16x512xf32>
      %528 = arith.addf %525, %527 : vector<16x512xf32>
      %529 = vector.broadcast %71 : f32 to vector<16x512xf32>
      %530 = arith.mulf %175, %529 : vector<16x512xf32>
      %531 = arith.addf %528, %530 : vector<16x512xf32>
      %cst_95 = arith.constant 0.000000e+00 : f32
      %532 = vector.broadcast %cst_95 : f32 to vector<16x512xf32>
      %533 = arith.maximumf %531, %532 : vector<16x512xf32>
      %534 = vector.broadcast %151 : f32 to vector<16x512xf32>
      %535 = arith.mulf %534, %533 : vector<16x512xf32>
      %536 = arith.addf %521, %535 : vector<16x512xf32>
      %537 = vector.broadcast %72 : f32 to vector<16x512xf32>
      %538 = arith.mulf %167, %537 : vector<16x512xf32>
      %539 = vector.broadcast %120 : f32 to vector<16x512xf32>
      %540 = arith.addf %538, %539 : vector<16x512xf32>
      %541 = vector.broadcast %73 : f32 to vector<16x512xf32>
      %542 = arith.mulf %171, %541 : vector<16x512xf32>
      %543 = arith.addf %540, %542 : vector<16x512xf32>
      %544 = vector.broadcast %74 : f32 to vector<16x512xf32>
      %545 = arith.mulf %175, %544 : vector<16x512xf32>
      %546 = arith.addf %543, %545 : vector<16x512xf32>
      %cst_96 = arith.constant 0.000000e+00 : f32
      %547 = vector.broadcast %cst_96 : f32 to vector<16x512xf32>
      %548 = arith.maximumf %546, %547 : vector<16x512xf32>
      %549 = vector.broadcast %152 : f32 to vector<16x512xf32>
      %550 = arith.mulf %549, %548 : vector<16x512xf32>
      %551 = arith.addf %536, %550 : vector<16x512xf32>
      %552 = vector.broadcast %75 : f32 to vector<16x512xf32>
      %553 = arith.mulf %167, %552 : vector<16x512xf32>
      %554 = vector.broadcast %121 : f32 to vector<16x512xf32>
      %555 = arith.addf %553, %554 : vector<16x512xf32>
      %556 = vector.broadcast %76 : f32 to vector<16x512xf32>
      %557 = arith.mulf %171, %556 : vector<16x512xf32>
      %558 = arith.addf %555, %557 : vector<16x512xf32>
      %559 = vector.broadcast %77 : f32 to vector<16x512xf32>
      %560 = arith.mulf %175, %559 : vector<16x512xf32>
      %561 = arith.addf %558, %560 : vector<16x512xf32>
      %cst_97 = arith.constant 0.000000e+00 : f32
      %562 = vector.broadcast %cst_97 : f32 to vector<16x512xf32>
      %563 = arith.maximumf %561, %562 : vector<16x512xf32>
      %564 = vector.broadcast %153 : f32 to vector<16x512xf32>
      %565 = arith.mulf %564, %563 : vector<16x512xf32>
      %566 = arith.addf %551, %565 : vector<16x512xf32>
      %567 = vector.broadcast %78 : f32 to vector<16x512xf32>
      %568 = arith.mulf %167, %567 : vector<16x512xf32>
      %569 = vector.broadcast %122 : f32 to vector<16x512xf32>
      %570 = arith.addf %568, %569 : vector<16x512xf32>
      %571 = vector.broadcast %79 : f32 to vector<16x512xf32>
      %572 = arith.mulf %171, %571 : vector<16x512xf32>
      %573 = arith.addf %570, %572 : vector<16x512xf32>
      %574 = vector.broadcast %80 : f32 to vector<16x512xf32>
      %575 = arith.mulf %175, %574 : vector<16x512xf32>
      %576 = arith.addf %573, %575 : vector<16x512xf32>
      %cst_98 = arith.constant 0.000000e+00 : f32
      %577 = vector.broadcast %cst_98 : f32 to vector<16x512xf32>
      %578 = arith.maximumf %576, %577 : vector<16x512xf32>
      %579 = vector.broadcast %154 : f32 to vector<16x512xf32>
      %580 = arith.mulf %579, %578 : vector<16x512xf32>
      %581 = arith.addf %566, %580 : vector<16x512xf32>
      %582 = vector.broadcast %81 : f32 to vector<16x512xf32>
      %583 = arith.mulf %167, %582 : vector<16x512xf32>
      %584 = vector.broadcast %123 : f32 to vector<16x512xf32>
      %585 = arith.addf %583, %584 : vector<16x512xf32>
      %586 = vector.broadcast %82 : f32 to vector<16x512xf32>
      %587 = arith.mulf %171, %586 : vector<16x512xf32>
      %588 = arith.addf %585, %587 : vector<16x512xf32>
      %589 = vector.broadcast %83 : f32 to vector<16x512xf32>
      %590 = arith.mulf %175, %589 : vector<16x512xf32>
      %591 = arith.addf %588, %590 : vector<16x512xf32>
      %cst_99 = arith.constant 0.000000e+00 : f32
      %592 = vector.broadcast %cst_99 : f32 to vector<16x512xf32>
      %593 = arith.maximumf %591, %592 : vector<16x512xf32>
      %594 = vector.broadcast %155 : f32 to vector<16x512xf32>
      %595 = arith.mulf %594, %593 : vector<16x512xf32>
      %596 = arith.addf %581, %595 : vector<16x512xf32>
      %597 = vector.broadcast %84 : f32 to vector<16x512xf32>
      %598 = arith.mulf %167, %597 : vector<16x512xf32>
      %599 = vector.broadcast %124 : f32 to vector<16x512xf32>
      %600 = arith.addf %598, %599 : vector<16x512xf32>
      %601 = vector.broadcast %85 : f32 to vector<16x512xf32>
      %602 = arith.mulf %171, %601 : vector<16x512xf32>
      %603 = arith.addf %600, %602 : vector<16x512xf32>
      %604 = vector.broadcast %86 : f32 to vector<16x512xf32>
      %605 = arith.mulf %175, %604 : vector<16x512xf32>
      %606 = arith.addf %603, %605 : vector<16x512xf32>
      %cst_100 = arith.constant 0.000000e+00 : f32
      %607 = vector.broadcast %cst_100 : f32 to vector<16x512xf32>
      %608 = arith.maximumf %606, %607 : vector<16x512xf32>
      %609 = vector.broadcast %156 : f32 to vector<16x512xf32>
      %610 = arith.mulf %609, %608 : vector<16x512xf32>
      %611 = arith.addf %596, %610 : vector<16x512xf32>
      %612 = vector.broadcast %87 : f32 to vector<16x512xf32>
      %613 = arith.mulf %167, %612 : vector<16x512xf32>
      %614 = vector.broadcast %125 : f32 to vector<16x512xf32>
      %615 = arith.addf %613, %614 : vector<16x512xf32>
      %616 = vector.broadcast %88 : f32 to vector<16x512xf32>
      %617 = arith.mulf %171, %616 : vector<16x512xf32>
      %618 = arith.addf %615, %617 : vector<16x512xf32>
      %619 = vector.broadcast %89 : f32 to vector<16x512xf32>
      %620 = arith.mulf %175, %619 : vector<16x512xf32>
      %621 = arith.addf %618, %620 : vector<16x512xf32>
      %cst_101 = arith.constant 0.000000e+00 : f32
      %622 = vector.broadcast %cst_101 : f32 to vector<16x512xf32>
      %623 = arith.maximumf %621, %622 : vector<16x512xf32>
      %624 = vector.broadcast %157 : f32 to vector<16x512xf32>
      %625 = arith.mulf %624, %623 : vector<16x512xf32>
      %626 = arith.addf %611, %625 : vector<16x512xf32>
      %627 = vector.broadcast %90 : f32 to vector<16x512xf32>
      %628 = arith.mulf %167, %627 : vector<16x512xf32>
      %629 = vector.broadcast %126 : f32 to vector<16x512xf32>
      %630 = arith.addf %628, %629 : vector<16x512xf32>
      %631 = vector.broadcast %91 : f32 to vector<16x512xf32>
      %632 = arith.mulf %171, %631 : vector<16x512xf32>
      %633 = arith.addf %630, %632 : vector<16x512xf32>
      %634 = vector.broadcast %92 : f32 to vector<16x512xf32>
      %635 = arith.mulf %175, %634 : vector<16x512xf32>
      %636 = arith.addf %633, %635 : vector<16x512xf32>
      %cst_102 = arith.constant 0.000000e+00 : f32
      %637 = vector.broadcast %cst_102 : f32 to vector<16x512xf32>
      %638 = arith.maximumf %636, %637 : vector<16x512xf32>
      %639 = vector.broadcast %158 : f32 to vector<16x512xf32>
      %640 = arith.mulf %639, %638 : vector<16x512xf32>
      %641 = arith.addf %626, %640 : vector<16x512xf32>
      %642 = vector.broadcast %93 : f32 to vector<16x512xf32>
      %643 = arith.mulf %167, %642 : vector<16x512xf32>
      %644 = vector.broadcast %127 : f32 to vector<16x512xf32>
      %645 = arith.addf %643, %644 : vector<16x512xf32>
      %646 = vector.broadcast %94 : f32 to vector<16x512xf32>
      %647 = arith.mulf %171, %646 : vector<16x512xf32>
      %648 = arith.addf %645, %647 : vector<16x512xf32>
      %649 = vector.broadcast %95 : f32 to vector<16x512xf32>
      %650 = arith.mulf %175, %649 : vector<16x512xf32>
      %651 = arith.addf %648, %650 : vector<16x512xf32>
      %cst_103 = arith.constant 0.000000e+00 : f32
      %652 = vector.broadcast %cst_103 : f32 to vector<16x512xf32>
      %653 = arith.maximumf %651, %652 : vector<16x512xf32>
      %654 = vector.broadcast %159 : f32 to vector<16x512xf32>
      %655 = arith.mulf %654, %653 : vector<16x512xf32>
      %656 = arith.addf %641, %655 : vector<16x512xf32>
      %657 = vector.broadcast %160 : f32 to vector<16x512xf32>
      %658 = arith.addf %656, %657 : vector<16x512xf32>
      %659 = arith.index_cast %163 : i32 to index
      %c0_104 = arith.constant 0 : index
      %660 = vector.load %arg6[%659, %c0_104] : memref<64x512xf32, #tpu.memory_space<vmem>>, vector<16x512xf32>
      tpu.vector_store %arg6[%659, %c0_104], %658 {strides = array<i32>} : memref<64x512xf32, #tpu.memory_space<vmem>>, vector<16x512xf32>,
    }
    %c4_i32_65 = arith.constant 4 : i32
    return
  }
  func.func @transform_0(%arg0: i32) -> i32 {
    %c0_i32 = arith.constant 0 : i32
    %c0_i32_0 = arith.constant 0 : i32
    return %c0_i32 : i32
  }
  func.func @transform_1(%arg0: i32) -> i32 {
    %c0_i32 = arith.constant 0 : i32
    %c0_i32_0 = arith.constant 0 : i32
    return %c0_i32 : i32
  }
  func.func @transform_2(%arg0: i32) -> i32 {
    %c0_i32 = arith.constant 0 : i32
    %c0_i32_0 = arith.constant 0 : i32
    return %c0_i32 : i32
  }
  func.func @transform_3(%arg0: i32) -> i32 {
    %c0_i32 = arith.constant 0 : i32
    %c0_i32_0 = arith.constant 0 : i32
    return %c0_i32 : i32
  }
  func.func @transform_4(%arg0: i32) -> (i32, i32, i32) {
    %c0_i32 = arith.constant 0 : i32
    %c0_i32_0 = arith.constant 0 : i32
    %c0_i32_1 = arith.constant 0 : i32
    return %c0_i32, %arg0, %c0_i32_0 : i32, i32, i32
  }
  func.func @transform_5(%arg0: i32) -> (i32, i32) {
    %c0_i32 = arith.constant 0 : i32
    %c0_i32_0 = arith.constant 0 : i32
    return %arg0, %c0_i32 : i32, i32
  }
}

</mosaic_0001>

<bundles_post_ra>
// kernel: bev_forward.1
= control target key start
LH: loop header
LB: loop body
LE: loop exit
PB: predicated region body
PF: predicated region fallthrough
CT: control target
= control target key end

     0   :  { %s5928_s0 = inlined_call_operand.vmem [shape: f32[96], index: 0, kind: input, shape index: {}]   ;;  %s5929_s1 = inlined_call_operand.hbm [shape: f32[32], index: 1, kind: input, shape index: {}]   ;;  %s5930_s2 = inlined_call_operand.vmem [shape: f32[32], index: 2, kind: input, shape index: {}]   ;;  %s5931_s3 = inlined_call_operand.<no memory space> [shape: f32[1], index: 3, kind: input, shape index: {}]   ;;  %s5932_s4 = inlined_call_operand.vmem [shape: bf16[3,128,512], index: 4, kind: input, shape index: {}]   ;;  %s5933_s5 = inlined_call_operand.vmem [shape: f32[128,512], index: 5, kind: output, shape index: {}]  }
   0x1   :  { %5981 = sst [smem:[#allocation161_spill]] %s5928_s0 }
   0x2   :  { %5982 = sst [smem:[#allocation162_spill]] %s5929_s1 }
   0x3   :  { %5983 = sst [smem:[#allocation163_spill]] %s5930_s2 }
   0x4   :  { %5984 = sst [smem:[#allocation164_spill]] %s5932_s4 }
   0x5   :  { %5985 = sst [smem:[#allocation165_spill]] %s5933_s5 }
   0x6   :  { %10 = sst [smem:[#allocation2]] %s5931_s3 }
   0x7   :  { %11 = vsyncpa [#allocation5], 0 }
   0x8   :  { %12 = vsyncpa [#allocation4], 0 }
   0x9   :  { %13 = vsyncpa [#allocation8], 0  ;;  %s3587_s20 = smov 0   ;;  %s3589_s21 = smov 0  }
   0xa   :  { %s3591_s22 = smov 0  }
   0xb LB: > { %5986 = sst [smem:[#allocation13_spill]] %s3541_s21  ;;  %s3198_s3 = sadd.s32 4294967295, %s3545_s22   ;;  %s3545_s22 = sphi %s3591_s22, %s6392_s22   ;;  %s3541_s21 = sphi %s3589_s21, %s6394_s21   ;;  %s3537_s20 = sphi %s3587_s20, %s6393_s20  }
   0xc   : > { %s3604_s23 = sadd.s32 1, %s3545_s22   ;;  %s110_s25 = sadd.s32 1, %s3541_s21 }
   0xd   : > { %5987 = sst [smem:[#allocation14_spill]] %s3604_s23  ;;  %s107_s24 = ssub.s32 %s3545_s22, %s3604_s23 }
   0xe   : > { %p108_p0 = scmp.eq.s32.totalorder %s107_s24, 0  ;;  %p117_p1 = scmp.ne.s32.totalorder %s3541_s21, %s3537_s20 }
   0xf   : > { %p118_p2 = scmp.eq.s32.totalorder %s3545_s22, 0  ;;  %p3200_p3 = scmp.ge.s32.totalorder %s3545_s22, 1 }
  0x10   : > { %s3614_s26 = scalar_select %p108_p0, %s3541_s21, %s110_s25  }
  0x11   : > { %p3616_p4 = por %p118_p2, %p117_p1  ;;  %p160_p5 = scmp.lt.s32.totalorder %s3545_s22, 3 }
  0x12   : > { %5988 = sst [smem:[#allocation15_spill]] %s3614_s26  ;;  %p3623_p6 = scmp.eq.s32.totalorder %s3198_s3, 0 }
  0x13   : > { %p3627_p7 = pnand %p3200_p3, %p160_p5  ;;  %s5992_s0 = sld [smem:[#allocation161_spill]] }
  0x14   : > { %s5993_s1 = sld [smem:[#allocation162_spill]]  ;;  %s3551_s14 = smov [#allocation3]  }
  0x15   : > { %p3411_p8 = pneg %p3627_p7  ;;  %s5994_s2 = sld [smem:[#allocation163_spill]] }
  0x16   : > { %s3552_s15 = smov [#allocation6]   ;;  %s3553_s16 = smov [#allocation7]  }
  0x17   : > { %p3412_p9 = pnand %p3623_p6, %p3411_p8  ;;  %p3204_p10 = scmp.ge.s32.totalorder %s3545_s22, 2 }
  0x19   : > { %s172_s7 = sshll.u32 %s5992_s0, 4  ;;  %s173_s7 = int_to_ptr.vmem [resolvable:$true] %s172_s7 }
  0x1a   : > { %s182_s10 = sshll.u32 %s5993_s1, 4  ;;  %202 = sbr.rel (%p3204_p10) target bundleno = 89 (0x59), region = 32  ;;  %s183_s10 = int_to_ptr.hbm [resolvable:$true] %s182_s10 }
  0x1b   : > { %s192_s13 = sshll.u32 %s5994_s2, 4  ;;  %s193_s13 = int_to_ptr.vmem [resolvable:$true] %s192_s13 }
  0x1c   : > { %3414 = dma.vmem_to_smem (!%p3412_p9), %s173_s7, 16, %s3551_s14, [#allocation5]  }
  0x1d   : > { %3417 = dma.hbm_to_smem (!%p3412_p9), %s183_s10, 16, %s3552_s15, [#allocation4]  }
  0x1e   : > { %3420 = dma.vmem_to_smem (!%p3412_p9), %s193_s13, 16, %s3553_s16, [#allocation8]  }
  0x1f   : > { %205 = sbr.rel (!%p3616_p4) target bundleno = 89 (0x59), region = 36  ;;  %s207_s17 = sand.u32 (%p3616_p4), 1, %s3541_s21  }
  0x20   : > { %s3391_s18 = sshll.u32 (%p3616_p4), %s3545_s22, 7  ;;  %s3397_s19 = smul.u32 (%p3616_p4), 384, %s207_s17 }
  0x21   : > { %s5995_s4 = sld [smem:[#allocation164_spill]] (%p3616_p4) }
  0x22   : > { %s3657_s27 = scalar_lea.vmem (%p3616_p4), [#allocation9], %s3397_s19 }
  0x27   : > { %s3652_s30 = scalar_lea.vmem %s5995_s4, %s3391_s18 }
  0x28   : > { %v226_v0 = vld [vmem:[%s3652_s30] sm:$0xff]  ;;  %v228_v1 = vld [vmem:[%s3652_s30 + $0x8] sm:$0xff]  ;;  %v230_v2 = vld [vmem:[%s3652_s30 + $0x10] sm:$0xff] }
  0x29   : > { %227 = vst [vmem:[%s3657_s27] sm:$0xff] %v226_v0  ;;  %v232_v3 = vld [vmem:[%s3652_s30 + $0x18] sm:$0xff]  ;;  %v234_v4 = vld [vmem:[%s3652_s30 + $0x20] sm:$0xff]  ;;  %v236_v5 = vld [vmem:[%s3652_s30 + $0x28] sm:$0xff] }
  0x2a   : > { %229 = vst [vmem:[%s3657_s27 + $0x8] sm:$0xff] %v228_v1  ;;  %v238_v6 = vld [vmem:[%s3652_s30 + $0x30] sm:$0xff]  ;;  %v240_v7 = vld [vmem:[%s3652_s30 + $0x38] sm:$0xff]  ;;  %v242_v8 = vld [vmem:[%s3652_s30 + $0x40] sm:$0xff] }
  0x2b   : > { %231 = vst [vmem:[%s3657_s27 + $0x10] sm:$0xff] %v230_v2  ;;  %v244_v9 = vld [vmem:[%s3652_s30 + $0x48] sm:$0xff]  ;;  %v246_v10 = vld [vmem:[%s3652_s30 + $0x50] sm:$0xff]  ;;  %v248_v11 = vld [vmem:[%s3652_s30 + $0x58] sm:$0xff] }
  0x2c   : > { %233 = vst [vmem:[%s3657_s27 + $0x18] sm:$0xff] %v232_v3  ;;  %v250_v12 = vld [vmem:[%s3652_s30 + $0x60] sm:$0xff]  ;;  %v252_v13 = vld [vmem:[%s3652_s30 + $0x68] sm:$0xff]  ;;  %v254_v14 = vld [vmem:[%s3652_s30 + $0x70] sm:$0xff] }
  0x2d   : > { %235 = vst [vmem:[%s3657_s27 + $0x20] sm:$0xff] %v234_v4  ;;  %v256_v15 = vld [vmem:[%s3652_s30 + $0x78] sm:$0xff]  ;;  %v258_v16 = vld [vmem:[%s3652_s30 + $0x100] sm:$0xff]  ;;  %v260_v17 = vld [vmem:[%s3652_s30 + $0x108] sm:$0xff] }
  0x2e   : > { %237 = vst [vmem:[%s3657_s27 + $0x28] sm:$0xff] %v236_v5  ;;  %v262_v18 = vld [vmem:[%s3652_s30 + $0x110] sm:$0xff]  ;;  %v264_v19 = vld [vmem:[%s3652_s30 + $0x118] sm:$0xff]  ;;  %v266_v20 = vld [vmem:[%s3652_s30 + $0x120] sm:$0xff] }
  0x2f   : > { %239 = vst [vmem:[%s3657_s27 + $0x30] sm:$0xff] %v238_v6  ;;  %v268_v21 = vld [vmem:[%s3652_s30 + $0x128] sm:$0xff]  ;;  %v270_v22 = vld [vmem:[%s3652_s30 + $0x130] sm:$0xff]  ;;  %v272_v23 = vld [vmem:[%s3652_s30 + $0x138] sm:$0xff] }
  0x30   : > { %241 = vst [vmem:[%s3657_s27 + $0x38] sm:$0xff] %v240_v7  ;;  %v274_v24 = vld [vmem:[%s3652_s30 + $0x140] sm:$0xff]  ;;  %v276_v25 = vld [vmem:[%s3652_s30 + $0x148] sm:$0xff]  ;;  %v278_v26 = vld [vmem:[%s3652_s30 + $0x150] sm:$0xff] }
  0x31   : > { %243 = vst [vmem:[%s3657_s27 + $0x40] sm:$0xff] %v242_v8  ;;  %v280_v27 = vld [vmem:[%s3652_s30 + $0x158] sm:$0xff]  ;;  %v282_v28 = vld [vmem:[%s3652_s30 + $0x160] sm:$0xff]  ;;  %v284_v29 = vld [vmem:[%s3652_s30 + $0x168] sm:$0xff] }
  0x32   : > { %245 = vst [vmem:[%s3657_s27 + $0x48] sm:$0xff] %v244_v9  ;;  %v286_v30 = vld [vmem:[%s3652_s30 + $0x170] sm:$0xff]  ;;  %v288_v31 = vld [vmem:[%s3652_s30 + $0x178] sm:$0xff]  ;;  %v290_v32 = vld [vmem:[%s3652_s30 + $0x200] sm:$0xff] }
  0x33   : > { %247 = vst [vmem:[%s3657_s27 + $0x50] sm:$0xff] %v246_v10  ;;  %v292_v33 = vld [vmem:[%s3652_s30 + $0x208] sm:$0xff]  ;;  %v294_v34 = vld [vmem:[%s3652_s30 + $0x210] sm:$0xff]  ;;  %v296_v35 = vld [vmem:[%s3652_s30 + $0x218] sm:$0xff] }
  0x34   : > { %249 = vst [vmem:[%s3657_s27 + $0x58] sm:$0xff] %v248_v11  ;;  %v298_v36 = vld [vmem:[%s3652_s30 + $0x220] sm:$0xff]  ;;  %v300_v37 = vld [vmem:[%s3652_s30 + $0x228] sm:$0xff]  ;;  %v302_v38 = vld [vmem:[%s3652_s30 + $0x230] sm:$0xff] }
  0x35   : > { %251 = vst [vmem:[%s3657_s27 + $0x60] sm:$0xff] %v250_v12  ;;  %v304_v39 = vld [vmem:[%s3652_s30 + $0x238] sm:$0xff]  ;;  %v306_v40 = vld [vmem:[%s3652_s30 + $0x240] sm:$0xff]  ;;  %v308_v41 = vld [vmem:[%s3652_s30 + $0x248] sm:$0xff] }
  0x36   : > { %253 = vst [vmem:[%s3657_s27 + $0x68] sm:$0xff] %v252_v13  ;;  %v310_v42 = vld [vmem:[%s3652_s30 + $0x250] sm:$0xff]  ;;  %v312_v43 = vld [vmem:[%s3652_s30 + $0x258] sm:$0xff]  ;;  %v314_v44 = vld [vmem:[%s3652_s30 + $0x260] sm:$0xff] }
  0x37   : > { %255 = vst [vmem:[%s3657_s27 + $0x70] sm:$0xff] %v254_v14  ;;  %v316_v45 = vld [vmem:[%s3652_s30 + $0x268] sm:$0xff]  ;;  %v318_v46 = vld [vmem:[%s3652_s30 + $0x270] sm:$0xff]  ;;  %v320_v47 = vld [vmem:[%s3652_s30 + $0x278] sm:$0xff] }
  0x38   : > { %257 = vst [vmem:[%s3657_s27 + $0x78] sm:$0xff] %v256_v15 }
  0x39   : > { %259 = vst [vmem:[%s3657_s27 + $0x80] sm:$0xff] %v258_v16 }
  0x3a   : > { %261 = vst [vmem:[%s3657_s27 + $0x88] sm:$0xff] %v260_v17 }
  0x3b   : > { %263 = vst [vmem:[%s3657_s27 + $0x90] sm:$0xff] %v262_v18 }
  0x3c   : > { %265 = vst [vmem:[%s3657_s27 + $0x98] sm:$0xff] %v264_v19 }
  0x3d   : > { %267 = vst [vmem:[%s3657_s27 + $0xa0] sm:$0xff] %v266_v20 }
  0x3e   : > { %269 = vst [vmem:[%s3657_s27 + $0xa8] sm:$0xff] %v268_v21 }
  0x3f   : > { %271 = vst [vmem:[%s3657_s27 + $0xb0] sm:$0xff] %v270_v22 }
  0x40   : > { %273 = vst [vmem:[%s3657_s27 + $0xb8] sm:$0xff] %v272_v23 }
  0x41   : > { %275 = vst [vmem:[%s3657_s27 + $0xc0] sm:$0xff] %v274_v24 }
  0x42   : > { %277 = vst [vmem:[%s3657_s27 + $0xc8] sm:$0xff] %v276_v25 }
  0x43   : > { %279 = vst [vmem:[%s3657_s27 + $0xd0] sm:$0xff] %v278_v26 }
  0x44   : > { %281 = vst [vmem:[%s3657_s27 + $0xd8] sm:$0xff] %v280_v27 }
  0x45   : > { %283 = vst [vmem:[%s3657_s27 + $0xe0] sm:$0xff] %v282_v28 }
  0x46   : > { %285 = vst [vmem:[%s3657_s27 + $0xe8] sm:$0xff] %v284_v29 }
  0x47   : > { %287 = vst [vmem:[%s3657_s27 + $0xf0] sm:$0xff] %v286_v30 }
  0x48   : > { %289 = vst [vmem:[%s3657_s27 + $0xf8] sm:$0xff] %v288_v31 }
  0x49   : > { %291 = vst [vmem:[%s3657_s27 + $0x100] sm:$0xff] %v290_v32 }
  0x4a   : > { %293 = vst [vmem:[%s3657_s27 + $0x108] sm:$0xff] %v292_v33 }
  0x4b   : > { %295 = vst [vmem:[%s3657_s27 + $0x110] sm:$0xff] %v294_v34 }
  0x4c   : > { %297 = vst [vmem:[%s3657_s27 + $0x118] sm:$0xff] %v296_v35 }
  0x4d   : > { %299 = vst [vmem:[%s3657_s27 + $0x120] sm:$0xff] %v298_v36 }
  0x4e   : > { %301 = vst [vmem:[%s3657_s27 + $0x128] sm:$0xff] %v300_v37 }
  0x4f   : > { %303 = vst [vmem:[%s3657_s27 + $0x130] sm:$0xff] %v302_v38 }
  0x50   : > { %305 = vst [vmem:[%s3657_s27 + $0x138] sm:$0xff] %v304_v39 }
  0x51   : > { %307 = vst [vmem:[%s3657_s27 + $0x140] sm:$0xff] %v306_v40 }
  0x52   : > { %309 = vst [vmem:[%s3657_s27 + $0x148] sm:$0xff] %v308_v41 }
  0x53   : > { %311 = vst [vmem:[%s3657_s27 + $0x150] sm:$0xff] %v310_v42 }
  0x54   : > { %313 = vst [vmem:[%s3657_s27 + $0x158] sm:$0xff] %v312_v43 }
  0x55   : > { %315 = vst [vmem:[%s3657_s27 + $0x160] sm:$0xff] %v314_v44 }
  0x56   : > { %317 = vst [vmem:[%s3657_s27 + $0x168] sm:$0xff] %v316_v45 }
  0x57   : > { %319 = vst [vmem:[%s3657_s27 + $0x170] sm:$0xff] %v318_v46 }
  0x58   : > { %321 = vst [vmem:[%s3657_s27 + $0x178] sm:$0xff] %v320_v47 }
  0x59 PF: > { %330 = sbr.rel (%p3627_p7) target bundleno = 1037 (0x40d), region = 59 }
  0x5e   : > { %3524 = dma.done.wait (%p3623_p6), [#allocation5], 16  }
  0x5f   : > { %3526 = vsyncadd (%p3623_p6), [#allocation5], 4294967280 }
  0x60   : > { %3528 = dma.done.wait (%p3623_p6), [#allocation4], 16  }
  0x61   : > { %3530 = vsyncadd (%p3623_p6), [#allocation4], 4294967280 }
  0x62   : > { %3532 = dma.done.wait (%p3623_p6), [#allocation8], 16  }
  0x63   : > { %3534 = vsyncadd (%p3623_p6), [#allocation8], 4294967280  ;;  %s348_s29 = sand.u32 1, %s3537_s20  }
  0x64   : > { %s3767_s6 = smul.u32 384, %s348_s29 }
  0x65   : > { %354 = sfence }
  0x66   : > { %s3212_s8 = sshll.u32 %s3198_s3, 3  ;;  %s3772_s9 = sld [smem:[#allocation3]] }
  0x67   : > { %p379_p11 = scmp.lt.s32.totalorder %s3212_s8, 15  ;;  %s3774_s10 = sld [smem:[#allocation3 + $0x20]] }
  0x68   : > { %s3776_s11 = sld [smem:[#allocation3 + $0x40]] }
  0x69   : > { %s6396_s8 = smov (!%p379_p11, %s3212_s8), 15  ;;  %s3778_s28 = sld [smem:[#allocation3 + $0x1]] }
  0x6a   : > { %s3392_s12 = sshll.u32 %s6396_s8, 5  ;;  %s3780_s20 = sld [smem:[#allocation3 + $0x21]] }
  0x6b   : > { %s5996_s5 = sld [smem:[#allocation165_spill]] }
  0x6c   : > { %s3787_s22 = sld [smem:[#allocation3 + $0x41]] }
  0x6d   : > { %s3789_s3 = sld [smem:[#allocation3 + $0x2]] }
  0x6e   : > { %s3791_s16 = sld [smem:[#allocation3 + $0x22]] }
  0x6f   : > { %s3793_s17 = sld [smem:[#allocation3 + $0x42]] }
  0x70   : > { %s3795_s18 = sld [smem:[#allocation3 + $0x3]] }
  0x71   : > { %s3785_s15 = scalar_lea.vmem %s5996_s5, %s3392_s12  ;;  %s3797_s19 = sld [smem:[#allocation3 + $0x23]] }
  0x72   : > { %5997 = sst [smem:[#allocation16_spill]] %s3785_s15 }
  0x73   : > { %s3799_s24 = sld [smem:[#allocation3 + $0x43]] }
  0x74   : > { %s3801_s25 = sld [smem:[#allocation3 + $0x4]] }
  0x75   : > { %s3803_s30 = sld [smem:[#allocation3 + $0x24]] }
  0x76   : > { %s3805_s27 = sld [smem:[#allocation3 + $0x44]] }
  0x77   : > { %s3807_s29 = sld [smem:[#allocation3 + $0x5]] }
  0x78   : > { %s3809_s8 = sld [smem:[#allocation3 + $0x25]] }
  0x79   : > { %s3811_s12 = sld [smem:[#allocation3 + $0x45]] }
  0x7a   : > { %5998 = sst [smem:[#allocation17_spill]] %s3801_s25 }
  0x7b   : > { %5999 = sst [smem:[#allocation18_spill]] %s3803_s30 }
  0x7c   : > { %6000 = sst [smem:[#allocation19_spill]] %s3805_s27 }
  0x7d   : > { %6001 = sst [smem:[#allocation20_spill]] %s3807_s29 }
  0x7e   : > { %6002 = sst [smem:[#allocation21_spill]] %s3809_s8 }
  0x7f   : > { %6003 = sst [smem:[#allocation22_spill]] %s3811_s12 }
  0x80   : > { %s3813_s13 = sld [smem:[#allocation3 + $0x6]] }
  0x81   : > { %s3815_s14 = sld [smem:[#allocation3 + $0x26]] }
  0x82   : > { %s3817_s7 = sld [smem:[#allocation3 + $0x46]] }
  0x83   : > { %s3819_s0 = sld [smem:[#allocation3 + $0x7]] }
  0x84   : > { %s3821_s1 = sld [smem:[#allocation3 + $0x27]] }
  0x85   : > { %s3823_s2 = sld [smem:[#allocation3 + $0x47]] }
  0x86   : > { %6004 = sst [smem:[#allocation23_spill]] %s3813_s13 }
  0x87   : > { %6005 = sst [smem:[#allocation24_spill]] %s3815_s14 }
  0x88   : > { %6006 = sst [smem:[#allocation25_spill]] %s3817_s7 }
  0x89   : > { %6007 = sst [smem:[#allocation26_spill]] %s3819_s0 }
  0x8a   : > { %6008 = sst [smem:[#allocation27_spill]] %s3821_s1 }
  0x8b   : > { %6009 = sst [smem:[#allocation28_spill]] %s3823_s2 }
  0x8c   : > { %s3825_s4 = sld [smem:[#allocation3 + $0x8]] }
  0x8d   : > { %s3827_s5 = sld [smem:[#allocation3 + $0x28]] }
  0x8e   : > { %s3829_s26 = sld [smem:[#allocation3 + $0x48]] }
  0x8f   : > { %s3831_s21 = sld [smem:[#allocation3 + $0x9]] }
  0x90   : > { %s3833_s23 = sld [smem:[#allocation3 + $0x29]] }
  0x91   : > { %s3835_s15 = sld [smem:[#allocation3 + $0x49]] }
  0x92   : > { %6010 = sst [smem:[#allocation29_spill]] %s3825_s4 }
  0x93   : > { %6011 = sst [smem:[#allocation30_spill]] %s3827_s5 }
  0x94   : > { %6012 = sst [smem:[#allocation31_spill]] %s3829_s26 }
  0x95   : > { %6013 = sst [smem:[#allocation32_spill]] %s3831_s21 }
  0x96   : > { %6014 = sst [smem:[#allocation33_spill]] %s3833_s23 }
  0x97   : > { %6015 = sst [smem:[#allocation34_spill]] %s3835_s15 }
  0x98   : > { %s3837_s14 = sld [smem:[#allocation3 + $0xa]] }
  0x99   : > { %s3839_s7 = sld [smem:[#allocation3 + $0x2a]] }
  0x9a   : > { %s3841_s0 = sld [smem:[#allocation3 + $0x4a]] }
  0x9b   : > { %s3843_s1 = sld [smem:[#allocation3 + $0xb]] }
  0x9c   : > { %s3845_s2 = sld [smem:[#allocation3 + $0x2b]] }
  0x9d   : > { %s3847_s4 = sld [smem:[#allocation3 + $0x4b]] }
  0x9e   : > { %6016 = sst [smem:[#allocation35_spill]] %s3837_s14 }
  0x9f   : > { %6017 = sst [smem:[#allocation36_spill]] %s3839_s7 }
  0xa0   : > { %6018 = sst [smem:[#allocation37_spill]] %s3841_s0 }
  0xa1   : > { %6019 = sst [smem:[#allocation38_spill]] %s3843_s1 }
  0xa2   : > { %6020 = sst [smem:[#allocation39_spill]] %s3845_s2 }
  0xa3   : > { %6021 = sst [smem:[#allocation40_spill]] %s3847_s4 }
  0xa4   : > { %s3849_s5 = sld [smem:[#allocation3 + $0xc]] }
  0xa5   : > { %s3851_s26 = sld [smem:[#allocation3 + $0x2c]] }
  0xa6   : > { %s3853_s21 = sld [smem:[#allocation3 + $0x4c]] }
  0xa7   : > { %s3855_s23 = sld [smem:[#allocation3 + $0xd]] }
  0xa8   : > { %s3857_s15 = sld [smem:[#allocation3 + $0x2d]] }
  0xa9   : > { %s3859_s14 = sld [smem:[#allocation3 + $0x4d]] }
  0xaa   : > { %6022 = sst [smem:[#allocation41_spill]] %s3849_s5 }
  0xab   : > { %6023 = sst [smem:[#allocation42_spill]] %s3851_s26 }
  0xac   : > { %6024 = sst [smem:[#allocation43_spill]] %s3853_s21 }
  0xad   : > { %6025 = sst [smem:[#allocation44_spill]] %s3855_s23 }
  0xae   : > { %6026 = sst [smem:[#allocation45_spill]] %s3857_s15 }
  0xaf   : > { %6027 = sst [smem:[#allocation46_spill]] %s3859_s14 }
  0xb0   : > { %s3861_s7 = sld [smem:[#allocation3 + $0xe]] }
  0xb1   : > { %s3863_s0 = sld [smem:[#allocation3 + $0x2e]] }
  0xb2   : > { %s3865_s1 = sld [smem:[#allocation3 + $0x4e]] }
  0xb3   : > { %s3867_s2 = sld [smem:[#allocation3 + $0xf]] }
  0xb4   : > { %s3869_s4 = sld [smem:[#allocation3 + $0x2f]] }
  0xb5   : > { %s3871_s5 = sld [smem:[#allocation3 + $0x4f]] }
  0xb6   : > { %6028 = sst [smem:[#allocation47_spill]] %s3861_s7 }
  0xb7   : > { %6029 = sst [smem:[#allocation48_spill]] %s3863_s0 }
  0xb8   : > { %6030 = sst [smem:[#allocation49_spill]] %s3865_s1 }
  0xb9   : > { %6031 = sst [smem:[#allocation50_spill]] %s3867_s2 }
  0xba   : > { %6032 = sst [smem:[#allocation51_spill]] %s3869_s4 }
  0xbb   : > { %6033 = sst [smem:[#allocation52_spill]] %s3871_s5 }
  0xbc   : > { %s3873_s26 = sld [smem:[#allocation3 + $0x10]] }
  0xbd   : > { %s3875_s21 = sld [smem:[#allocation3 + $0x30]] }
  0xbe   : > { %s3877_s23 = sld [smem:[#allocation3 + $0x50]] }
  0xbf   : > { %s3879_s15 = sld [smem:[#allocation3 + $0x11]] }
  0xc0   : > { %s3881_s14 = sld [smem:[#allocation3 + $0x31]] }
  0xc1   : > { %s3883_s7 = sld [smem:[#allocation3 + $0x51]] }
  0xc2   : > { %6034 = sst [smem:[#allocation53_spill]] %s3873_s26 }
  0xc3   : > { %6035 = sst [smem:[#allocation54_spill]] %s3875_s21 }
  0xc4   : > { %6036 = sst [smem:[#allocation55_spill]] %s3877_s23 }
  0xc5   : > { %6037 = sst [smem:[#allocation56_spill]] %s3879_s15 }
  0xc6   : > { %6038 = sst [smem:[#allocation57_spill]] %s3881_s14 }
  0xc7   : > { %6039 = sst [smem:[#allocation58_spill]] %s3883_s7 }
  0xc8   : > { %s3885_s0 = sld [smem:[#allocation3 + $0x12]] }
  0xc9   : > { %s3887_s1 = sld [smem:[#allocation3 + $0x32]] }
  0xca   : > { %s3889_s2 = sld [smem:[#allocation3 + $0x52]] }
  0xcb   : > { %s3891_s4 = sld [smem:[#allocation3 + $0x13]] }
  0xcc   : > { %s3893_s5 = sld [smem:[#allocation3 + $0x33]] }
  0xcd   : > { %s3895_s26 = sld [smem:[#allocation3 + $0x53]] }
  0xce   : > { %6040 = sst [smem:[#allocation59_spill]] %s3885_s0 }
  0xcf   : > { %6041 = sst [smem:[#allocation60_spill]] %s3887_s1 }
  0xd0   : > { %6042 = sst [smem:[#allocation61_spill]] %s3889_s2 }
  0xd1   : > { %6043 = sst [smem:[#allocation62_spill]] %s3891_s4 }
  0xd2   : > { %6044 = sst [smem:[#allocation63_spill]] %s3893_s5 }
  0xd3   : > { %6045 = sst [smem:[#allocation64_spill]] %s3895_s26 }
  0xd4   : > { %s3897_s21 = sld [smem:[#allocation3 + $0x14]] }
  0xd5   : > { %s3899_s23 = sld [smem:[#allocation3 + $0x34]] }
  0xd6   : > { %s3901_s15 = sld [smem:[#allocation3 + $0x54]] }
  0xd7   : > { %s3903_s14 = sld [smem:[#allocation3 + $0x15]] }
  0xd8   : > { %s3905_s7 = sld [smem:[#allocation3 + $0x35]] }
  0xd9   : > { %s3907_s0 = sld [smem:[#allocation3 + $0x55]] }
  0xda   : > { %6046 = sst [smem:[#allocation65_spill]] %s3897_s21 }
  0xdb   : > { %6047 = sst [smem:[#allocation66_spill]] %s3899_s23 }
  0xdc   : > { %6048 = sst [smem:[#allocation67_spill]] %s3901_s15 }
  0xdd   : > { %6049 = sst [smem:[#allocation68_spill]] %s3903_s14 }
  0xde   : > { %6050 = sst [smem:[#allocation69_spill]] %s3905_s7 }
  0xdf   : > { %6051 = sst [smem:[#allocation70_spill]] %s3907_s0 }
  0xe0   : > { %s3909_s1 = sld [smem:[#allocation3 + $0x16]] }
  0xe1   : > { %s3911_s2 = sld [smem:[#allocation3 + $0x36]] }
  0xe2   : > { %s3913_s4 = sld [smem:[#allocation3 + $0x56]] }
  0xe3   : > { %s3915_s5 = sld [smem:[#allocation3 + $0x17]] }
  0xe4   : > { %s3917_s26 = sld [smem:[#allocation3 + $0x37]] }
  0xe5   : > { %s3919_s21 = sld [smem:[#allocation3 + $0x57]] }
  0xe6   : > { %6052 = sst [smem:[#allocation71_spill]] %s3909_s1 }
  0xe7   : > { %6053 = sst [smem:[#allocation72_spill]] %s3911_s2 }
  0xe8   : > { %6054 = sst [smem:[#allocation73_spill]] %s3913_s4 }
  0xe9   : > { %6055 = sst [smem:[#allocation74_spill]] %s3915_s5 }
  0xea   : > { %6056 = sst [smem:[#allocation75_spill]] %s3917_s26 }
  0xeb   : > { %6057 = sst [smem:[#allocation76_spill]] %s3919_s21 }
  0xec   : > { %s3921_s23 = sld [smem:[#allocation3 + $0x18]] }
  0xed   : > { %s3923_s15 = sld [smem:[#allocation3 + $0x38]] }
  0xee   : > { %s3925_s14 = sld [smem:[#allocation3 + $0x58]] }
  0xef   : > { %s3927_s7 = sld [smem:[#allocation3 + $0x19]] }
  0xf0   : > { %s3929_s0 = sld [smem:[#allocation3 + $0x39]] }
  0xf1   : > { %s3931_s1 = sld [smem:[#allocation3 + $0x59]] }
  0xf2   : > { %6058 = sst [smem:[#allocation77_spill]] %s3921_s23 }
  0xf3   : > { %6059 = sst [smem:[#allocation78_spill]] %s3923_s15 }
  0xf4   : > { %6060 = sst [smem:[#allocation79_spill]] %s3925_s14 }
  0xf5   : > { %6061 = sst [smem:[#allocation80_spill]] %s3927_s7 }
  0xf6   : > { %6062 = sst [smem:[#allocation81_spill]] %s3929_s0 }
  0xf7   : > { %6063 = sst [smem:[#allocation82_spill]] %s3931_s1 }
  0xf8   : > { %s3933_s2 = sld [smem:[#allocation3 + $0x1a]] }
  0xf9   : > { %s3935_s4 = sld [smem:[#allocation3 + $0x3a]] }
  0xfa   : > { %s3937_s5 = sld [smem:[#allocation3 + $0x5a]] }
  0xfb   : > { %s3939_s26 = sld [smem:[#allocation3 + $0x1b]] }
  0xfc   : > { %s3941_s21 = sld [smem:[#allocation3 + $0x3b]] }
  0xfd   : > { %s3943_s23 = sld [smem:[#allocation3 + $0x5b]] }
  0xfe   : > { %6064 = sst [smem:[#allocation83_spill]] %s3933_s2 }
  0xff   : > { %6065 = sst [smem:[#allocation84_spill]] %s3935_s4 }
 0x100   : > { %6066 = sst [smem:[#allocation85_spill]] %s3937_s5 }
 0x101   : > { %6067 = sst [smem:[#allocation86_spill]] %s3939_s26 }
 0x102   : > { %6068 = sst [smem:[#allocation87_spill]] %s3941_s21 }
 0x103   : > { %6069 = sst [smem:[#allocation88_spill]] %s3943_s23 }
 0x104   : > { %s3945_s15 = sld [smem:[#allocation3 + $0x1c]] }
 0x105   : > { %s3947_s14 = sld [smem:[#allocation3 + $0x3c]] }
 0x106   : > { %s3949_s7 = sld [smem:[#allocation3 + $0x5c]] }
 0x107   : > { %s3951_s0 = sld [smem:[#allocation3 + $0x1d]] }
 0x108   : > { %s3953_s1 = sld [smem:[#allocation3 + $0x3d]] }
 0x109   : > { %s3955_s2 = sld [smem:[#allocation3 + $0x5d]] }
 0x10a   : > { %6070 = sst [smem:[#allocation89_spill]] %s3945_s15 }
 0x10b   : > { %6071 = sst [smem:[#allocation90_spill]] %s3947_s14 }
 0x10c   : > { %6072 = sst [smem:[#allocation91_spill]] %s3949_s7 }
 0x10d   : > { %6073 = sst [smem:[#allocation92_spill]] %s3951_s0 }
 0x10e   : > { %6074 = sst [smem:[#allocation93_spill]] %s3953_s1 }
 0x10f   : > { %6075 = sst [smem:[#allocation94_spill]] %s3955_s2 }
 0x110   : > { %s3957_s4 = sld [smem:[#allocation3 + $0x1e]] }
 0x111   : > { %s3959_s5 = sld [smem:[#allocation3 + $0x3e]] }
 0x112   : > { %s3961_s26 = sld [smem:[#allocation3 + $0x5e]] }
 0x113   : > { %s3963_s21 = sld [smem:[#allocation3 + $0x1f]] }
 0x114   : > { %s3965_s23 = sld [smem:[#allocation3 + $0x3f]] }
 0x115   : > { %s3967_s15 = sld [smem:[#allocation3 + $0x5f]] }
 0x116   : > { %6076 = sst [smem:[#allocation95_spill]] %s3957_s4 }
 0x117   : > { %6077 = sst [smem:[#allocation96_spill]] %s3959_s5 }
 0x118   : > { %6078 = sst [smem:[#allocation97_spill]] %s3961_s26 }
 0x119   : > { %6079 = sst [smem:[#allocation98_spill]] %s3963_s21 }
 0x11a   : > { %6080 = sst [smem:[#allocation99_spill]] %s3965_s23 }
 0x11b   : > { %6081 = sst [smem:[#allocation100_spill]] %s3967_s15 }
 0x11c   : > { %s3969_s14 = sld [smem:[#allocation6]] }
 0x11d   : > { %s3971_s7 = sld [smem:[#allocation6 + $0x1]] }
 0x11e   : > { %s3973_s0 = sld [smem:[#allocation6 + $0x2]] }
 0x11f   : > { %s3975_s1 = sld [smem:[#allocation6 + $0x3]] }
 0x120   : > { %s3977_s2 = sld [smem:[#allocation6 + $0x4]] }
 0x121   : > { %s3979_s4 = sld [smem:[#allocation6 + $0x5]] }
 0x122   : > { %s3981_s5 = sld [smem:[#allocation6 + $0x6]] }
 0x123   : > { %s3983_s26 = sld [smem:[#allocation6 + $0x7]] }
 0x124   : > { %6082 = sst [smem:[#allocation101_spill]] %s3973_s0 }
 0x125   : > { %s3985_s21 = sld [smem:[#allocation6 + $0x8]] }
 0x126   : > { %6083 = sst [smem:[#allocation102_spill]] %s3977_s2 }
 0x127   : > { %6084 = sst [smem:[#allocation103_spill]] %s3979_s4 }
 0x128   : > { %6085 = sst [smem:[#allocation104_spill]] %s3981_s5 }
 0x129   : > { %6086 = sst [smem:[#allocation105_spill]] %s3983_s26 }
 0x12a   : > { %s3987_s23 = sld [smem:[#allocation6 + $0x9]] }
 0x12b   : > { %6087 = sst [smem:[#allocation106_spill]] %s3985_s21 }
 0x12c   : > { %s3989_s15 = sld [smem:[#allocation6 + $0xa]] }
 0x12d   : > { %s3991_s13 = sld [smem:[#allocation6 + $0xb]] }
 0x12e   : > { %s3993_s12 = sld [smem:[#allocation6 + $0xc]] }
 0x12f   : > { %s3995_s8 = sld [smem:[#allocation6 + $0xd]] }
 0x130   : > { %6088 = sst [smem:[#allocation107_spill]] %s3987_s23 }
 0x131   : > { %s3997_s29 = sld [smem:[#allocation6 + $0xe]] }
 0x132   : > { %6089 = sst [smem:[#allocation108_spill]] %s3989_s15 }
 0x133   : > { %6090 = sst [smem:[#allocation109_spill]] %s3991_s13 }
 0x134   : > { %6091 = sst [smem:[#allocation110_spill]] %s3993_s12 }
 0x135   : > { %6092 = sst [smem:[#allocation111_spill]] %s3995_s8 }
 0x136   : > { %s3999_s27 = sld [smem:[#allocation6 + $0xf]] }
 0x137   : > { %6093 = sst [smem:[#allocation112_spill]] %s3997_s29 }
 0x138   : > { %s4001_s4 = sld [smem:[#allocation6 + $0x10]] }
 0x139   : > { %s4003_s5 = sld [smem:[#allocation6 + $0x11]] }
 0x13a   : > { %s4005_s26 = sld [smem:[#allocation6 + $0x12]] }
 0x13b   : > { %s4007_s21 = sld [smem:[#allocation6 + $0x13]] }
 0x13c   : > { %6094 = sst [smem:[#allocation113_spill]] %s3999_s27 }
 0x13d   : > { %s4009_s23 = sld [smem:[#allocation6 + $0x14]] }
 0x13e   : > { %6095 = sst [smem:[#allocation114_spill]] %s4001_s4 }
 0x13f   : > { %6096 = sst [smem:[#allocation115_spill]] %s4003_s5 }
 0x140   : > { %6097 = sst [smem:[#allocation116_spill]] %s4005_s26 }
 0x141   : > { %6098 = sst [smem:[#allocation117_spill]] %s4007_s21 }
 0x142   : > { %s4011_s15 = sld [smem:[#allocation6 + $0x15]] }
 0x143   : > { %6099 = sst [smem:[#allocation118_spill]] %s4009_s23 }
 0x144   : > { %s4013_s13 = sld [smem:[#allocation6 + $0x16]] }
 0x145   : > { %s4015_s12 = sld [smem:[#allocation6 + $0x17]] }
 0x146   : > { %s4017_s8 = sld [smem:[#allocation6 + $0x18]] }
 0x147   : > { %s4019_s29 = sld [smem:[#allocation6 + $0x19]] }
 0x148   : > { %6100 = sst [smem:[#allocation119_spill]] %s4011_s15 }
 0x149   : > { %s4021_s27 = sld [smem:[#allocation6 + $0x1a]] }
 0x14a   : > { %6101 = sst [smem:[#allocation120_spill]] %s4013_s13 }
 0x14b   : > { %6102 = sst [smem:[#allocation121_spill]] %s4015_s12 }
 0x14c   : > { %6103 = sst [smem:[#allocation122_spill]] %s4017_s8 }
 0x14d   : > { %6104 = sst [smem:[#allocation123_spill]] %s4019_s29 }
 0x14e   : > { %s4023_s4 = sld [smem:[#allocation6 + $0x1b]] }
 0x14f   : > { %6105 = sst [smem:[#allocation124_spill]] %s4021_s27 }
 0x150   : > { %s4025_s5 = sld [smem:[#allocation6 + $0x1c]] }
 0x151   : > { %s4027_s26 = sld [smem:[#allocation6 + $0x1d]] }
 0x152   : > { %s4029_s21 = sld [smem:[#allocation6 + $0x1e]] }
 0x153   : > { %s4031_s23 = sld [smem:[#allocation6 + $0x1f]] }
 0x154   : > { %6106 = sst [smem:[#allocation125_spill]] %s4023_s4 }
 0x155   : > { %s4033_s15 = sld [smem:[#allocation7]] }
 0x156   : > { %6107 = sst [smem:[#allocation126_spill]] %s4025_s5 }
 0x157   : > { %6108 = sst [smem:[#allocation127_spill]] %s4027_s26 }
 0x158   : > { %6109 = sst [smem:[#allocation128_spill]] %s4029_s21 }
 0x159   : > { %6110 = sst [smem:[#allocation129_spill]] %s4031_s23 }
 0x15a   : > { %s4035_s13 = sld [smem:[#allocation7 + $0x1]] }
 0x15b   : > { %s4037_s12 = sld [smem:[#allocation7 + $0x2]] }
 0x15c   : > { %s4039_s8 = sld [smem:[#allocation7 + $0x3]] }
 0x15d   : > { %s4041_s29 = sld [smem:[#allocation7 + $0x4]] }
 0x15e   : > { %s4043_s27 = sld [smem:[#allocation7 + $0x5]] }
 0x15f   : > { %s4045_s4 = sld [smem:[#allocation7 + $0x6]] }
 0x160   : > { %s4047_s5 = sld [smem:[#allocation7 + $0x7]] }
 0x161   : > { %s4049_s26 = sld [smem:[#allocation7 + $0x8]] }
 0x162   : > { %6111 = sst [smem:[#allocation130_spill]] %s4039_s8 }
 0x163   : > { %6112 = sst [smem:[#allocation131_spill]] %s4041_s29 }
 0x164   : > { %6113 = sst [smem:[#allocation132_spill]] %s4043_s27 }
 0x165   : > { %6114 = sst [smem:[#allocation133_spill]] %s4045_s4 }
 0x166   : > { %6115 = sst [smem:[#allocation134_spill]] %s4047_s5 }
 0x167   : > { %6116 = sst [smem:[#allocation135_spill]] %s4049_s26 }
 0x168   : > { %s4051_s21 = sld [smem:[#allocation7 + $0x9]] }
 0x169   : > { %s4053_s23 = sld [smem:[#allocation7 + $0xa]] }
 0x16a   : > { %s4055_s30 = sld [smem:[#allocation7 + $0xb]] }
 0x16b   : > { %s4057_s2 = sld [smem:[#allocation7 + $0xc]] }
 0x16c   : > { %s4059_s25 = sld [smem:[#allocation7 + $0xd]] }
 0x16d   : > { %s4061_s8 = sld [smem:[#allocation7 + $0xe]] }
 0x16e   : > { %6117 = sst [smem:[#allocation136_spill]] %s4051_s21 }
 0x16f   : > { %6118 = sst [smem:[#allocation137_spill]] %s4053_s23 }
 0x170   : > { %6119 = sst [smem:[#allocation138_spill]] %s4055_s30 }
 0x171   : > { %6120 = sst [smem:[#allocation139_spill]] %s4057_s2 }
 0x172   : > { %6121 = sst [smem:[#allocation140_spill]] %s4059_s25 }
 0x173   : > { %6122 = sst [smem:[#allocation141_spill]] %s4061_s8 }
 0x174   : > { %s4063_s29 = sld [smem:[#allocation7 + $0xf]] }
 0x175   : > { %s4065_s27 = sld [smem:[#allocation7 + $0x10]] }
 0x176   : > { %s4067_s4 = sld [smem:[#allocation7 + $0x11]] }
 0x177   : > { %s4069_s5 = sld [smem:[#allocation7 + $0x12]] }
 0x178   : > { %s4071_s26 = sld [smem:[#allocation7 + $0x13]] }
 0x179   : > { %s4073_s21 = sld [smem:[#allocation7 + $0x14]] }
 0x17a   : > { %6123 = sst [smem:[#allocation142_spill]] %s4063_s29 }
 0x17b   : > { %6124 = sst [smem:[#allocation143_spill]] %s4065_s27 }
 0x17c   : > { %6125 = sst [smem:[#allocation144_spill]] %s4067_s4 }
 0x17d   : > { %6126 = sst [smem:[#allocation145_spill]] %s4069_s5 }
 0x17e   : > { %6127 = sst [smem:[#allocation146_spill]] %s4071_s26 }
 0x17f   : > { %6128 = sst [smem:[#allocation147_spill]] %s4073_s21 }
 0x180   : > { %s4075_s23 = sld [smem:[#allocation7 + $0x15]] }
 0x181   : > { %s4077_s30 = sld [smem:[#allocation7 + $0x16]] }
 0x182   : > { %s4079_s2 = sld [smem:[#allocation7 + $0x17]] }
 0x183   : > { %s4081_s25 = sld [smem:[#allocation7 + $0x18]] }
 0x184   : > { %s4083_s8 = sld [smem:[#allocation7 + $0x19]] }
 0x185   : > { %s4085_s29 = sld [smem:[#allocation7 + $0x1a]] }
 0x186   : > { %6129 = sst [smem:[#allocation148_spill]] %s4075_s23 }
 0x187   : > { %6130 = sst [smem:[#allocation149_spill]] %s4077_s30  ;;  %s4099_s30 = smov 0  }
 0x188   : > { %s4087_s27 = sld [smem:[#allocation7 + $0x1b]] }
 0x189   : > { %s4089_s4 = sld [smem:[#allocation7 + $0x1c]] }
 0x18a   : > { %s4091_s5 = sld [smem:[#allocation7 + $0x1d]] }
 0x18b   : > { %s4093_s26 = sld [smem:[#allocation7 + $0x1e]] }
 0x18c   : > { %s4095_s21 = sld [smem:[#allocation7 + $0x1f]] }
 0x18d   : > { %s4097_s23 = sld [smem:[#allocation2]] }
 0x18f   : > { %6131 = sst [smem:[#allocation150_spill]] %s4089_s4 }
 0x190   : > { %6132 = sst [smem:[#allocation151_spill]] %s4091_s5 }
 0x191   : > { %6133 = sst [smem:[#allocation152_spill]] %s4093_s26 }
 0x192   : > { %6134 = sst [smem:[#allocation153_spill]] %s4095_s21 }
 0x193   : > { %6135 = sst [smem:[#allocation154_spill]] %s4097_s23 }
 0x194 LB: >> { %s3372_s21 = sshll.u32 %s3549_s30, 4  ;;  %v600_v48 = vstv %s3772_s9  ;;  %v609_v49 = vstv %s3969_s14  ;;  %v4111_v50 = vstv %s3774_s10  ;;  %v4114_v51 = vstv %s3776_s11  ;;  %s6136_s5 = scalar_lea.vmem [#allocation9], %s3767_s6  ;;  %s3549_s30 = sphi %s4099_s30, %s551_s30  }
 0x195   : >> { %s4105_s23 = sshra.s32 %s3372_s21, 3  ;;  %v4119_v52 = vstv %s4033_s15  ;;  %v4122_v53 = vstv %s3778_s28  ;;  %v4125_v54 = vstv %s3971_s7  ;;  %v4128_v55 = vstv %s3780_s20  ;;  %s6143_s0 = sld [smem:[#allocation101_spill]] }
 0x196   : >> { %s3393_s26 = sshll.u32 %s4105_s23, 4  ;;  %v4131_v59 = vstv %s3787_s22  ;;  %s6151_s21 = sld [smem:[#allocation102_spill]] }
 0x197   : >> { %s557_s4 = scalar_lea.vmem %s6136_s5, %s3393_s26 [#allocation9]  ;;  %s6149_s5 = sld [smem:[#allocation17_spill]] }
 0x198   : >> { %v558_v56 = vld [vmem:[%s557_s4] sm:$0xff]  ;;  %v559_v57 = vld [vmem:[%s557_s4 + $0x8] sm:$0xff]  ;;  %v560_v58 = vld [vmem:[%s557_s4 + $0x10] sm:$0xff]  ;;  %s6152_s26 = sld [smem:[#allocation18_spill]]  ;;  %s551_s30 = sadd.s32 1, %s3549_s30  }
 0x199   : >> { %v561_v60 = vld [vmem:[%s557_s4 + $0x18] sm:$0xff]  ;;  %v4133_v61 = vunpack.c.l.bf16 %v558_v56  ;;  %v4135_v62 = vunpack.c.h.bf16 %v558_v56  ;;  %v4137_v63 = vunpack.c.l.bf16 %v559_v57  ;;  %v4139_v0 = vunpack.c.h.bf16 %v559_v57  ;;  %v3377_v1 = vld [vmem:[%s557_s4 + $0x80] sm:$0xff]  ;;  %v3378_v2 = vld [vmem:[%s557_s4 + $0x88] sm:$0xff]  ;;  %p548_p12 = scmp.ge.s32.totalorder %s551_s30, 4  }
 0x19a   : >> { %v4141_v3 = vunpack.c.l.bf16 %v560_v58  ;;  %v4143_v4 = vunpack.c.h.bf16 %v560_v58  ;;  %v4145_v5 = vunpack.c.l.bf16 %v561_v60  ;;  %v4147_v6 = vunpack.c.h.bf16 %v561_v60  ;;  %v3379_v7 = vld [vmem:[%s557_s4 + $0x90] sm:$0xff]  ;;  %v3380_v8 = vld [vmem:[%s557_s4 + $0x98] sm:$0xff]  ;;  %v3383_v9 = vld [vmem:[%s557_s4 + $0x100] sm:$0xff] }
 0x19b   : >> { %v4149_v10 = vunpack.c.l.bf16 %v3377_v1  ;;  %v4151_v11 = vunpack.c.h.bf16 %v3377_v1  ;;  %v4153_v12 = vunpack.c.l.bf16 %v3378_v2  ;;  %v4155_v13 = vunpack.c.h.bf16 %v3378_v2  ;;  %v3384_v14 = vld [vmem:[%s557_s4 + $0x108] sm:$0xff]  ;;  %v3385_v15 = vld [vmem:[%s557_s4 + $0x110] sm:$0xff]  ;;  %v3386_v16 = vld [vmem:[%s557_s4 + $0x118] sm:$0xff]  ;;  %s6148_s4 = sld [smem:[#allocation130_spill]] }
 0x19c   : >> { %v4157_v17 = vunpack.c.l.bf16 %v3379_v7  ;;  %v4159_v18 = vunpack.c.h.bf16 %v3379_v7  ;;  %v4161_v19 = vunpack.c.l.bf16 %v3380_v8  ;;  %v4163_v20 = vunpack.c.h.bf16 %v3380_v8 }
 0x19d   : >> { %v4165_v21 = vunpack.c.l.bf16 %v3383_v9  ;;  %v4167_v22 = vunpack.c.h.bf16 %v3383_v9  ;;  %v4169_v23 = vunpack.c.l.bf16 %v3384_v14  ;;  %v4171_v24 = vunpack.c.h.bf16 %v3384_v14 }
 0x19e   : >> { %v4173_v25 = vunpack.c.l.bf16 %v3385_v15  ;;  %v4175_v26 = vunpack.c.h.bf16 %v3385_v15  ;;  %v4177_v27 = vunpack.c.l.bf16 %v3386_v16  ;;  %v4179_v28 = vunpack.c.h.bf16 %v3386_v16 }
 0x19f   : >> { %6137 = vst [vmem:[#allocation155_spill] sm:$0xff] %v4169_v23  ;;  %v601_v29 = vmul.f32 %v600_v48, %v4133_v61  ;;  %v602_v30 = vmul.f32 %v600_v48, %v4135_v62  ;;  %v603_v31 = vmul.f32 %v600_v48, %v4137_v63  ;;  %v604_v32 = vmul.f32 %v600_v48, %v4139_v0 }
 0x1a0   : >> { %6138 = vst [vmem:[#allocation156_spill] sm:$0xff] %v4171_v24  ;;  %v605_v33 = vmul.f32 %v600_v48, %v4141_v3  ;;  %v606_v34 = vmul.f32 %v600_v48, %v4143_v4  ;;  %v607_v35 = vmul.f32 %v600_v48, %v4145_v5  ;;  %v608_v36 = vmul.f32 %v600_v48, %v4147_v6 }
 0x1a1   : >> { %6139 = vst [vmem:[#allocation157_spill] sm:$0xff] %v4173_v25  ;;  %v610_v37 = vadd.f32 %v609_v49, %v601_v29  ;;  %v611_v38 = vadd.f32 %v609_v49, %v602_v30  ;;  %v612_v39 = vadd.f32 %v609_v49, %v603_v31  ;;  %v613_v40 = vadd.f32 %v609_v49, %v604_v32 }
 0x1a2   : >> { %6140 = vst [vmem:[#allocation158_spill] sm:$0xff] %v4175_v26  ;;  %v614_v41 = vadd.f32 %v609_v49, %v605_v33  ;;  %v615_v42 = vadd.f32 %v609_v49, %v606_v34  ;;  %v616_v43 = vadd.f32 %v609_v49, %v607_v35  ;;  %v617_v44 = vadd.f32 %v609_v49, %v608_v36 }
 0x1a3   : >> { %6141 = vst [vmem:[#allocation159_spill] sm:$0xff] %v4177_v27  ;;  %v619_v45 = vmul.f32 %v4111_v50, %v4149_v10  ;;  %v620_v46 = vmul.f32 %v4111_v50, %v4151_v11  ;;  %v621_v47 = vmul.f32 %v4111_v50, %v4153_v12  ;;  %v622_v48 = vmul.f32 %v4111_v50, %v4155_v13 }
 0x1a4   : >> { %v623_v56 = vmul.f32 %v4111_v50, %v4157_v17  ;;  %v624_v57 = vmul.f32 %v4111_v50, %v4159_v18  ;;  %v625_v49 = vmul.f32 %v4111_v50, %v4161_v19  ;;  %v626_v58 = vmul.f32 %v4111_v50, %v4163_v20 }
 0x1a5   : >> { %v627_v60 = vadd.f32 %v619_v45, %v610_v37  ;;  %v628_v1 = vadd.f32 %v620_v46, %v611_v38  ;;  %v629_v2 = vadd.f32 %v621_v47, %v612_v39  ;;  %v630_v7 = vadd.f32 %v622_v48, %v613_v40 }
 0x1a6   : >> { %v631_v8 = vadd.f32 %v623_v56, %v614_v41  ;;  %v632_v9 = vadd.f32 %v624_v57, %v615_v42  ;;  %v633_v14 = vadd.f32 %v625_v49, %v616_v43  ;;  %v634_v15 = vadd.f32 %v626_v58, %v617_v44 }
 0x1a7   : >> { %v636_v16 = vmul.f32 %v4114_v51, %v4165_v21  ;;  %v637_v29 = vmul.f32 %v4114_v51, %v4167_v22  ;;  %v638_v30 = vmul.f32 %v4114_v51, %v4169_v23  ;;  %v639_v50 = vmul.f32 %v4114_v51, %v4171_v24 }
 0x1a8   : >> { %v640_v31 = vmul.f32 %v4114_v51, %v4173_v25  ;;  %v641_v32 = vmul.f32 %v4114_v51, %v4175_v26  ;;  %v642_v33 = vmul.f32 %v4114_v51, %v4177_v27  ;;  %v643_v34 = vmul.f32 %v4114_v51, %v4179_v28 }
 0x1a9   : >> { %v644_v35 = vadd.f32 %v636_v16, %v627_v60  ;;  %v645_v36 = vadd.f32 %v637_v29, %v628_v1  ;;  %v646_v37 = vadd.f32 %v638_v30, %v629_v2  ;;  %v647_v38 = vadd.f32 %v639_v50, %v630_v7 }
 0x1aa   : >> { %v648_v39 = vadd.f32 %v640_v31, %v631_v8  ;;  %v649_v40 = vadd.f32 %v641_v32, %v632_v9  ;;  %v650_v41 = vadd.f32 %v642_v33, %v633_v14  ;;  %v4221_v42 = vadd.f32 %v643_v34, %v634_v15 }
 0x1ab   : >> { %v652_v43 = vmax.f32 %v644_v35, 0.0  ;;  %v653_v44 = vmax.f32 %v645_v36, 0.0  ;;  %v654_v45 = vmax.f32 %v646_v37, 0.0  ;;  %v655_v46 = vmax.f32 %v647_v38, 0.0 }
 0x1ac   : >> { %v656_v47 = vmax.f32 %v648_v39, 0.0  ;;  %v657_v48 = vmax.f32 %v649_v40, 0.0  ;;  %v658_v56 = vmax.f32 %v650_v41, 0.0  ;;  %v4224_v57 = vstv %s3789_s3 }
 0x1ad   : >> { %v4228_v49 = vmul.f32 %v4119_v52, %v652_v43  ;;  %v4231_v58 = vmul.f32 %v4119_v52, %v653_v44  ;;  %v4234_v60 = vmul.f32 %v4119_v52, %v654_v45  ;;  %v4237_v1 = vmul.f32 %v4119_v52, %v655_v46 }
 0x1ae   : >> { %v4240_v2 = vmul.f32 %v4119_v52, %v656_v47  ;;  %v4243_v7 = vmul.f32 %v4119_v52, %v657_v48  ;;  %v4246_v8 = vmul.f32 %v4119_v52, %v658_v56  ;;  %v678_v9 = vmul.f32 %v4122_v53, %v4133_v61 }
 0x1af   : >> { %v679_v14 = vmul.f32 %v4122_v53, %v4135_v62  ;;  %v680_v15 = vmul.f32 %v4122_v53, %v4137_v63  ;;  %v681_v16 = vmul.f32 %v4122_v53, %v4139_v0  ;;  %v682_v29 = vmul.f32 %v4122_v53, %v4141_v3 }
 0x1b0   : >> { %v683_v30 = vmul.f32 %v4122_v53, %v4143_v4  ;;  %v684_v50 = vmul.f32 %v4122_v53, %v4145_v5  ;;  %v685_v31 = vmul.f32 %v4122_v53, %v4147_v6  ;;  %v687_v32 = vadd.f32 %v4125_v54, %v678_v9 }
 0x1b1   : >> { %v688_v33 = vadd.f32 %v4125_v54, %v679_v14  ;;  %v689_v34 = vadd.f32 %v4125_v54, %v680_v15  ;;  %v690_v35 = vadd.f32 %v4125_v54, %v681_v16  ;;  %v691_v36 = vadd.f32 %v4125_v54, %v682_v29 }
 0x1b2   : >> { %v692_v37 = vadd.f32 %v4125_v54, %v683_v30  ;;  %v693_v38 = vadd.f32 %v4125_v54, %v684_v50  ;;  %v694_v39 = vadd.f32 %v4125_v54, %v685_v31  ;;  %v696_v40 = vmul.f32 %v4128_v55, %v4149_v10 }
 0x1b3   : >> { %v697_v53 = vmul.f32 %v4128_v55, %v4151_v11  ;;  %v698_v41 = vmul.f32 %v4128_v55, %v4153_v12  ;;  %v699_v43 = vmul.f32 %v4128_v55, %v4155_v13  ;;  %v700_v44 = vmul.f32 %v4128_v55, %v4157_v17 }
 0x1b4   : >> { %v701_v45 = vmul.f32 %v4128_v55, %v4159_v18  ;;  %v702_v54 = vmul.f32 %v4128_v55, %v4161_v19  ;;  %v703_v46 = vmul.f32 %v4128_v55, %v4163_v20  ;;  %v704_v47 = vadd.f32 %v696_v40, %v687_v32 }
 0x1b5   : >> { %v705_v48 = vadd.f32 %v697_v53, %v688_v33  ;;  %v706_v56 = vadd.f32 %v698_v41, %v689_v34  ;;  %v707_v9 = vadd.f32 %v699_v43, %v690_v35  ;;  %v708_v14 = vadd.f32 %v700_v44, %v691_v36 }
 0x1b6   : >> { %v709_v15 = vadd.f32 %v701_v45, %v692_v37  ;;  %v710_v16 = vadd.f32 %v702_v54, %v693_v38  ;;  %v711_v29 = vadd.f32 %v703_v46, %v694_v39  ;;  %v713_v30 = vmul.f32 %v4131_v59, %v4165_v21 }
 0x1b7   : >> { %v714_v50 = vmul.f32 %v4131_v59, %v4167_v22  ;;  %v715_v31 = vmul.f32 %v4131_v59, %v4169_v23  ;;  %v716_v55 = vmul.f32 %v4131_v59, %v4171_v24  ;;  %v717_v32 = vmul.f32 %v4131_v59, %v4173_v25 }
 0x1b8   : >> { %v718_v33 = vmul.f32 %v4131_v59, %v4175_v26  ;;  %v719_v34 = vmul.f32 %v4131_v59, %v4177_v27  ;;  %v720_v35 = vmul.f32 %v4131_v59, %v4179_v28  ;;  %v721_v36 = vadd.f32 %v713_v30, %v704_v47 }
 0x1b9   : >> { %v722_v37 = vadd.f32 %v714_v50, %v705_v48  ;;  %v723_v38 = vadd.f32 %v715_v31, %v706_v56  ;;  %v724_v39 = vadd.f32 %v716_v55, %v707_v9  ;;  %v725_v40 = vadd.f32 %v717_v32, %v708_v14 }
 0x1ba   : >> { %v726_v53 = vadd.f32 %v718_v33, %v709_v15  ;;  %v727_v41 = vadd.f32 %v719_v34, %v710_v16  ;;  %v728_v43 = vadd.f32 %v720_v35, %v711_v29  ;;  %v729_v44 = vmax.f32 %v721_v36, 0.0 }
 0x1bb   : >> { %v730_v45 = vmax.f32 %v722_v37, 0.0  ;;  %v731_v54 = vmax.f32 %v723_v38, 0.0  ;;  %v732_v46 = vmax.f32 %v724_v39, 0.0  ;;  %v733_v51 = vmax.f32 %v725_v40, 0.0 }
 0x1bc   : >> { %v734_v26 = vmax.f32 %v726_v53, 0.0  ;;  %v735_v25 = vmax.f32 %v727_v41, 0.0  ;;  %v736_v27 = vmax.f32 %v728_v43, 0.0  ;;  %v6142_v24 = vmax.f32 %v4221_v42, 0.0 }
 0x1bd   : >> { %v737_v47 = vstv %s4035_s13  ;;  %v755_v48 = vmul.f32 %v4224_v57, %v4133_v61  ;;  %v756_v56 = vmul.f32 %v4224_v57, %v4135_v62  ;;  %v772_v32 = vstv %s3791_s16 }
 0x1be   : >> { %v4307_v59 = vmul.f32 %v4119_v52, %v6142_v24  ;;  %v738_v9 = vmul.f32 %v737_v47, %v729_v44  ;;  %v739_v14 = vmul.f32 %v737_v47, %v730_v45  ;;  %v740_v15 = vmul.f32 %v737_v47, %v731_v54 }
 0x1bf   : >> { %v741_v16 = vmul.f32 %v737_v47, %v732_v46  ;;  %v742_v29 = vmul.f32 %v737_v47, %v733_v51  ;;  %v743_v30 = vmul.f32 %v737_v47, %v734_v26  ;;  %v744_v50 = vmul.f32 %v737_v47, %v735_v25 }
 0x1c0   : >> { %v757_v52 = vmul.f32 %v4224_v57, %v4137_v63  ;;  %v4316_v24 = vmul.f32 %v737_v47, %v736_v27  ;;  %v4319_v42 = vadd.f32 %v738_v9, %v4228_v49  ;;  %v4322_v31 = vadd.f32 %v739_v14, %v4231_v58 }
 0x1c1   : >> { %v4325_v55 = vadd.f32 %v740_v15, %v4234_v60  ;;  %v4328_v26 = vadd.f32 %v741_v16, %v4237_v1  ;;  %v4331_v25 = vadd.f32 %v742_v29, %v4240_v2  ;;  %v4334_v51 = vadd.f32 %v743_v30, %v4243_v7 }
 0x1c2   : >> { %v4337_v27 = vadd.f32 %v744_v50, %v4246_v8  ;;  %v758_v49 = vmul.f32 %v4224_v57, %v4139_v0  ;;  %v759_v58 = vmul.f32 %v4224_v57, %v4141_v3  ;;  %v760_v60 = vmul.f32 %v4224_v57, %v4143_v4 }
 0x1c3   : >> { %v761_v1 = vmul.f32 %v4224_v57, %v4145_v5  ;;  %v762_v2 = vmul.f32 %v4224_v57, %v4147_v6  ;;  %v763_v7 = vstv %s6143_s0  ;;  %v789_v33 = vstv %s3793_s17  ;;  %s6165_s0 = sld [smem:[#allocation132_spill]] }
 0x1c4   : >> { %v764_v8 = vadd.f32 %v763_v7, %v755_v48  ;;  %v765_v34 = vadd.f32 %v763_v7, %v756_v56  ;;  %v766_v35 = vadd.f32 %v763_v7, %v757_v52  ;;  %v767_v36 = vadd.f32 %v763_v7, %v758_v49  ;;  %v6144_v49 = vld [vmem:[#allocation156_spill] sm:$0xff] }
 0x1c5   : >> { %v768_v37 = vadd.f32 %v763_v7, %v759_v58  ;;  %v769_v38 = vadd.f32 %v763_v7, %v760_v60  ;;  %v770_v39 = vadd.f32 %v763_v7, %v761_v1  ;;  %v771_v40 = vadd.f32 %v763_v7, %v762_v2  ;;  %v6145_v60 = vld [vmem:[#allocation157_spill] sm:$0xff]  ;;  %v6146_v2 = vld [vmem:[#allocation158_spill] sm:$0xff] }
 0x1c6   : >> { %v773_v53 = vmul.f32 %v772_v32, %v4149_v10  ;;  %v774_v41 = vmul.f32 %v772_v32, %v4151_v11  ;;  %v775_v43 = vmul.f32 %v772_v32, %v4153_v12  ;;  %v776_v44 = vmul.f32 %v772_v32, %v4155_v13 }
 0x1c7   : >> { %v777_v57 = vmul.f32 %v772_v32, %v4157_v17  ;;  %v778_v45 = vmul.f32 %v772_v32, %v4159_v18  ;;  %v779_v54 = vmul.f32 %v772_v32, %v4161_v19  ;;  %v780_v46 = vmul.f32 %v772_v32, %v4163_v20  ;;  %v6147_v32 = vld [vmem:[#allocation159_spill] sm:$0xff] }
 0x1c8   : >> { %v781_v47 = vadd.f32 %v773_v53, %v764_v8  ;;  %v782_v48 = vadd.f32 %v774_v41, %v765_v34  ;;  %v783_v56 = vadd.f32 %v775_v43, %v766_v35  ;;  %v784_v9 = vadd.f32 %v776_v44, %v767_v36 }
 0x1c9   : >> { %v785_v14 = vadd.f32 %v777_v57, %v768_v37  ;;  %v786_v15 = vadd.f32 %v778_v45, %v769_v38  ;;  %v787_v16 = vadd.f32 %v779_v54, %v770_v39  ;;  %v788_v29 = vadd.f32 %v780_v46, %v771_v40 }
 0x1ca   : >> { %v790_v30 = vmul.f32 %v789_v33, %v4165_v21  ;;  %v791_v50 = vmul.f32 %v789_v33, %v4167_v22  ;;  %v792_v52 = vmul.f32 %v789_v33, %v4169_v23  ;;  %v793_v58 = vmul.f32 %v789_v33, %v6144_v49 }
 0x1cb   : >> { %v794_v1 = vmul.f32 %v789_v33, %v6145_v60  ;;  %v795_v7 = vmul.f32 %v789_v33, %v6146_v2  ;;  %v796_v8 = vmul.f32 %v789_v33, %v6147_v32  ;;  %v797_v34 = vmul.f32 %v789_v33, %v4179_v28 }
 0x1cc   : >> { %v798_v35 = vadd.f32 %v790_v30, %v781_v47  ;;  %v799_v36 = vadd.f32 %v791_v50, %v782_v48  ;;  %v800_v37 = vadd.f32 %v792_v52, %v783_v56  ;;  %v801_v38 = vadd.f32 %v793_v58, %v784_v9 }
 0x1cd   : >> { %v802_v39 = vadd.f32 %v794_v1, %v785_v14  ;;  %v803_v40 = vadd.f32 %v795_v7, %v786_v15  ;;  %v804_v53 = vadd.f32 %v796_v8, %v787_v16  ;;  %v805_v41 = vadd.f32 %v797_v34, %v788_v29 }
 0x1ce   : >> { %v806_v43 = vmax.f32 %v798_v35, 0.0  ;;  %v807_v44 = vmax.f32 %v799_v36, 0.0  ;;  %v808_v57 = vmax.f32 %v800_v37, 0.0  ;;  %v809_v45 = vmax.f32 %v801_v38, 0.0 }
 0x1cf   : >> { %v810_v54 = vmax.f32 %v802_v39, 0.0  ;;  %v811_v46 = vmax.f32 %v803_v40, 0.0  ;;  %v812_v32 = vmax.f32 %v804_v53, 0.0  ;;  %v813_v33 = vmax.f32 %v805_v41, 0.0 }
 0x1d0   : >> { %v753_v47 = vadd.f32 %v4316_v24, %v4307_v59  ;;  %v814_v48 = vstv %s4037_s12  ;;  %v831_v56 = vstv %s3795_s18  ;;  %v840_v9 = vstv %s3975_s1 }
 0x1d1   : >> { %v815_v30 = vmul.f32 %v814_v48, %v806_v43  ;;  %v816_v14 = vmul.f32 %v814_v48, %v807_v44  ;;  %v817_v15 = vmul.f32 %v814_v48, %v808_v57  ;;  %v818_v16 = vmul.f32 %v814_v48, %v809_v45 }
 0x1d2   : >> { %v819_v29 = vmul.f32 %v814_v48, %v810_v54  ;;  %v820_v50 = vmul.f32 %v814_v48, %v811_v46  ;;  %v821_v52 = vmul.f32 %v814_v48, %v812_v32  ;;  %v849_v58 = vstv %s3797_s19 }
 0x1d3   : >> { %v822_v1 = vmul.f32 %v814_v48, %v813_v33  ;;  %v4375_v7 = vadd.f32 %v815_v30, %v4319_v42  ;;  %v4378_v8 = vadd.f32 %v816_v14, %v4322_v31  ;;  %v4381_v59 = vadd.f32 %v817_v15, %v4325_v55 }
 0x1d4   : >> { %v4384_v24 = vadd.f32 %v818_v16, %v4328_v26  ;;  %v4387_v34 = vadd.f32 %v819_v29, %v4331_v25  ;;  %v4390_v35 = vadd.f32 %v820_v50, %v4334_v51  ;;  %v4393_v32 = vadd.f32 %v821_v52, %v4337_v27 }
 0x1d5   : >> { %v832_v42 = vmul.f32 %v831_v56, %v4133_v61  ;;  %v833_v31 = vmul.f32 %v831_v56, %v4135_v62  ;;  %v834_v36 = vmul.f32 %v831_v56, %v4137_v63  ;;  %v835_v55 = vmul.f32 %v831_v56, %v4139_v0 }
 0x1d6   : >> { %v836_v26 = vmul.f32 %v831_v56, %v4141_v3  ;;  %v837_v37 = vmul.f32 %v831_v56, %v4143_v4  ;;  %v838_v25 = vmul.f32 %v831_v56, %v4145_v5  ;;  %v839_v51 = vmul.f32 %v831_v56, %v4147_v6 }
 0x1d7   : >> { %v841_v38 = vadd.f32 %v840_v9, %v832_v42  ;;  %v842_v39 = vadd.f32 %v840_v9, %v833_v31  ;;  %v843_v27 = vadd.f32 %v840_v9, %v834_v36  ;;  %v844_v40 = vadd.f32 %v840_v9, %v835_v55 }
 0x1d8   : >> { %v845_v53 = vadd.f32 %v840_v9, %v836_v26  ;;  %v846_v41 = vadd.f32 %v840_v9, %v837_v37  ;;  %v847_v43 = vadd.f32 %v840_v9, %v838_v25  ;;  %v848_v44 = vadd.f32 %v840_v9, %v839_v51 }
 0x1d9   : >> { %v850_v57 = vmul.f32 %v849_v58, %v4149_v10  ;;  %v851_v45 = vmul.f32 %v849_v58, %v4151_v11  ;;  %v852_v54 = vmul.f32 %v849_v58, %v4153_v12  ;;  %v853_v46 = vmul.f32 %v849_v58, %v4155_v13 }
 0x1da   : >> { %v854_v33 = vmul.f32 %v849_v58, %v4157_v17  ;;  %v855_v48 = vmul.f32 %v849_v58, %v4159_v18  ;;  %v856_v56 = vmul.f32 %v849_v58, %v4161_v19  ;;  %v857_v30 = vmul.f32 %v849_v58, %v4163_v20 }
 0x1db   : >> { %v830_v9 = vadd.f32 %v822_v1, %v753_v47  ;;  %v858_v14 = vadd.f32 %v850_v57, %v841_v38  ;;  %v859_v15 = vadd.f32 %v851_v45, %v842_v39  ;;  %v860_v16 = vadd.f32 %v852_v54, %v843_v27  ;;  %v6150_v38 = vld [vmem:[#allocation159_spill] sm:$0xff] }
 0x1dc   : >> { %v861_v29 = vadd.f32 %v853_v46, %v844_v40  ;;  %v862_v50 = vadd.f32 %v854_v33, %v845_v53  ;;  %v863_v52 = vadd.f32 %v855_v48, %v846_v41  ;;  %v864_v42 = vadd.f32 %v856_v56, %v847_v43 }
 0x1dd   : >> { %v865_v31 = vadd.f32 %v857_v30, %v848_v44  ;;  %v866_v36 = vstv %s3799_s24  ;;  %v891_v55 = vstv %s6148_s4  ;;  %v908_v26 = vstv %s6149_s5  ;;  %s6153_s4 = sld [smem:[#allocation19_spill]] }
 0x1de   : >> { %v867_v37 = vmul.f32 %v866_v36, %v4165_v21  ;;  %v868_v25 = vmul.f32 %v866_v36, %v4167_v22  ;;  %v869_v51 = vmul.f32 %v866_v36, %v4169_v23  ;;  %v870_v58 = vmul.f32 %v866_v36, %v6144_v49  ;;  %s6154_s5 = sld [smem:[#allocation131_spill]] }
 0x1df   : >> { %v871_v47 = vmul.f32 %v866_v36, %v6145_v60  ;;  %v872_v1 = vmul.f32 %v866_v36, %v6146_v2  ;;  %v873_v39 = vmul.f32 %v866_v36, %v6150_v38  ;;  %v874_v27 = vmul.f32 %v866_v36, %v4179_v28 }
 0x1e0   : >> { %v875_v40 = vadd.f32 %v867_v37, %v858_v14  ;;  %v876_v53 = vadd.f32 %v868_v25, %v859_v15  ;;  %v877_v41 = vadd.f32 %v869_v51, %v860_v16  ;;  %v878_v43 = vadd.f32 %v870_v58, %v861_v29 }
 0x1e1   : >> { %v879_v44 = vadd.f32 %v871_v47, %v862_v50  ;;  %v880_v57 = vadd.f32 %v872_v1, %v863_v52  ;;  %v881_v45 = vadd.f32 %v873_v39, %v864_v42  ;;  %v882_v54 = vadd.f32 %v874_v27, %v865_v31 }
 0x1e2   : >> { %v883_v46 = vmax.f32 %v875_v40, 0.0  ;;  %v884_v33 = vmax.f32 %v876_v53, 0.0  ;;  %v885_v48 = vmax.f32 %v877_v41, 0.0  ;;  %v886_v56 = vmax.f32 %v878_v43, 0.0 }
 0x1e3   : >> { %v887_v30 = vmax.f32 %v879_v44, 0.0  ;;  %v888_v60 = vmax.f32 %v880_v57, 0.0  ;;  %v889_v2 = vmax.f32 %v881_v45, 0.0  ;;  %v890_v49 = vmax.f32 %v882_v54, 0.0 }
 0x1e4   : >> { %v892_v38 = vmul.f32 %v891_v55, %v883_v46  ;;  %v893_v23 = vmul.f32 %v891_v55, %v884_v33  ;;  %v894_v36 = vmul.f32 %v891_v55, %v885_v48  ;;  %v895_v14 = vmul.f32 %v891_v55, %v886_v56 }
 0x1e5   : >> { %v896_v15 = vmul.f32 %v891_v55, %v887_v30  ;;  %v897_v16 = vmul.f32 %v891_v55, %v888_v60  ;;  %v898_v29 = vmul.f32 %v891_v55, %v889_v2  ;;  %v917_v50 = vstv %s6151_s21  ;;  %s6161_s21 = sld [smem:[#allocation20_spill]] }
 0x1e6   : >> { %v899_v52 = vmul.f32 %v891_v55, %v890_v49  ;;  %v4424_v42 = vadd.f32 %v892_v38, %v4375_v7  ;;  %v4427_v31 = vadd.f32 %v893_v23, %v4378_v8  ;;  %v4430_v37 = vadd.f32 %v894_v36, %v4381_v59 }
 0x1e7   : >> { %v4433_v25 = vadd.f32 %v895_v14, %v4384_v24  ;;  %v4436_v51 = vadd.f32 %v896_v15, %v4387_v34  ;;  %v4439_v60 = vadd.f32 %v897_v16, %v4390_v35  ;;  %v4442_v49 = vadd.f32 %v898_v29, %v4393_v32 }
 0x1e8   : >> { %v909_v2 = vmul.f32 %v908_v26, %v4133_v61  ;;  %v910_v23 = vmul.f32 %v908_v26, %v4135_v62  ;;  %v911_v7 = vmul.f32 %v908_v26, %v4137_v63  ;;  %v912_v8 = vmul.f32 %v908_v26, %v4139_v0 }
 0x1e9   : >> { %v913_v59 = vmul.f32 %v908_v26, %v4141_v3  ;;  %v914_v24 = vmul.f32 %v908_v26, %v4143_v4  ;;  %v915_v34 = vmul.f32 %v908_v26, %v4145_v5  ;;  %v916_v35 = vmul.f32 %v908_v26, %v4147_v6 }
 0x1ea   : >> { %v4452_v32 = vadd.f32 %v899_v52, %v830_v9  ;;  %v918_v55 = vadd.f32 %v917_v50, %v909_v2  ;;  %v919_v58 = vadd.f32 %v917_v50, %v910_v23  ;;  %v920_v47 = vadd.f32 %v917_v50, %v911_v7  ;;  %v6156_v2 = vld [vmem:[#allocation155_spill] sm:$0xff]  ;;  %v6157_v7 = vld [vmem:[#allocation156_spill] sm:$0xff] }
 0x1eb   : >> { %v921_v1 = vadd.f32 %v917_v50, %v912_v8  ;;  %v922_v38 = vadd.f32 %v917_v50, %v913_v59  ;;  %v923_v39 = vadd.f32 %v917_v50, %v914_v24  ;;  %v924_v27 = vadd.f32 %v917_v50, %v915_v34  ;;  %v6158_v59 = vld [vmem:[#allocation157_spill] sm:$0xff]  ;;  %v6159_v34 = vld [vmem:[#allocation158_spill] sm:$0xff] }
 0x1ec   : >> { %6155 = vst [vmem:[#allocation160_spill] sm:$0xff] %v4452_v32  ;;  %v925_v40 = vadd.f32 %v917_v50, %v916_v35  ;;  %v926_v53 = vstv %s6152_s26  ;;  %v943_v41 = vstv %s6153_s4  ;;  %v968_v43 = vstv %s6154_s5  ;;  %s6162_s26 = sld [smem:[#allocation103_spill]] }
 0x1ed   : >> { %v927_v44 = vmul.f32 %v926_v53, %v4149_v10  ;;  %v928_v57 = vmul.f32 %v926_v53, %v4151_v11  ;;  %v929_v45 = vmul.f32 %v926_v53, %v4153_v12  ;;  %v930_v9 = vmul.f32 %v926_v53, %v4155_v13  ;;  %s6163_s4 = sld [smem:[#allocation21_spill]] }
 0x1ee   : >> { %v931_v26 = vmul.f32 %v926_v53, %v4157_v17  ;;  %v932_v54 = vmul.f32 %v926_v53, %v4159_v18  ;;  %v933_v46 = vmul.f32 %v926_v53, %v4161_v19  ;;  %v934_v33 = vmul.f32 %v926_v53, %v4163_v20  ;;  %s6164_s5 = sld [smem:[#allocation22_spill]] }
 0x1ef   : >> { %v935_v48 = vadd.f32 %v927_v44, %v918_v55  ;;  %v936_v56 = vadd.f32 %v928_v57, %v919_v58  ;;  %v937_v30 = vadd.f32 %v929_v45, %v920_v47  ;;  %v938_v36 = vadd.f32 %v930_v9, %v921_v1  ;;  %v6160_v55 = vld [vmem:[#allocation159_spill] sm:$0xff] }
 0x1f0   : >> { %v939_v14 = vadd.f32 %v931_v26, %v922_v38  ;;  %v940_v15 = vadd.f32 %v932_v54, %v923_v39  ;;  %v941_v16 = vadd.f32 %v933_v46, %v924_v27  ;;  %v942_v29 = vadd.f32 %v934_v33, %v925_v40 }
 0x1f1   : >> { %v944_v50 = vmul.f32 %v943_v41, %v4165_v21  ;;  %v945_v52 = vmul.f32 %v943_v41, %v4167_v22  ;;  %v946_v23 = vmul.f32 %v943_v41, %v6156_v2  ;;  %v947_v8 = vmul.f32 %v943_v41, %v6157_v7 }
 0x1f2   : >> { %v948_v24 = vmul.f32 %v943_v41, %v6158_v59  ;;  %v949_v35 = vmul.f32 %v943_v41, %v6159_v34  ;;  %v950_v58 = vmul.f32 %v943_v41, %v6160_v55  ;;  %v951_v47 = vmul.f32 %v943_v41, %v4179_v28 }
 0x1f3   : >> { %v952_v1 = vadd.f32 %v944_v50, %v935_v48  ;;  %v953_v38 = vadd.f32 %v945_v52, %v936_v56  ;;  %v954_v39 = vadd.f32 %v946_v23, %v937_v30  ;;  %v955_v27 = vadd.f32 %v947_v8, %v938_v36 }
 0x1f4   : >> { %v956_v40 = vadd.f32 %v948_v24, %v939_v14  ;;  %v957_v53 = vadd.f32 %v949_v35, %v940_v15  ;;  %v958_v44 = vadd.f32 %v950_v58, %v941_v16  ;;  %v959_v57 = vadd.f32 %v951_v47, %v942_v29 }
 0x1f5   : >> { %v960_v45 = vmax.f32 %v952_v1, 0.0  ;;  %v961_v9 = vmax.f32 %v953_v38, 0.0  ;;  %v962_v26 = vmax.f32 %v954_v39, 0.0  ;;  %v963_v54 = vmax.f32 %v955_v27, 0.0 }
 0x1f6   : >> { %v964_v46 = vmax.f32 %v956_v40, 0.0  ;;  %v965_v33 = vmax.f32 %v957_v53, 0.0  ;;  %v966_v32 = vmax.f32 %v958_v44, 0.0  ;;  %v967_v34 = vmax.f32 %v959_v57, 0.0 }
 0x1f7   : >> { %v969_v55 = vmul.f32 %v968_v43, %v960_v45  ;;  %v970_v59 = vmul.f32 %v968_v43, %v961_v9  ;;  %v971_v41 = vmul.f32 %v968_v43, %v962_v26  ;;  %v972_v48 = vmul.f32 %v968_v43, %v963_v54 }
 0x1f8   : >> { %v973_v56 = vmul.f32 %v968_v43, %v964_v46  ;;  %v974_v30 = vmul.f32 %v968_v43, %v965_v33  ;;  %v975_v36 = vmul.f32 %v968_v43, %v966_v32  ;;  %v985_v14 = vstv %s6161_s21  ;;  %s6170_s21 = sld [smem:[#allocation104_spill]] }
 0x1f9   : >> { %v4474_v15 = vmul.f32 %v968_v43, %v967_v34  ;;  %v4477_v16 = vadd.f32 %v969_v55, %v4424_v42  ;;  %v4480_v29 = vadd.f32 %v970_v59, %v4427_v31  ;;  %v4483_v50 = vadd.f32 %v971_v41, %v4430_v37 }
 0x1fa   : >> { %v4486_v52 = vadd.f32 %v972_v48, %v4433_v25  ;;  %v4489_v32 = vadd.f32 %v973_v56, %v4436_v51  ;;  %v4492_v43 = vadd.f32 %v974_v30, %v4439_v60  ;;  %v4495_v42 = vadd.f32 %v975_v36, %v4442_v49 }
 0x1fb   : >> { %v986_v31 = vmul.f32 %v985_v14, %v4133_v61  ;;  %v987_v23 = vmul.f32 %v985_v14, %v4135_v62  ;;  %v988_v37 = vmul.f32 %v985_v14, %v4137_v63  ;;  %v989_v8 = vmul.f32 %v985_v14, %v4139_v0 }
 0x1fc   : >> { %v990_v25 = vmul.f32 %v985_v14, %v4141_v3  ;;  %v991_v59 = vmul.f32 %v985_v14, %v4143_v4  ;;  %v992_v51 = vmul.f32 %v985_v14, %v4145_v5  ;;  %v993_v60 = vmul.f32 %v985_v14, %v4147_v6 }
 0x1fd   : >> { %v994_v24 = vstv %s6162_s26  ;;  %v1003_v34 = vstv %s6163_s4  ;;  %v1020_v49 = vstv %s6164_s5  ;;  %v1045_v35 = vstv %s6165_s0  ;;  %s6169_s0 = sld [smem:[#allocation23_spill]] }
 0x1fe   : >> { %v995_v55 = vadd.f32 %v994_v24, %v986_v31  ;;  %v996_v58 = vadd.f32 %v994_v24, %v987_v23  ;;  %v997_v47 = vadd.f32 %v994_v24, %v988_v37  ;;  %v998_v1 = vadd.f32 %v994_v24, %v989_v8  ;;  %s6171_s26 = sld [smem:[#allocation24_spill]] }
 0x1ff   : >> { %v999_v38 = vadd.f32 %v994_v24, %v990_v25  ;;  %v1000_v39 = vadd.f32 %v994_v24, %v991_v59  ;;  %v1001_v27 = vadd.f32 %v994_v24, %v992_v51  ;;  %v1002_v40 = vadd.f32 %v994_v24, %v993_v60  ;;  %v6166_v59 = vld [vmem:[#allocation157_spill] sm:$0xff]  ;;  %v6167_v60 = vld [vmem:[#allocation158_spill] sm:$0xff]  ;;  %s6173_s4 = sld [smem:[#allocation25_spill]] }
 0x200   : >> { %v1004_v53 = vmul.f32 %v1003_v34, %v4149_v10  ;;  %v1005_v44 = vmul.f32 %v1003_v34, %v4151_v11  ;;  %v1006_v57 = vmul.f32 %v1003_v34, %v4153_v12  ;;  %v1007_v45 = vmul.f32 %v1003_v34, %v4155_v13  ;;  %s6178_s5 = sld [smem:[#allocation133_spill]] }
 0x201   : >> { %v1008_v9 = vmul.f32 %v1003_v34, %v4157_v17  ;;  %v1009_v26 = vmul.f32 %v1003_v34, %v4159_v18  ;;  %v1010_v54 = vmul.f32 %v1003_v34, %v4161_v19  ;;  %v1011_v46 = vmul.f32 %v1003_v34, %v4163_v20  ;;  %v6168_v34 = vld [vmem:[#allocation159_spill] sm:$0xff] }
 0x202   : >> { %v1012_v33 = vadd.f32 %v1004_v53, %v995_v55  ;;  %v1013_v41 = vadd.f32 %v1005_v44, %v996_v58  ;;  %v1014_v48 = vadd.f32 %v1006_v57, %v997_v47  ;;  %v1015_v56 = vadd.f32 %v1007_v45, %v998_v1 }
 0x203   : >> { %v1016_v30 = vadd.f32 %v1008_v9, %v999_v38  ;;  %v1017_v36 = vadd.f32 %v1009_v26, %v1000_v39  ;;  %v1018_v14 = vadd.f32 %v1010_v54, %v1001_v27  ;;  %v1019_v31 = vadd.f32 %v1011_v46, %v1002_v40 }
 0x204   : >> { %v1021_v23 = vmul.f32 %v1020_v49, %v4165_v21  ;;  %v1022_v37 = vmul.f32 %v1020_v49, %v4167_v22  ;;  %v1023_v8 = vmul.f32 %v1020_v49, %v6156_v2  ;;  %v1024_v25 = vmul.f32 %v1020_v49, %v6157_v7 }
 0x205   : >> { %v1025_v51 = vmul.f32 %v1020_v49, %v6166_v59  ;;  %v1026_v24 = vmul.f32 %v1020_v49, %v6167_v60  ;;  %v1027_v55 = vmul.f32 %v1020_v49, %v6168_v34  ;;  %v1028_v58 = vmul.f32 %v1020_v49, %v4179_v28 }
 0x206   : >> { %v1029_v47 = vadd.f32 %v1021_v23, %v1012_v33  ;;  %v1030_v1 = vadd.f32 %v1022_v37, %v1013_v41  ;;  %v1031_v38 = vadd.f32 %v1023_v8, %v1014_v48  ;;  %v1032_v39 = vadd.f32 %v1024_v25, %v1015_v56  ;;  %v6172_v41 = vld [vmem:[#allocation160_spill] sm:$0xff] }
 0x207   : >> { %v1033_v27 = vadd.f32 %v1025_v51, %v1016_v30  ;;  %v1034_v40 = vadd.f32 %v1026_v24, %v1017_v36  ;;  %v1035_v53 = vadd.f32 %v1027_v55, %v1018_v14  ;;  %v1036_v44 = vadd.f32 %v1028_v58, %v1019_v31 }
 0x208   : >> { %v1037_v57 = vmax.f32 %v1029_v47, 0.0  ;;  %v1038_v45 = vmax.f32 %v1030_v1, 0.0  ;;  %v1039_v9 = vmax.f32 %v1031_v38, 0.0  ;;  %v1040_v26 = vmax.f32 %v1032_v39, 0.0 }
 0x209   : >> { %v1041_v54 = vmax.f32 %v1033_v27, 0.0  ;;  %v1042_v46 = vmax.f32 %v1034_v40, 0.0  ;;  %v1043_v59 = vmax.f32 %v1035_v53, 0.0  ;;  %v1044_v60 = vmax.f32 %v1036_v44, 0.0 }
 0x20a   : >> { %v1046_v7 = vmul.f32 %v1045_v35, %v1037_v57  ;;  %v1047_v34 = vmul.f32 %v1045_v35, %v1038_v45  ;;  %v1048_v49 = vmul.f32 %v1045_v35, %v1039_v9  ;;  %v1049_v33 = vmul.f32 %v1045_v35, %v1040_v26 }
 0x20b   : >> { %v4527_v48 = vadd.f32 %v4474_v15, %v6172_v41  ;;  %v1050_v56 = vmul.f32 %v1045_v35, %v1041_v54  ;;  %v1051_v30 = vmul.f32 %v1045_v35, %v1042_v46  ;;  %v1052_v36 = vmul.f32 %v1045_v35, %v1043_v59 }
 0x20c   : >> { %v4529_v14 = vmul.f32 %v1045_v35, %v1044_v60  ;;  %v4532_v31 = vadd.f32 %v1046_v7, %v4477_v16  ;;  %v4535_v23 = vadd.f32 %v1047_v34, %v4480_v29  ;;  %v4538_v37 = vadd.f32 %v1048_v49, %v4483_v50 }
 0x20d   : >> { %v4541_v8 = vadd.f32 %v1049_v33, %v4486_v52  ;;  %v4544_v15 = vadd.f32 %v1050_v56, %v4489_v32  ;;  %v4547_v25 = vadd.f32 %v1051_v30, %v4492_v43  ;;  %v4550_v35 = vadd.f32 %v1052_v36, %v4495_v42 }
 0x20e   : >> { %v1062_v7 = vstv %s6169_s0  ;;  %v1071_v16 = vstv %s6170_s21  ;;  %v1080_v59 = vstv %s6171_s26  ;;  %v1097_v29 = vstv %s6173_s4  ;;  %s6179_s0 = sld [smem:[#allocation26_spill]] }
 0x20f   : >> { %v1063_v51 = vmul.f32 %v1062_v7, %v4133_v61  ;;  %v1064_v50 = vmul.f32 %v1062_v7, %v4135_v62  ;;  %v1065_v52 = vmul.f32 %v1062_v7, %v4137_v63  ;;  %v1066_v60 = vmul.f32 %v1062_v7, %v4139_v0  ;;  %s6180_s21 = sld [smem:[#allocation105_spill]] }
 0x210   : >> { %v1067_v32 = vmul.f32 %v1062_v7, %v4141_v3  ;;  %v1068_v43 = vmul.f32 %v1062_v7, %v4143_v4  ;;  %v1069_v24 = vmul.f32 %v1062_v7, %v4145_v5  ;;  %v1070_v42 = vmul.f32 %v1062_v7, %v4147_v6  ;;  %s6181_s26 = sld [smem:[#allocation27_spill]] }
 0x211   : >> { %v1072_v34 = vadd.f32 %v1071_v16, %v1063_v51  ;;  %v1073_v55 = vadd.f32 %v1071_v16, %v1064_v50  ;;  %v1074_v58 = vadd.f32 %v1071_v16, %v1065_v52  ;;  %v1075_v47 = vadd.f32 %v1071_v16, %v1066_v60  ;;  %v6174_v52 = vld [vmem:[#allocation156_spill] sm:$0xff]  ;;  %s6182_s4 = sld [smem:[#allocation28_spill]] }
 0x212   : >> { %v1076_v1 = vadd.f32 %v1071_v16, %v1067_v32  ;;  %v1077_v38 = vadd.f32 %v1071_v16, %v1068_v43  ;;  %v1078_v39 = vadd.f32 %v1071_v16, %v1069_v24  ;;  %v1079_v27 = vadd.f32 %v1071_v16, %v1070_v42  ;;  %v6175_v32 = vld [vmem:[#allocation157_spill] sm:$0xff]  ;;  %v6176_v24 = vld [vmem:[#allocation158_spill] sm:$0xff]  ;;  %v6177_v42 = vld [vmem:[#allocation159_spill] sm:$0xff] }
 0x213   : >> { %v1081_v40 = vmul.f32 %v1080_v59, %v4149_v10  ;;  %v1082_v53 = vmul.f32 %v1080_v59, %v4151_v11  ;;  %v1083_v44 = vmul.f32 %v1080_v59, %v4153_v12  ;;  %v1084_v57 = vmul.f32 %v1080_v59, %v4155_v13 }
 0x214   : >> { %v1085_v45 = vmul.f32 %v1080_v59, %v4157_v17  ;;  %v1086_v9 = vmul.f32 %v1080_v59, %v4159_v18  ;;  %v1087_v26 = vmul.f32 %v1080_v59, %v4161_v19  ;;  %v1088_v54 = vmul.f32 %v1080_v59, %v4163_v20 }
 0x215   : >> { %v1089_v46 = vadd.f32 %v1081_v40, %v1072_v34  ;;  %v1090_v49 = vadd.f32 %v1082_v53, %v1073_v55  ;;  %v1091_v33 = vadd.f32 %v1083_v44, %v1074_v58  ;;  %v1092_v41 = vadd.f32 %v1084_v57, %v1075_v47 }
 0x216   : >> { %v1093_v56 = vadd.f32 %v1085_v45, %v1076_v1  ;;  %v1094_v30 = vadd.f32 %v1086_v9, %v1077_v38  ;;  %v1095_v36 = vadd.f32 %v1087_v26, %v1078_v39  ;;  %v1096_v7 = vadd.f32 %v1088_v54, %v1079_v27 }
 0x217   : >> { %v1098_v16 = vmul.f32 %v1097_v29, %v4165_v21  ;;  %v1099_v51 = vmul.f32 %v1097_v29, %v4167_v22  ;;  %v1100_v50 = vmul.f32 %v1097_v29, %v6156_v2  ;;  %v1101_v60 = vmul.f32 %v1097_v29, %v6174_v52 }
 0x218   : >> { %v1102_v43 = vmul.f32 %v1097_v29, %v6175_v32  ;;  %v1103_v59 = vmul.f32 %v1097_v29, %v6176_v24  ;;  %v1104_v34 = vmul.f32 %v1097_v29, %v6177_v42  ;;  %v1105_v55 = vmul.f32 %v1097_v29, %v4179_v28 }
 0x219   : >> { %v1106_v58 = vadd.f32 %v1098_v16, %v1089_v46  ;;  %v1107_v47 = vadd.f32 %v1099_v51, %v1090_v49  ;;  %v1108_v1 = vadd.f32 %v1100_v50, %v1091_v33  ;;  %v1109_v38 = vadd.f32 %v1101_v60, %v1092_v41 }
 0x21a   : >> { %v1110_v39 = vadd.f32 %v1102_v43, %v1093_v56  ;;  %v1111_v27 = vadd.f32 %v1103_v59, %v1094_v30  ;;  %v1112_v40 = vadd.f32 %v1104_v34, %v1095_v36  ;;  %v1113_v53 = vadd.f32 %v1105_v55, %v1096_v7 }
 0x21b   : >> { %v1114_v44 = vmax.f32 %v1106_v58, 0.0  ;;  %v1115_v57 = vmax.f32 %v1107_v47, 0.0  ;;  %v1116_v45 = vmax.f32 %v1108_v1, 0.0  ;;  %v1117_v9 = vmax.f32 %v1109_v38, 0.0 }
 0x21c   : >> { %v1118_v26 = vmax.f32 %v1110_v39, 0.0  ;;  %v1119_v54 = vmax.f32 %v1111_v27, 0.0  ;;  %v1120_v42 = vmax.f32 %v1112_v40, 0.0  ;;  %v1121_v29 = vmax.f32 %v1113_v53, 0.0 }
 0x21d   : >> { %v1061_v46 = vadd.f32 %v4529_v14, %v4527_v48  ;;  %v1122_v49 = vstv %s6178_s5  ;;  %v1139_v33 = vstv %s6179_s0  ;;  %v1148_v41 = vstv %s6180_s21  ;;  %s6183_s5 = sld [smem:[#allocation134_spill]] }
 0x21e   : >> { %v1123_v16 = vmul.f32 %v1122_v49, %v1114_v44  ;;  %v1124_v56 = vmul.f32 %v1122_v49, %v1115_v57  ;;  %v1125_v30 = vmul.f32 %v1122_v49, %v1116_v45  ;;  %v1126_v36 = vmul.f32 %v1122_v49, %v1117_v9  ;;  %s6184_s0 = sld [smem:[#allocation29_spill]] }
 0x21f   : >> { %v1127_v7 = vmul.f32 %v1122_v49, %v1118_v26  ;;  %v1128_v51 = vmul.f32 %v1122_v49, %v1119_v54  ;;  %v1129_v50 = vmul.f32 %v1122_v49, %v1120_v42  ;;  %v1157_v60 = vstv %s6181_s26  ;;  %s6186_s21 = sld [smem:[#allocation106_spill]] }
 0x220   : >> { %v1130_v43 = vmul.f32 %v1122_v49, %v1121_v29  ;;  %v4587_v59 = vadd.f32 %v1123_v16, %v4532_v31  ;;  %v4590_v34 = vadd.f32 %v1124_v56, %v4535_v23  ;;  %v4593_v48 = vadd.f32 %v1125_v30, %v4538_v37  ;;  %s6187_s26 = sld [smem:[#allocation30_spill]] }
 0x221   : >> { %v4596_v14 = vadd.f32 %v1126_v36, %v4541_v8  ;;  %v4599_v55 = vadd.f32 %v1127_v7, %v4544_v15  ;;  %v4602_v58 = vadd.f32 %v1128_v51, %v4547_v25  ;;  %v4605_v42 = vadd.f32 %v1129_v50, %v4550_v35 }
 0x222   : >> { %v1140_v31 = vmul.f32 %v1139_v33, %v4133_v61  ;;  %v1141_v23 = vmul.f32 %v1139_v33, %v4135_v62  ;;  %v1142_v47 = vmul.f32 %v1139_v33, %v4137_v63  ;;  %v1143_v37 = vmul.f32 %v1139_v33, %v4139_v0 }
 0x223   : >> { %v1144_v8 = vmul.f32 %v1139_v33, %v4141_v3  ;;  %v1145_v1 = vmul.f32 %v1139_v33, %v4143_v4  ;;  %v1146_v15 = vmul.f32 %v1139_v33, %v4145_v5  ;;  %v1147_v25 = vmul.f32 %v1139_v33, %v4147_v6 }
 0x224   : >> { %v1149_v38 = vadd.f32 %v1148_v41, %v1140_v31  ;;  %v1150_v39 = vadd.f32 %v1148_v41, %v1141_v23  ;;  %v1151_v35 = vadd.f32 %v1148_v41, %v1142_v47  ;;  %v1152_v27 = vadd.f32 %v1148_v41, %v1143_v37 }
 0x225   : >> { %v1153_v40 = vadd.f32 %v1148_v41, %v1144_v8  ;;  %v1154_v53 = vadd.f32 %v1148_v41, %v1145_v1  ;;  %v1155_v44 = vadd.f32 %v1148_v41, %v1146_v15  ;;  %v1156_v57 = vadd.f32 %v1148_v41, %v1147_v25 }
 0x226   : >> { %v1158_v45 = vmul.f32 %v1157_v60, %v4149_v10  ;;  %v1159_v9 = vmul.f32 %v1157_v60, %v4151_v11  ;;  %v1160_v26 = vmul.f32 %v1157_v60, %v4153_v12  ;;  %v1161_v54 = vmul.f32 %v1157_v60, %v4155_v13 }
 0x227   : >> { %v1162_v29 = vmul.f32 %v1157_v60, %v4157_v17  ;;  %v1163_v49 = vmul.f32 %v1157_v60, %v4159_v18  ;;  %v1164_v33 = vmul.f32 %v1157_v60, %v4161_v19  ;;  %v1165_v16 = vmul.f32 %v1157_v60, %v4163_v20 }
 0x228   : >> { %v1138_v41 = vadd.f32 %v1130_v43, %v1061_v46  ;;  %v1166_v56 = vadd.f32 %v1158_v45, %v1149_v38  ;;  %v1167_v30 = vadd.f32 %v1159_v9, %v1150_v39  ;;  %v1168_v36 = vadd.f32 %v1160_v26, %v1151_v35  ;;  %v6185_v38 = vld [vmem:[#allocation159_spill] sm:$0xff] }
 0x229   : >> { %v1169_v7 = vadd.f32 %v1161_v54, %v1152_v27  ;;  %v1170_v51 = vadd.f32 %v1162_v29, %v1153_v40  ;;  %v1171_v50 = vadd.f32 %v1163_v49, %v1154_v53  ;;  %v1172_v31 = vadd.f32 %v1164_v33, %v1155_v44 }
 0x22a   : >> { %v1173_v23 = vadd.f32 %v1165_v16, %v1156_v57  ;;  %v1174_v47 = vstv %s6182_s4  ;;  %v1199_v37 = vstv %s6183_s5  ;;  %v1216_v8 = vstv %s6184_s0  ;;  %s6188_s4 = sld [smem:[#allocation31_spill]] }
 0x22b   : >> { %v1175_v1 = vmul.f32 %v1174_v47, %v4165_v21  ;;  %v1176_v15 = vmul.f32 %v1174_v47, %v4167_v22  ;;  %v1177_v25 = vmul.f32 %v1174_v47, %v6156_v2  ;;  %v1178_v60 = vmul.f32 %v1174_v47, %v6174_v52  ;;  %s6189_s5 = sld [smem:[#allocation135_spill]] }
 0x22c   : >> { %v1179_v46 = vmul.f32 %v1174_v47, %v6175_v32  ;;  %v1180_v43 = vmul.f32 %v1174_v47, %v6176_v24  ;;  %v1181_v39 = vmul.f32 %v1174_v47, %v6185_v38  ;;  %v1182_v35 = vmul.f32 %v1174_v47, %v4179_v28  ;;  %s6196_s0 = sld [smem:[#allocation32_spill]] }
 0x22d   : >> { %v1183_v27 = vadd.f32 %v1175_v1, %v1166_v56  ;;  %v1184_v40 = vadd.f32 %v1176_v15, %v1167_v30  ;;  %v1185_v53 = vadd.f32 %v1177_v25, %v1168_v36  ;;  %v1186_v44 = vadd.f32 %v1178_v60, %v1169_v7 }
 0x22e   : >> { %v1187_v57 = vadd.f32 %v1179_v46, %v1170_v51  ;;  %v1188_v45 = vadd.f32 %v1180_v43, %v1171_v50  ;;  %v1189_v9 = vadd.f32 %v1181_v39, %v1172_v31  ;;  %v1190_v26 = vadd.f32 %v1182_v35, %v1173_v23 }
 0x22f   : >> { %v1191_v54 = vmax.f32 %v1183_v27, 0.0  ;;  %v1192_v29 = vmax.f32 %v1184_v40, 0.0  ;;  %v1193_v49 = vmax.f32 %v1185_v53, 0.0  ;;  %v1194_v33 = vmax.f32 %v1186_v44, 0.0 }
 0x230   : >> { %v1195_v16 = vmax.f32 %v1187_v57, 0.0  ;;  %v1196_v32 = vmax.f32 %v1188_v45, 0.0  ;;  %v1197_v24 = vmax.f32 %v1189_v9, 0.0  ;;  %v1198_v52 = vmax.f32 %v1190_v26, 0.0 }
 0x231   : >> { %v1200_v38 = vmul.f32 %v1199_v37, %v1191_v54  ;;  %v1201_v2 = vmul.f32 %v1199_v37, %v1192_v29  ;;  %v1202_v47 = vmul.f32 %v1199_v37, %v1193_v49  ;;  %v1203_v56 = vmul.f32 %v1199_v37, %v1194_v33 }
 0x232   : >> { %v1204_v30 = vmul.f32 %v1199_v37, %v1195_v16  ;;  %v1205_v36 = vmul.f32 %v1199_v37, %v1196_v32  ;;  %v1206_v7 = vmul.f32 %v1199_v37, %v1197_v24  ;;  %v1225_v51 = vstv %s6186_s21  ;;  %s6197_s21 = sld [smem:[#allocation107_spill]] }
 0x233   : >> { %v1207_v50 = vmul.f32 %v1199_v37, %v1198_v52  ;;  %v4636_v31 = vadd.f32 %v1200_v38, %v4587_v59  ;;  %v4639_v23 = vadd.f32 %v1201_v2, %v4590_v34  ;;  %v4642_v1 = vadd.f32 %v1202_v47, %v4593_v48 }
 0x234   : >> { %v4645_v15 = vadd.f32 %v1203_v56, %v4596_v14  ;;  %v4648_v25 = vadd.f32 %v1204_v30, %v4599_v55  ;;  %v4651_v32 = vadd.f32 %v1205_v36, %v4602_v58  ;;  %v4654_v52 = vadd.f32 %v1206_v7, %v4605_v42 }
 0x235   : >> { %v1217_v24 = vmul.f32 %v1216_v8, %v4133_v61  ;;  %v1218_v2 = vmul.f32 %v1216_v8, %v4135_v62  ;;  %v1219_v59 = vmul.f32 %v1216_v8, %v4137_v63  ;;  %v1220_v34 = vmul.f32 %v1216_v8, %v4139_v0 }
 0x236   : >> { %v1221_v48 = vmul.f32 %v1216_v8, %v4141_v3  ;;  %v1222_v14 = vmul.f32 %v1216_v8, %v4143_v4  ;;  %v1223_v55 = vmul.f32 %v1216_v8, %v4145_v5  ;;  %v1224_v58 = vmul.f32 %v1216_v8, %v4147_v6 }
 0x237   : >> { %v4664_v42 = vadd.f32 %v1207_v50, %v1138_v41  ;;  %v1226_v37 = vadd.f32 %v1225_v51, %v1217_v24  ;;  %v1227_v60 = vadd.f32 %v1225_v51, %v1218_v2  ;;  %v1228_v46 = vadd.f32 %v1225_v51, %v1219_v59  ;;  %v6191_v24 = vld [vmem:[#allocation155_spill] sm:$0xff]  ;;  %v6192_v59 = vld [vmem:[#allocation156_spill] sm:$0xff] }
 0x238   : >> { %v1229_v43 = vadd.f32 %v1225_v51, %v1220_v34  ;;  %v1230_v38 = vadd.f32 %v1225_v51, %v1221_v48  ;;  %v1231_v39 = vadd.f32 %v1225_v51, %v1222_v14  ;;  %v1232_v35 = vadd.f32 %v1225_v51, %v1223_v55  ;;  %v6193_v48 = vld [vmem:[#allocation157_spill] sm:$0xff]  ;;  %v6194_v55 = vld [vmem:[#allocation158_spill] sm:$0xff] }
 0x239   : >> { %6190 = vst [vmem:[#allocation160_spill] sm:$0xff] %v4664_v42  ;;  %v1233_v27 = vadd.f32 %v1225_v51, %v1224_v58  ;;  %v1234_v40 = vstv %s6187_s26  ;;  %v1251_v53 = vstv %s6188_s4  ;;  %v1276_v44 = vstv %s6189_s5  ;;  %s6198_s26 = sld [smem:[#allocation33_spill]] }
 0x23a   : >> { %v1235_v57 = vmul.f32 %v1234_v40, %v4149_v10  ;;  %v1236_v45 = vmul.f32 %v1234_v40, %v4151_v11  ;;  %v1237_v9 = vmul.f32 %v1234_v40, %v4153_v12  ;;  %v1238_v41 = vmul.f32 %v1234_v40, %v4155_v13  ;;  %s6199_s4 = sld [smem:[#allocation34_spill]] }
 0x23b   : >> { %v1239_v8 = vmul.f32 %v1234_v40, %v4157_v17  ;;  %v1240_v26 = vmul.f32 %v1234_v40, %v4159_v18  ;;  %v1241_v54 = vmul.f32 %v1234_v40, %v4161_v19  ;;  %v1242_v29 = vmul.f32 %v1234_v40, %v4163_v20  ;;  %s6200_s5 = sld [smem:[#allocation136_spill]] }
 0x23c   : >> { %v1243_v49 = vadd.f32 %v1235_v57, %v1226_v37  ;;  %v1244_v33 = vadd.f32 %v1236_v45, %v1227_v60  ;;  %v1245_v16 = vadd.f32 %v1237_v9, %v1228_v46  ;;  %v1246_v47 = vadd.f32 %v1238_v41, %v1229_v43  ;;  %v6195_v37 = vld [vmem:[#allocation159_spill] sm:$0xff] }
 0x23d   : >> { %v1247_v56 = vadd.f32 %v1239_v8, %v1230_v38  ;;  %v1248_v30 = vadd.f32 %v1240_v26, %v1231_v39  ;;  %v1249_v36 = vadd.f32 %v1241_v54, %v1232_v35  ;;  %v1250_v7 = vadd.f32 %v1242_v29, %v1233_v27 }
 0x23e   : >> { %v1252_v51 = vmul.f32 %v1251_v53, %v4165_v21  ;;  %v1253_v50 = vmul.f32 %v1251_v53, %v4167_v22  ;;  %v1254_v2 = vmul.f32 %v1251_v53, %v6191_v24  ;;  %v1255_v34 = vmul.f32 %v1251_v53, %v6192_v59 }
 0x23f   : >> { %v1256_v14 = vmul.f32 %v1251_v53, %v6193_v48  ;;  %v1257_v58 = vmul.f32 %v1251_v53, %v6194_v55  ;;  %v1258_v60 = vmul.f32 %v1251_v53, %v6195_v37  ;;  %v1259_v46 = vmul.f32 %v1251_v53, %v4179_v28 }
 0x240   : >> { %v1260_v43 = vadd.f32 %v1252_v51, %v1243_v49  ;;  %v1261_v38 = vadd.f32 %v1253_v50, %v1244_v33  ;;  %v1262_v39 = vadd.f32 %v1254_v2, %v1245_v16  ;;  %v1263_v35 = vadd.f32 %v1255_v34, %v1246_v47 }
 0x241   : >> { %v1264_v27 = vadd.f32 %v1256_v14, %v1247_v56  ;;  %v1265_v40 = vadd.f32 %v1257_v58, %v1248_v30  ;;  %v1266_v57 = vadd.f32 %v1258_v60, %v1249_v36  ;;  %v1267_v45 = vadd.f32 %v1259_v46, %v1250_v7 }
 0x242   : >> { %v1268_v9 = vmax.f32 %v1260_v43, 0.0  ;;  %v1269_v41 = vmax.f32 %v1261_v38, 0.0  ;;  %v1270_v8 = vmax.f32 %v1262_v39, 0.0  ;;  %v1271_v26 = vmax.f32 %v1263_v35, 0.0 }
 0x243   : >> { %v1272_v54 = vmax.f32 %v1264_v27, 0.0  ;;  %v1273_v29 = vmax.f32 %v1265_v40, 0.0  ;;  %v1274_v42 = vmax.f32 %v1266_v57, 0.0  ;;  %v1275_v55 = vmax.f32 %v1267_v45, 0.0 }
 0x244   : >> { %v1277_v37 = vmul.f32 %v1276_v44, %v1268_v9  ;;  %v1278_v48 = vmul.f32 %v1276_v44, %v1269_v41  ;;  %v1279_v53 = vmul.f32 %v1276_v44, %v1270_v8  ;;  %v1280_v49 = vmul.f32 %v1276_v44, %v1271_v26 }
 0x245   : >> { %v1281_v33 = vmul.f32 %v1276_v44, %v1272_v54  ;;  %v1282_v16 = vmul.f32 %v1276_v44, %v1273_v29  ;;  %v1283_v47 = vmul.f32 %v1276_v44, %v1274_v42  ;;  %v1293_v56 = vstv %s6196_s0  ;;  %s6204_s0 = sld [smem:[#allocation35_spill]] }
 0x246   : >> { %v4686_v30 = vmul.f32 %v1276_v44, %v1275_v55  ;;  %v4689_v36 = vadd.f32 %v1277_v37, %v4636_v31  ;;  %v4692_v7 = vadd.f32 %v1278_v48, %v4639_v23  ;;  %v4695_v51 = vadd.f32 %v1279_v53, %v4642_v1 }
 0x247   : >> { %v4698_v50 = vadd.f32 %v1280_v49, %v4645_v15  ;;  %v4701_v42 = vadd.f32 %v1281_v33, %v4648_v25  ;;  %v4704_v44 = vadd.f32 %v1282_v16, %v4651_v32  ;;  %v4707_v31 = vadd.f32 %v1283_v47, %v4654_v52 }
 0x248   : >> { %v1294_v23 = vmul.f32 %v1293_v56, %v4133_v61  ;;  %v1295_v2 = vmul.f32 %v1293_v56, %v4135_v62  ;;  %v1296_v1 = vmul.f32 %v1293_v56, %v4137_v63  ;;  %v1297_v34 = vmul.f32 %v1293_v56, %v4139_v0 }
 0x249   : >> { %v1298_v15 = vmul.f32 %v1293_v56, %v4141_v3  ;;  %v1299_v48 = vmul.f32 %v1293_v56, %v4143_v4  ;;  %v1300_v25 = vmul.f32 %v1293_v56, %v4145_v5  ;;  %v1301_v32 = vmul.f32 %v1293_v56, %v4147_v6 }
 0x24a   : >> { %v1302_v14 = vstv %s6197_s21  ;;  %v1311_v55 = vstv %s6198_s26  ;;  %v1328_v52 = vstv %s6199_s4  ;;  %v1353_v58 = vstv %s6200_s5  ;;  %s6205_s21 = sld [smem:[#allocation108_spill]] }
 0x24b   : >> { %v1303_v37 = vadd.f32 %v1302_v14, %v1294_v23  ;;  %v1304_v60 = vadd.f32 %v1302_v14, %v1295_v2  ;;  %v1305_v46 = vadd.f32 %v1302_v14, %v1296_v1  ;;  %v1306_v43 = vadd.f32 %v1302_v14, %v1297_v34  ;;  %s6206_s26 = sld [smem:[#allocation36_spill]] }
 0x24c   : >> { %v1307_v38 = vadd.f32 %v1302_v14, %v1298_v15  ;;  %v1308_v39 = vadd.f32 %v1302_v14, %v1299_v48  ;;  %v1309_v35 = vadd.f32 %v1302_v14, %v1300_v25  ;;  %v1310_v27 = vadd.f32 %v1302_v14, %v1301_v32  ;;  %v6201_v48 = vld [vmem:[#allocation157_spill] sm:$0xff]  ;;  %v6202_v32 = vld [vmem:[#allocation158_spill] sm:$0xff]  ;;  %s6208_s4 = sld [smem:[#allocation37_spill]] }
 0x24d   : >> { %v1312_v40 = vmul.f32 %v1311_v55, %v4149_v10  ;;  %v1313_v57 = vmul.f32 %v1311_v55, %v4151_v11  ;;  %v1314_v45 = vmul.f32 %v1311_v55, %v4153_v12  ;;  %v1315_v9 = vmul.f32 %v1311_v55, %v4155_v13  ;;  %s6213_s5 = sld [smem:[#allocation137_spill]] }
 0x24e   : >> { %v1316_v41 = vmul.f32 %v1311_v55, %v4157_v17  ;;  %v1317_v8 = vmul.f32 %v1311_v55, %v4159_v18  ;;  %v1318_v26 = vmul.f32 %v1311_v55, %v4161_v19  ;;  %v1319_v54 = vmul.f32 %v1311_v55, %v4163_v20  ;;  %v6203_v55 = vld [vmem:[#allocation159_spill] sm:$0xff] }
 0x24f   : >> { %v1320_v29 = vadd.f32 %v1312_v40, %v1303_v37  ;;  %v1321_v53 = vadd.f32 %v1313_v57, %v1304_v60  ;;  %v1322_v49 = vadd.f32 %v1314_v45, %v1305_v46  ;;  %v1323_v33 = vadd.f32 %v1315_v9, %v1306_v43 }
 0x250   : >> { %v1324_v16 = vadd.f32 %v1316_v41, %v1307_v38  ;;  %v1325_v47 = vadd.f32 %v1317_v8, %v1308_v39  ;;  %v1326_v56 = vadd.f32 %v1318_v26, %v1309_v35  ;;  %v1327_v23 = vadd.f32 %v1319_v54, %v1310_v27 }
 0x251   : >> { %v1329_v2 = vmul.f32 %v1328_v52, %v4165_v21  ;;  %v1330_v1 = vmul.f32 %v1328_v52, %v4167_v22  ;;  %v1331_v34 = vmul.f32 %v1328_v52, %v6191_v24  ;;  %v1332_v15 = vmul.f32 %v1328_v52, %v6192_v59 }
 0x252   : >> { %v1333_v25 = vmul.f32 %v1328_v52, %v6201_v48  ;;  %v1334_v14 = vmul.f32 %v1328_v52, %v6202_v32  ;;  %v1335_v37 = vmul.f32 %v1328_v52, %v6203_v55  ;;  %v1336_v60 = vmul.f32 %v1328_v52, %v4179_v28 }
 0x253   : >> { %v1337_v46 = vadd.f32 %v1329_v2, %v1320_v29  ;;  %v1338_v43 = vadd.f32 %v1330_v1, %v1321_v53  ;;  %v1339_v38 = vadd.f32 %v1331_v34, %v1322_v49  ;;  %v1340_v39 = vadd.f32 %v1332_v15, %v1323_v33  ;;  %v6207_v53 = vld [vmem:[#allocation160_spill] sm:$0xff] }
 0x254   : >> { %v1341_v35 = vadd.f32 %v1333_v25, %v1324_v16  ;;  %v1342_v27 = vadd.f32 %v1334_v14, %v1325_v47  ;;  %v1343_v40 = vadd.f32 %v1335_v37, %v1326_v56  ;;  %v1344_v57 = vadd.f32 %v1336_v60, %v1327_v23 }
 0x255   : >> { %v1345_v45 = vmax.f32 %v1337_v46, 0.0  ;;  %v1346_v9 = vmax.f32 %v1338_v43, 0.0  ;;  %v1347_v41 = vmax.f32 %v1339_v38, 0.0  ;;  %v1348_v8 = vmax.f32 %v1340_v39, 0.0 }
 0x256   : >> { %v1349_v26 = vmax.f32 %v1341_v35, 0.0  ;;  %v1350_v54 = vmax.f32 %v1342_v27, 0.0  ;;  %v1351_v48 = vmax.f32 %v1343_v40, 0.0  ;;  %v1352_v32 = vmax.f32 %v1344_v57, 0.0 }
 0x257   : >> { %v1354_v59 = vmul.f32 %v1353_v58, %v1345_v45  ;;  %v1355_v55 = vmul.f32 %v1353_v58, %v1346_v9  ;;  %v1356_v52 = vmul.f32 %v1353_v58, %v1347_v41  ;;  %v1357_v29 = vmul.f32 %v1353_v58, %v1348_v8 }
 0x258   : >> { %v4739_v49 = vadd.f32 %v4686_v30, %v6207_v53  ;;  %v1358_v33 = vmul.f32 %v1353_v58, %v1349_v26  ;;  %v1359_v16 = vmul.f32 %v1353_v58, %v1350_v54  ;;  %v1360_v47 = vmul.f32 %v1353_v58, %v1351_v48 }
 0x259   : >> { %v4741_v56 = vmul.f32 %v1353_v58, %v1352_v32  ;;  %v4744_v23 = vadd.f32 %v1354_v59, %v4689_v36  ;;  %v4747_v2 = vadd.f32 %v1355_v55, %v4692_v7  ;;  %v4750_v1 = vadd.f32 %v1356_v52, %v4695_v51 }
 0x25a   : >> { %v4753_v34 = vadd.f32 %v1357_v29, %v4698_v50  ;;  %v4756_v30 = vadd.f32 %v1358_v33, %v4701_v42  ;;  %v4759_v15 = vadd.f32 %v1359_v16, %v4704_v44  ;;  %v4762_v58 = vadd.f32 %v1360_v47, %v4707_v31 }
 0x25b   : >> { %v1370_v59 = vstv %s6204_s0  ;;  %v1379_v36 = vstv %s6205_s21  ;;  %v1388_v48 = vstv %s6206_s26  ;;  %v1405_v7 = vstv %s6208_s4  ;;  %s6214_s0 = sld [smem:[#allocation38_spill]] }
 0x25c   : >> { %v1371_v25 = vmul.f32 %v1370_v59, %v4133_v61  ;;  %v1372_v51 = vmul.f32 %v1370_v59, %v4135_v62  ;;  %v1373_v50 = vmul.f32 %v1370_v59, %v4137_v63  ;;  %v1374_v32 = vmul.f32 %v1370_v59, %v4139_v0  ;;  %s6215_s21 = sld [smem:[#allocation109_spill]] }
 0x25d   : >> { %v1375_v42 = vmul.f32 %v1370_v59, %v4141_v3  ;;  %v1376_v44 = vmul.f32 %v1370_v59, %v4143_v4  ;;  %v1377_v14 = vmul.f32 %v1370_v59, %v4145_v5  ;;  %v1378_v31 = vmul.f32 %v1370_v59, %v4147_v6  ;;  %s6216_s26 = sld [smem:[#allocation39_spill]] }
 0x25e   : >> { %v1380_v55 = vadd.f32 %v1379_v36, %v1371_v25  ;;  %v1381_v37 = vadd.f32 %v1379_v36, %v1372_v51  ;;  %v1382_v60 = vadd.f32 %v1379_v36, %v1373_v50  ;;  %v1383_v46 = vadd.f32 %v1379_v36, %v1374_v32  ;;  %v6209_v50 = vld [vmem:[#allocation156_spill] sm:$0xff]  ;;  %s6217_s4 = sld [smem:[#allocation40_spill]] }
 0x25f   : >> { %v1384_v43 = vadd.f32 %v1379_v36, %v1375_v42  ;;  %v1385_v38 = vadd.f32 %v1379_v36, %v1376_v44  ;;  %v1386_v39 = vadd.f32 %v1379_v36, %v1377_v14  ;;  %v1387_v35 = vadd.f32 %v1379_v36, %v1378_v31  ;;  %v6210_v42 = vld [vmem:[#allocation157_spill] sm:$0xff]  ;;  %v6211_v14 = vld [vmem:[#allocation158_spill] sm:$0xff]  ;;  %v6212_v31 = vld [vmem:[#allocation159_spill] sm:$0xff] }
 0x260   : >> { %v1389_v27 = vmul.f32 %v1388_v48, %v4149_v10  ;;  %v1390_v40 = vmul.f32 %v1388_v48, %v4151_v11  ;;  %v1391_v57 = vmul.f32 %v1388_v48, %v4153_v12  ;;  %v1392_v45 = vmul.f32 %v1388_v48, %v4155_v13 }
 0x261   : >> { %v1393_v9 = vmul.f32 %v1388_v48, %v4157_v17  ;;  %v1394_v41 = vmul.f32 %v1388_v48, %v4159_v18  ;;  %v1395_v8 = vmul.f32 %v1388_v48, %v4161_v19  ;;  %v1396_v26 = vmul.f32 %v1388_v48, %v4163_v20 }
 0x262   : >> { %v1397_v54 = vadd.f32 %v1389_v27, %v1380_v55  ;;  %v1398_v52 = vadd.f32 %v1390_v40, %v1381_v37  ;;  %v1399_v29 = vadd.f32 %v1391_v57, %v1382_v60  ;;  %v1400_v53 = vadd.f32 %v1392_v45, %v1383_v46 }
 0x263   : >> { %v1401_v33 = vadd.f32 %v1393_v9, %v1384_v43  ;;  %v1402_v16 = vadd.f32 %v1394_v41, %v1385_v38  ;;  %v1403_v47 = vadd.f32 %v1395_v8, %v1386_v39  ;;  %v1404_v59 = vadd.f32 %v1396_v26, %v1387_v35 }
 0x264   : >> { %v1406_v36 = vmul.f32 %v1405_v7, %v4165_v21  ;;  %v1407_v25 = vmul.f32 %v1405_v7, %v4167_v22  ;;  %v1408_v51 = vmul.f32 %v1405_v7, %v6191_v24  ;;  %v1409_v32 = vmul.f32 %v1405_v7, %v6209_v50 }
 0x265   : >> { %v1410_v44 = vmul.f32 %v1405_v7, %v6210_v42  ;;  %v1411_v48 = vmul.f32 %v1405_v7, %v6211_v14  ;;  %v1412_v55 = vmul.f32 %v1405_v7, %v6212_v31  ;;  %v1413_v37 = vmul.f32 %v1405_v7, %v4179_v28 }
 0x266   : >> { %v1414_v60 = vadd.f32 %v1406_v36, %v1397_v54  ;;  %v1415_v46 = vadd.f32 %v1407_v25, %v1398_v52  ;;  %v1416_v43 = vadd.f32 %v1408_v51, %v1399_v29  ;;  %v1417_v38 = vadd.f32 %v1409_v32, %v1400_v53 }
 0x267   : >> { %v1418_v39 = vadd.f32 %v1410_v44, %v1401_v33  ;;  %v1419_v35 = vadd.f32 %v1411_v48, %v1402_v16  ;;  %v1420_v27 = vadd.f32 %v1412_v55, %v1403_v47  ;;  %v1421_v40 = vadd.f32 %v1413_v37, %v1404_v59 }
 0x268   : >> { %v1422_v57 = vmax.f32 %v1414_v60, 0.0  ;;  %v1423_v45 = vmax.f32 %v1415_v46, 0.0  ;;  %v1424_v9 = vmax.f32 %v1416_v43, 0.0  ;;  %v1425_v41 = vmax.f32 %v1417_v38, 0.0 }
 0x269   : >> { %v1426_v8 = vmax.f32 %v1418_v39, 0.0  ;;  %v1427_v26 = vmax.f32 %v1419_v35, 0.0  ;;  %v1428_v31 = vmax.f32 %v1420_v27, 0.0  ;;  %v1429_v7 = vmax.f32 %v1421_v40, 0.0 }
 0x26a   : >> { %v1369_v54 = vadd.f32 %v4741_v56, %v4739_v49  ;;  %v1430_v52 = vstv %s6213_s5  ;;  %v1447_v29 = vstv %s6214_s0  ;;  %v1456_v53 = vstv %s6215_s21  ;;  %s6218_s5 = sld [smem:[#allocation138_spill]] }
 0x26b   : >> { %v1431_v36 = vmul.f32 %v1430_v52, %v1422_v57  ;;  %v1432_v33 = vmul.f32 %v1430_v52, %v1423_v45  ;;  %v1433_v16 = vmul.f32 %v1430_v52, %v1424_v9  ;;  %v1434_v47 = vmul.f32 %v1430_v52, %v1425_v41  ;;  %s6219_s0 = sld [smem:[#allocation41_spill]] }
 0x26c   : >> { %v1435_v59 = vmul.f32 %v1430_v52, %v1426_v8  ;;  %v1436_v25 = vmul.f32 %v1430_v52, %v1427_v26  ;;  %v1437_v51 = vmul.f32 %v1430_v52, %v1428_v31  ;;  %v1465_v32 = vstv %s6216_s26  ;;  %s6221_s21 = sld [smem:[#allocation110_spill]] }
 0x26d   : >> { %v1438_v44 = vmul.f32 %v1430_v52, %v1429_v7  ;;  %v4799_v48 = vadd.f32 %v1431_v36, %v4744_v23  ;;  %v4802_v55 = vadd.f32 %v1432_v33, %v4747_v2  ;;  %v4805_v49 = vadd.f32 %v1433_v16, %v4750_v1  ;;  %s6222_s26 = sld [smem:[#allocation42_spill]] }
 0x26e   : >> { %v4808_v56 = vadd.f32 %v1434_v47, %v4753_v34  ;;  %v4811_v37 = vadd.f32 %v1435_v59, %v4756_v30  ;;  %v4814_v60 = vadd.f32 %v1436_v25, %v4759_v15  ;;  %v4817_v31 = vadd.f32 %v1437_v51, %v4762_v58 }
 0x26f   : >> { %v1448_v23 = vmul.f32 %v1447_v29, %v4133_v61  ;;  %v1449_v2 = vmul.f32 %v1447_v29, %v4135_v62  ;;  %v1450_v46 = vmul.f32 %v1447_v29, %v4137_v63  ;;  %v1451_v1 = vmul.f32 %v1447_v29, %v4139_v0 }
 0x270   : >> { %v1452_v34 = vmul.f32 %v1447_v29, %v4141_v3  ;;  %v1453_v43 = vmul.f32 %v1447_v29, %v4143_v4  ;;  %v1454_v30 = vmul.f32 %v1447_v29, %v4145_v5  ;;  %v1455_v15 = vmul.f32 %v1447_v29, %v4147_v6 }
 0x271   : >> { %v1457_v38 = vadd.f32 %v1456_v53, %v1448_v23  ;;  %v1458_v39 = vadd.f32 %v1456_v53, %v1449_v2  ;;  %v1459_v58 = vadd.f32 %v1456_v53, %v1450_v46  ;;  %v1460_v35 = vadd.f32 %v1456_v53, %v1451_v1 }
 0x272   : >> { %v1461_v27 = vadd.f32 %v1456_v53, %v1452_v34  ;;  %v1462_v40 = vadd.f32 %v1456_v53, %v1453_v43  ;;  %v1463_v57 = vadd.f32 %v1456_v53, %v1454_v30  ;;  %v1464_v45 = vadd.f32 %v1456_v53, %v1455_v15 }
 0x273   : >> { %v1466_v9 = vmul.f32 %v1465_v32, %v4149_v10  ;;  %v1467_v41 = vmul.f32 %v1465_v32, %v4151_v11  ;;  %v1468_v8 = vmul.f32 %v1465_v32, %v4153_v12  ;;  %v1469_v26 = vmul.f32 %v1465_v32, %v4155_v13 }
 0x274   : >> { %v1470_v7 = vmul.f32 %v1465_v32, %v4157_v17  ;;  %v1471_v52 = vmul.f32 %v1465_v32, %v4159_v18  ;;  %v1472_v29 = vmul.f32 %v1465_v32, %v4161_v19  ;;  %v1473_v36 = vmul.f32 %v1465_v32, %v4163_v20 }
 0x275   : >> { %v1446_v53 = vadd.f32 %v1438_v44, %v1369_v54  ;;  %v1474_v33 = vadd.f32 %v1466_v9, %v1457_v38  ;;  %v1475_v16 = vadd.f32 %v1467_v41, %v1458_v39  ;;  %v1476_v47 = vadd.f32 %v1468_v8, %v1459_v58  ;;  %v6220_v38 = vld [vmem:[#allocation159_spill] sm:$0xff] }
 0x276   : >> { %v1477_v59 = vadd.f32 %v1469_v26, %v1460_v35  ;;  %v1478_v25 = vadd.f32 %v1470_v7, %v1461_v27  ;;  %v1479_v51 = vadd.f32 %v1471_v52, %v1462_v40  ;;  %v1480_v23 = vadd.f32 %v1472_v29, %v1463_v57 }
 0x277   : >> { %v1481_v2 = vadd.f32 %v1473_v36, %v1464_v45  ;;  %v1482_v46 = vstv %s6217_s4  ;;  %v1507_v1 = vstv %s6218_s5  ;;  %v1524_v34 = vstv %s6219_s0  ;;  %s6223_s4 = sld [smem:[#allocation43_spill]] }
 0x278   : >> { %v1483_v43 = vmul.f32 %v1482_v46, %v4165_v21  ;;  %v1484_v30 = vmul.f32 %v1482_v46, %v4167_v22  ;;  %v1485_v15 = vmul.f32 %v1482_v46, %v6191_v24  ;;  %v1486_v32 = vmul.f32 %v1482_v46, %v6209_v50  ;;  %s6224_s5 = sld [smem:[#allocation139_spill]] }
 0x279   : >> { %v1487_v54 = vmul.f32 %v1482_v46, %v6210_v42  ;;  %v1488_v44 = vmul.f32 %v1482_v46, %v6211_v14  ;;  %v1489_v39 = vmul.f32 %v1482_v46, %v6220_v38  ;;  %v1490_v58 = vmul.f32 %v1482_v46, %v4179_v28  ;;  %s6231_s0 = sld [smem:[#allocation44_spill]] }
 0x27a   : >> { %v1491_v35 = vadd.f32 %v1483_v43, %v1474_v33  ;;  %v1492_v27 = vadd.f32 %v1484_v30, %v1475_v16  ;;  %v1493_v40 = vadd.f32 %v1485_v15, %v1476_v47  ;;  %v1494_v57 = vadd.f32 %v1486_v32, %v1477_v59 }
 0x27b   : >> { %v1495_v45 = vadd.f32 %v1487_v54, %v1478_v25  ;;  %v1496_v9 = vadd.f32 %v1488_v44, %v1479_v51  ;;  %v1497_v41 = vadd.f32 %v1489_v39, %v1480_v23  ;;  %v1498_v8 = vadd.f32 %v1490_v58, %v1481_v2 }
 0x27c   : >> { %v1499_v26 = vmax.f32 %v1491_v35, 0.0  ;;  %v1500_v7 = vmax.f32 %v1492_v27, 0.0  ;;  %v1501_v52 = vmax.f32 %v1493_v40, 0.0  ;;  %v1502_v29 = vmax.f32 %v1494_v57, 0.0 }
 0x27d   : >> { %v1503_v36 = vmax.f32 %v1495_v45, 0.0  ;;  %v1504_v42 = vmax.f32 %v1496_v9, 0.0  ;;  %v1505_v14 = vmax.f32 %v1497_v41, 0.0  ;;  %v1506_v50 = vmax.f32 %v1498_v8, 0.0 }
 0x27e   : >> { %v1508_v38 = vmul.f32 %v1507_v1, %v1499_v26  ;;  %v1509_v24 = vmul.f32 %v1507_v1, %v1500_v7  ;;  %v1510_v46 = vmul.f32 %v1507_v1, %v1501_v52  ;;  %v1511_v33 = vmul.f32 %v1507_v1, %v1502_v29 }
 0x27f   : >> { %v1512_v16 = vmul.f32 %v1507_v1, %v1503_v36  ;;  %v1513_v47 = vmul.f32 %v1507_v1, %v1504_v42  ;;  %v1514_v59 = vmul.f32 %v1507_v1, %v1505_v14  ;;  %v1533_v25 = vstv %s6221_s21  ;;  %s6232_s21 = sld [smem:[#allocation111_spill]] }
 0x280   : >> { %v1515_v51 = vmul.f32 %v1507_v1, %v1506_v50  ;;  %v4848_v23 = vadd.f32 %v1508_v38, %v4799_v48  ;;  %v4851_v2 = vadd.f32 %v1509_v24, %v4802_v55  ;;  %v4854_v43 = vadd.f32 %v1510_v46, %v4805_v49 }
 0x281   : >> { %v4857_v30 = vadd.f32 %v1511_v33, %v4808_v56  ;;  %v4860_v15 = vadd.f32 %v1512_v16, %v4811_v37  ;;  %v4863_v42 = vadd.f32 %v1513_v47, %v4814_v60  ;;  %v4866_v50 = vadd.f32 %v1514_v59, %v4817_v31 }
 0x282   : >> { %v1525_v14 = vmul.f32 %v1524_v34, %v4133_v61  ;;  %v1526_v24 = vmul.f32 %v1524_v34, %v4135_v62  ;;  %v1527_v48 = vmul.f32 %v1524_v34, %v4137_v63  ;;  %v1528_v55 = vmul.f32 %v1524_v34, %v4139_v0 }
 0x283   : >> { %v1529_v49 = vmul.f32 %v1524_v34, %v4141_v3  ;;  %v1530_v56 = vmul.f32 %v1524_v34, %v4143_v4  ;;  %v1531_v37 = vmul.f32 %v1524_v34, %v4145_v5  ;;  %v1532_v60 = vmul.f32 %v1524_v34, %v4147_v6 }
 0x284   : >> { %v4876_v31 = vadd.f32 %v1515_v51, %v1446_v53  ;;  %v1534_v1 = vadd.f32 %v1533_v25, %v1525_v14  ;;  %v1535_v32 = vadd.f32 %v1533_v25, %v1526_v24  ;;  %v1536_v54 = vadd.f32 %v1533_v25, %v1527_v48  ;;  %v6226_v14 = vld [vmem:[#allocation155_spill] sm:$0xff]  ;;  %v6227_v48 = vld [vmem:[#allocation156_spill] sm:$0xff] }
 0x285   : >> { %v1537_v44 = vadd.f32 %v1533_v25, %v1528_v55  ;;  %v1538_v38 = vadd.f32 %v1533_v25, %v1529_v49  ;;  %v1539_v39 = vadd.f32 %v1533_v25, %v1530_v56  ;;  %v1540_v58 = vadd.f32 %v1533_v25, %v1531_v37  ;;  %v6228_v49 = vld [vmem:[#allocation157_spill] sm:$0xff]  ;;  %v6229_v37 = vld [vmem:[#allocation158_spill] sm:$0xff] }
 0x286   : >> { %6225 = vst [vmem:[#allocation160_spill] sm:$0xff] %v4876_v31  ;;  %v1541_v35 = vadd.f32 %v1533_v25, %v1532_v60  ;;  %v1542_v27 = vstv %s6222_s26  ;;  %v1559_v40 = vstv %s6223_s4  ;;  %v1584_v57 = vstv %s6224_s5  ;;  %s6233_s26 = sld [smem:[#allocation45_spill]] }
 0x287   : >> { %v1543_v45 = vmul.f32 %v1542_v27, %v4149_v10  ;;  %v1544_v9 = vmul.f32 %v1542_v27, %v4151_v11  ;;  %v1545_v41 = vmul.f32 %v1542_v27, %v4153_v12  ;;  %v1546_v53 = vmul.f32 %v1542_v27, %v4155_v13  ;;  %s6234_s4 = sld [smem:[#allocation46_spill]] }
 0x288   : >> { %v1547_v34 = vmul.f32 %v1542_v27, %v4157_v17  ;;  %v1548_v8 = vmul.f32 %v1542_v27, %v4159_v18  ;;  %v1549_v26 = vmul.f32 %v1542_v27, %v4161_v19  ;;  %v1550_v7 = vmul.f32 %v1542_v27, %v4163_v20  ;;  %s6235_s5 = sld [smem:[#allocation140_spill]] }
 0x289   : >> { %v1551_v52 = vadd.f32 %v1543_v45, %v1534_v1  ;;  %v1552_v29 = vadd.f32 %v1544_v9, %v1535_v32  ;;  %v1553_v36 = vadd.f32 %v1545_v41, %v1536_v54  ;;  %v1554_v46 = vadd.f32 %v1546_v53, %v1537_v44  ;;  %v6230_v1 = vld [vmem:[#allocation159_spill] sm:$0xff] }
 0x28a   : >> { %v1555_v33 = vadd.f32 %v1547_v34, %v1538_v38  ;;  %v1556_v16 = vadd.f32 %v1548_v8, %v1539_v39  ;;  %v1557_v47 = vadd.f32 %v1549_v26, %v1540_v58  ;;  %v1558_v59 = vadd.f32 %v1550_v7, %v1541_v35 }
 0x28b   : >> { %v1560_v25 = vmul.f32 %v1559_v40, %v4165_v21  ;;  %v1561_v51 = vmul.f32 %v1559_v40, %v4167_v22  ;;  %v1562_v24 = vmul.f32 %v1559_v40, %v6226_v14  ;;  %v1563_v55 = vmul.f32 %v1559_v40, %v6227_v48 }
 0x28c   : >> { %v1564_v56 = vmul.f32 %v1559_v40, %v6228_v49  ;;  %v1565_v60 = vmul.f32 %v1559_v40, %v6229_v37  ;;  %v1566_v32 = vmul.f32 %v1559_v40, %v6230_v1  ;;  %v1567_v54 = vmul.f32 %v1559_v40, %v4179_v28 }
 0x28d   : >> { %v1568_v44 = vadd.f32 %v1560_v25, %v1551_v52  ;;  %v1569_v38 = vadd.f32 %v1561_v51, %v1552_v29  ;;  %v1570_v39 = vadd.f32 %v1562_v24, %v1553_v36  ;;  %v1571_v58 = vadd.f32 %v1563_v55, %v1554_v46 }
 0x28e   : >> { %v1572_v35 = vadd.f32 %v1564_v56, %v1555_v33  ;;  %v1573_v27 = vadd.f32 %v1565_v60, %v1556_v16  ;;  %v1574_v45 = vadd.f32 %v1566_v32, %v1557_v47  ;;  %v1575_v9 = vadd.f32 %v1567_v54, %v1558_v59 }
 0x28f   : >> { %v1576_v41 = vmax.f32 %v1568_v44, 0.0  ;;  %v1577_v53 = vmax.f32 %v1569_v38, 0.0  ;;  %v1578_v34 = vmax.f32 %v1570_v39, 0.0  ;;  %v1579_v8 = vmax.f32 %v1571_v58, 0.0 }
 0x290   : >> { %v1580_v26 = vmax.f32 %v1572_v35, 0.0  ;;  %v1581_v7 = vmax.f32 %v1573_v27, 0.0  ;;  %v1582_v31 = vmax.f32 %v1574_v45, 0.0  ;;  %v1583_v37 = vmax.f32 %v1575_v9, 0.0 }
 0x291   : >> { %v1585_v1 = vmul.f32 %v1584_v57, %v1576_v41  ;;  %v1586_v49 = vmul.f32 %v1584_v57, %v1577_v53  ;;  %v1587_v40 = vmul.f32 %v1584_v57, %v1578_v34  ;;  %v1588_v52 = vmul.f32 %v1584_v57, %v1579_v8 }
 0x292   : >> { %v1589_v29 = vmul.f32 %v1584_v57, %v1580_v26  ;;  %v1590_v36 = vmul.f32 %v1584_v57, %v1581_v7  ;;  %v1591_v46 = vmul.f32 %v1584_v57, %v1582_v31  ;;  %v1601_v33 = vstv %s6231_s0  ;;  %s6239_s0 = sld [smem:[#allocation47_spill]] }
 0x293   : >> { %v4898_v16 = vmul.f32 %v1584_v57, %v1583_v37  ;;  %v4901_v47 = vadd.f32 %v1585_v1, %v4848_v23  ;;  %v4904_v59 = vadd.f32 %v1586_v49, %v4851_v2  ;;  %v4907_v25 = vadd.f32 %v1587_v40, %v4854_v43 }
 0x294   : >> { %v4910_v51 = vadd.f32 %v1588_v52, %v4857_v30  ;;  %v4913_v31 = vadd.f32 %v1589_v29, %v4860_v15  ;;  %v4916_v57 = vadd.f32 %v1590_v36, %v4863_v42  ;;  %v4919_v23 = vadd.f32 %v1591_v46, %v4866_v50 }
 0x295   : >> { %v1602_v2 = vmul.f32 %v1601_v33, %v4133_v61  ;;  %v1603_v24 = vmul.f32 %v1601_v33, %v4135_v62  ;;  %v1604_v43 = vmul.f32 %v1601_v33, %v4137_v63  ;;  %v1605_v55 = vmul.f32 %v1601_v33, %v4139_v0 }
 0x296   : >> { %v1606_v30 = vmul.f32 %v1601_v33, %v4141_v3  ;;  %v1607_v49 = vmul.f32 %v1601_v33, %v4143_v4  ;;  %v1608_v15 = vmul.f32 %v1601_v33, %v4145_v5  ;;  %v1609_v42 = vmul.f32 %v1601_v33, %v4147_v6 }
 0x297   : >> { %v1610_v56 = vstv %s6232_s21  ;;  %v1619_v37 = vstv %s6233_s26  ;;  %v1636_v50 = vstv %s6234_s4  ;;  %v1661_v60 = vstv %s6235_s5  ;;  %s6240_s21 = sld [smem:[#allocation112_spill]] }
 0x298   : >> { %v1611_v1 = vadd.f32 %v1610_v56, %v1602_v2  ;;  %v1612_v32 = vadd.f32 %v1610_v56, %v1603_v24  ;;  %v1613_v54 = vadd.f32 %v1610_v56, %v1604_v43  ;;  %v1614_v44 = vadd.f32 %v1610_v56, %v1605_v55  ;;  %s6241_s26 = sld [smem:[#allocation48_spill]] }
 0x299   : >> { %v1615_v38 = vadd.f32 %v1610_v56, %v1606_v30  ;;  %v1616_v39 = vadd.f32 %v1610_v56, %v1607_v49  ;;  %v1617_v58 = vadd.f32 %v1610_v56, %v1608_v15  ;;  %v1618_v35 = vadd.f32 %v1610_v56, %v1609_v42  ;;  %v6236_v49 = vld [vmem:[#allocation157_spill] sm:$0xff]  ;;  %v6237_v42 = vld [vmem:[#allocation158_spill] sm:$0xff]  ;;  %s6243_s4 = sld [smem:[#allocation49_spill]] }
 0x29a   : >> { %v1620_v27 = vmul.f32 %v1619_v37, %v4149_v10  ;;  %v1621_v45 = vmul.f32 %v1619_v37, %v4151_v11  ;;  %v1622_v9 = vmul.f32 %v1619_v37, %v4153_v12  ;;  %v1623_v41 = vmul.f32 %v1619_v37, %v4155_v13  ;;  %s6248_s5 = sld [smem:[#allocation141_spill]] }
 0x29b   : >> { %v1624_v53 = vmul.f32 %v1619_v37, %v4157_v17  ;;  %v1625_v34 = vmul.f32 %v1619_v37, %v4159_v18  ;;  %v1626_v8 = vmul.f32 %v1619_v37, %v4161_v19  ;;  %v1627_v26 = vmul.f32 %v1619_v37, %v4163_v20  ;;  %v6238_v37 = vld [vmem:[#allocation159_spill] sm:$0xff] }
 0x29c   : >> { %v1628_v7 = vadd.f32 %v1620_v27, %v1611_v1  ;;  %v1629_v40 = vadd.f32 %v1621_v45, %v1612_v32  ;;  %v1630_v52 = vadd.f32 %v1622_v9, %v1613_v54  ;;  %v1631_v29 = vadd.f32 %v1623_v41, %v1614_v44 }
 0x29d   : >> { %v1632_v36 = vadd.f32 %v1624_v53, %v1615_v38  ;;  %v1633_v46 = vadd.f32 %v1625_v34, %v1616_v39  ;;  %v1634_v33 = vadd.f32 %v1626_v8, %v1617_v58  ;;  %v1635_v2 = vadd.f32 %v1627_v26, %v1618_v35 }
 0x29e   : >> { %v1637_v24 = vmul.f32 %v1636_v50, %v4165_v21  ;;  %v1638_v43 = vmul.f32 %v1636_v50, %v4167_v22  ;;  %v1639_v55 = vmul.f32 %v1636_v50, %v6226_v14  ;;  %v1640_v30 = vmul.f32 %v1636_v50, %v6227_v48 }
 0x29f   : >> { %v1641_v15 = vmul.f32 %v1636_v50, %v6236_v49  ;;  %v1642_v56 = vmul.f32 %v1636_v50, %v6237_v42  ;;  %v1643_v1 = vmul.f32 %v1636_v50, %v6238_v37  ;;  %v1644_v32 = vmul.f32 %v1636_v50, %v4179_v28 }
 0x2a0   : >> { %v1645_v54 = vadd.f32 %v1637_v24, %v1628_v7  ;;  %v1646_v44 = vadd.f32 %v1638_v43, %v1629_v40  ;;  %v1647_v38 = vadd.f32 %v1639_v55, %v1630_v52  ;;  %v1648_v39 = vadd.f32 %v1640_v30, %v1631_v29  ;;  %v6242_v40 = vld [vmem:[#allocation160_spill] sm:$0xff] }
 0x2a1   : >> { %v1649_v58 = vadd.f32 %v1641_v15, %v1632_v36  ;;  %v1650_v35 = vadd.f32 %v1642_v56, %v1633_v46  ;;  %v1651_v27 = vadd.f32 %v1643_v1, %v1634_v33  ;;  %v1652_v45 = vadd.f32 %v1644_v32, %v1635_v2 }
 0x2a2   : >> { %v1653_v9 = vmax.f32 %v1645_v54, 0.0  ;;  %v1654_v41 = vmax.f32 %v1646_v44, 0.0  ;;  %v1655_v53 = vmax.f32 %v1647_v38, 0.0  ;;  %v1656_v34 = vmax.f32 %v1648_v39, 0.0 }
 0x2a3   : >> { %v1657_v8 = vmax.f32 %v1649_v58, 0.0  ;;  %v1658_v26 = vmax.f32 %v1650_v35, 0.0  ;;  %v1659_v49 = vmax.f32 %v1651_v27, 0.0  ;;  %v1660_v42 = vmax.f32 %v1652_v45, 0.0 }
 0x2a4   : >> { %v1662_v48 = vmul.f32 %v1661_v60, %v1653_v9  ;;  %v1663_v37 = vmul.f32 %v1661_v60, %v1654_v41  ;;  %v1664_v50 = vmul.f32 %v1661_v60, %v1655_v53  ;;  %v1665_v7 = vmul.f32 %v1661_v60, %v1656_v34 }
 0x2a5   : >> { %v4951_v52 = vadd.f32 %v4898_v16, %v6242_v40  ;;  %v1666_v29 = vmul.f32 %v1661_v60, %v1657_v8  ;;  %v1667_v36 = vmul.f32 %v1661_v60, %v1658_v26  ;;  %v1668_v46 = vmul.f32 %v1661_v60, %v1659_v49 }
 0x2a6   : >> { %v4953_v33 = vmul.f32 %v1661_v60, %v1660_v42  ;;  %v4956_v2 = vadd.f32 %v1662_v48, %v4901_v47  ;;  %v4959_v24 = vadd.f32 %v1663_v37, %v4904_v59  ;;  %v4962_v43 = vadd.f32 %v1664_v50, %v4907_v25 }
 0x2a7   : >> { %v4965_v55 = vadd.f32 %v1665_v7, %v4910_v51  ;;  %v4968_v16 = vadd.f32 %v1666_v29, %v4913_v31  ;;  %v4971_v30 = vadd.f32 %v1667_v36, %v4916_v57  ;;  %v4974_v60 = vadd.f32 %v1668_v46, %v4919_v23 }
 0x2a8   : >> { %v1678_v48 = vstv %s6239_s0  ;;  %v1687_v47 = vstv %s6240_s21  ;;  %v1696_v49 = vstv %s6241_s26  ;;  %v1713_v59 = vstv %s6243_s4  ;;  %s6249_s0 = sld [smem:[#allocation50_spill]] }
 0x2a9   : >> { %v1679_v15 = vmul.f32 %v1678_v48, %v4133_v61  ;;  %v1680_v25 = vmul.f32 %v1678_v48, %v4135_v62  ;;  %v1681_v51 = vmul.f32 %v1678_v48, %v4137_v63  ;;  %v1682_v42 = vmul.f32 %v1678_v48, %v4139_v0  ;;  %s6250_s21 = sld [smem:[#allocation113_spill]] }
 0x2aa   : >> { %v1683_v31 = vmul.f32 %v1678_v48, %v4141_v3  ;;  %v1684_v57 = vmul.f32 %v1678_v48, %v4143_v4  ;;  %v1685_v56 = vmul.f32 %v1678_v48, %v4145_v5  ;;  %v1686_v23 = vmul.f32 %v1678_v48, %v4147_v6  ;;  %s6251_s26 = sld [smem:[#allocation51_spill]] }
 0x2ab   : >> { %v1688_v37 = vadd.f32 %v1687_v47, %v1679_v15  ;;  %v1689_v1 = vadd.f32 %v1687_v47, %v1680_v25  ;;  %v1690_v32 = vadd.f32 %v1687_v47, %v1681_v51  ;;  %v1691_v54 = vadd.f32 %v1687_v47, %v1682_v42  ;;  %v6244_v51 = vld [vmem:[#allocation156_spill] sm:$0xff]  ;;  %s6252_s4 = sld [smem:[#allocation52_spill]] }
 0x2ac   : >> { %v1692_v44 = vadd.f32 %v1687_v47, %v1683_v31  ;;  %v1693_v38 = vadd.f32 %v1687_v47, %v1684_v57  ;;  %v1694_v39 = vadd.f32 %v1687_v47, %v1685_v56  ;;  %v1695_v58 = vadd.f32 %v1687_v47, %v1686_v23  ;;  %v6245_v31 = vld [vmem:[#allocation157_spill] sm:$0xff]  ;;  %v6246_v56 = vld [vmem:[#allocation158_spill] sm:$0xff]  ;;  %v6247_v23 = vld [vmem:[#allocation159_spill] sm:$0xff] }
 0x2ad   : >> { %v1697_v35 = vmul.f32 %v1696_v49, %v4149_v10  ;;  %v1698_v27 = vmul.f32 %v1696_v49, %v4151_v11  ;;  %v1699_v45 = vmul.f32 %v1696_v49, %v4153_v12  ;;  %v1700_v9 = vmul.f32 %v1696_v49, %v4155_v13 }
 0x2ae   : >> { %v1701_v41 = vmul.f32 %v1696_v49, %v4157_v17  ;;  %v1702_v53 = vmul.f32 %v1696_v49, %v4159_v18  ;;  %v1703_v34 = vmul.f32 %v1696_v49, %v4161_v19  ;;  %v1704_v8 = vmul.f32 %v1696_v49, %v4163_v20 }
 0x2af   : >> { %v1705_v26 = vadd.f32 %v1697_v35, %v1688_v37  ;;  %v1706_v50 = vadd.f32 %v1698_v27, %v1689_v1  ;;  %v1707_v7 = vadd.f32 %v1699_v45, %v1690_v32  ;;  %v1708_v40 = vadd.f32 %v1700_v9, %v1691_v54 }
 0x2b0   : >> { %v1709_v29 = vadd.f32 %v1701_v41, %v1692_v44  ;;  %v1710_v36 = vadd.f32 %v1702_v53, %v1693_v38  ;;  %v1711_v46 = vadd.f32 %v1703_v34, %v1694_v39  ;;  %v1712_v48 = vadd.f32 %v1704_v8, %v1695_v58 }
 0x2b1   : >> { %v1714_v47 = vmul.f32 %v1713_v59, %v4165_v21  ;;  %v1715_v15 = vmul.f32 %v1713_v59, %v4167_v22  ;;  %v1716_v25 = vmul.f32 %v1713_v59, %v6226_v14  ;;  %v1717_v42 = vmul.f32 %v1713_v59, %v6244_v51 }
 0x2b2   : >> { %v1718_v57 = vmul.f32 %v1713_v59, %v6245_v31  ;;  %v1719_v49 = vmul.f32 %v1713_v59, %v6246_v56  ;;  %v1720_v37 = vmul.f32 %v1713_v59, %v6247_v23  ;;  %v1721_v1 = vmul.f32 %v1713_v59, %v4179_v28 }
 0x2b3   : >> { %v1722_v32 = vadd.f32 %v1714_v47, %v1705_v26  ;;  %v1723_v54 = vadd.f32 %v1715_v15, %v1706_v50  ;;  %v1724_v44 = vadd.f32 %v1716_v25, %v1707_v7  ;;  %v1725_v38 = vadd.f32 %v1717_v42, %v1708_v40 }
 0x2b4   : >> { %v1726_v39 = vadd.f32 %v1718_v57, %v1709_v29  ;;  %v1727_v58 = vadd.f32 %v1719_v49, %v1710_v36  ;;  %v1728_v35 = vadd.f32 %v1720_v37, %v1711_v46  ;;  %v1729_v27 = vadd.f32 %v1721_v1, %v1712_v48 }
 0x2b5   : >> { %v1730_v45 = vmax.f32 %v1722_v32, 0.0  ;;  %v1731_v9 = vmax.f32 %v1723_v54, 0.0  ;;  %v1732_v41 = vmax.f32 %v1724_v44, 0.0  ;;  %v1733_v53 = vmax.f32 %v1725_v38, 0.0 }
 0x2b6   : >> { %v1734_v34 = vmax.f32 %v1726_v39, 0.0  ;;  %v1735_v8 = vmax.f32 %v1727_v58, 0.0  ;;  %v1736_v23 = vmax.f32 %v1728_v35, 0.0  ;;  %v1737_v59 = vmax.f32 %v1729_v27, 0.0 }
 0x2b7   : >> { %v1677_v26 = vadd.f32 %v4953_v33, %v4951_v52  ;;  %v1738_v50 = vstv %s6248_s5  ;;  %v1755_v7 = vstv %s6249_s0  ;;  %v1764_v40 = vstv %s6250_s21  ;;  %s6253_s5 = sld [smem:[#allocation142_spill]] }
 0x2b8   : >> { %v1739_v47 = vmul.f32 %v1738_v50, %v1730_v45  ;;  %v1740_v29 = vmul.f32 %v1738_v50, %v1731_v9  ;;  %v1741_v36 = vmul.f32 %v1738_v50, %v1732_v41  ;;  %v1742_v46 = vmul.f32 %v1738_v50, %v1733_v53  ;;  %s6254_s0 = sld [smem:[#allocation53_spill]] }
 0x2b9   : >> { %v1743_v48 = vmul.f32 %v1738_v50, %v1734_v34  ;;  %v1744_v15 = vmul.f32 %v1738_v50, %v1735_v8  ;;  %v1745_v25 = vmul.f32 %v1738_v50, %v1736_v23  ;;  %v1773_v42 = vstv %s6251_s26  ;;  %s6256_s21 = sld [smem:[#allocation114_spill]] }
 0x2ba   : >> { %v1746_v57 = vmul.f32 %v1738_v50, %v1737_v59  ;;  %v5011_v49 = vadd.f32 %v1739_v47, %v4956_v2  ;;  %v5014_v37 = vadd.f32 %v1740_v29, %v4959_v24  ;;  %v5017_v52 = vadd.f32 %v1741_v36, %v4962_v43  ;;  %s6257_s26 = sld [smem:[#allocation54_spill]] }
 0x2bb   : >> { %v5020_v33 = vadd.f32 %v1742_v46, %v4965_v55  ;;  %v5023_v1 = vadd.f32 %v1743_v48, %v4968_v16  ;;  %v5026_v32 = vadd.f32 %v1744_v15, %v4971_v30  ;;  %v5029_v23 = vadd.f32 %v1745_v25, %v4974_v60 }
 0x2bc   : >> { %v1756_v2 = vmul.f32 %v1755_v7, %v4133_v61  ;;  %v1757_v24 = vmul.f32 %v1755_v7, %v4135_v62  ;;  %v1758_v54 = vmul.f32 %v1755_v7, %v4137_v63  ;;  %v1759_v43 = vmul.f32 %v1755_v7, %v4139_v0 }
 0x2bd   : >> { %v1760_v55 = vmul.f32 %v1755_v7, %v4141_v3  ;;  %v1761_v44 = vmul.f32 %v1755_v7, %v4143_v4  ;;  %v1762_v16 = vmul.f32 %v1755_v7, %v4145_v5  ;;  %v1763_v30 = vmul.f32 %v1755_v7, %v4147_v6 }
 0x2be   : >> { %v1765_v38 = vadd.f32 %v1764_v40, %v1756_v2  ;;  %v1766_v39 = vadd.f32 %v1764_v40, %v1757_v24  ;;  %v1767_v60 = vadd.f32 %v1764_v40, %v1758_v54  ;;  %v1768_v58 = vadd.f32 %v1764_v40, %v1759_v43 }
 0x2bf   : >> { %v1769_v35 = vadd.f32 %v1764_v40, %v1760_v55  ;;  %v1770_v27 = vadd.f32 %v1764_v40, %v1761_v44  ;;  %v1771_v45 = vadd.f32 %v1764_v40, %v1762_v16  ;;  %v1772_v9 = vadd.f32 %v1764_v40, %v1763_v30 }
 0x2c0   : >> { %v1774_v41 = vmul.f32 %v1773_v42, %v4149_v10  ;;  %v1775_v53 = vmul.f32 %v1773_v42, %v4151_v11  ;;  %v1776_v34 = vmul.f32 %v1773_v42, %v4153_v12  ;;  %v1777_v8 = vmul.f32 %v1773_v42, %v4155_v13 }
 0x2c1   : >> { %v1778_v59 = vmul.f32 %v1773_v42, %v4157_v17  ;;  %v1779_v50 = vmul.f32 %v1773_v42, %v4159_v18  ;;  %v1780_v7 = vmul.f32 %v1773_v42, %v4161_v19  ;;  %v1781_v47 = vmul.f32 %v1773_v42, %v4163_v20 }
 0x2c2   : >> { %v1754_v40 = vadd.f32 %v1746_v57, %v1677_v26  ;;  %v1782_v29 = vadd.f32 %v1774_v41, %v1765_v38  ;;  %v1783_v36 = vadd.f32 %v1775_v53, %v1766_v39  ;;  %v1784_v46 = vadd.f32 %v1776_v34, %v1767_v60  ;;  %v6255_v38 = vld [vmem:[#allocation159_spill] sm:$0xff] }
 0x2c3   : >> { %v1785_v48 = vadd.f32 %v1777_v8, %v1768_v58  ;;  %v1786_v15 = vadd.f32 %v1778_v59, %v1769_v35  ;;  %v1787_v25 = vadd.f32 %v1779_v50, %v1770_v27  ;;  %v1788_v2 = vadd.f32 %v1780_v7, %v1771_v45 }
 0x2c4   : >> { %v1789_v24 = vadd.f32 %v1781_v47, %v1772_v9  ;;  %v1790_v54 = vstv %s6252_s4  ;;  %v1815_v43 = vstv %s6253_s5  ;;  %v1832_v55 = vstv %s6254_s0  ;;  %s6258_s4 = sld [smem:[#allocation55_spill]] }
 0x2c5   : >> { %v1791_v44 = vmul.f32 %v1790_v54, %v4165_v21  ;;  %v1792_v16 = vmul.f32 %v1790_v54, %v4167_v22  ;;  %v1793_v30 = vmul.f32 %v1790_v54, %v6226_v14  ;;  %v1794_v42 = vmul.f32 %v1790_v54, %v6244_v51  ;;  %s6259_s5 = sld [smem:[#allocation143_spill]] }
 0x2c6   : >> { %v1795_v26 = vmul.f32 %v1790_v54, %v6245_v31  ;;  %v1796_v57 = vmul.f32 %v1790_v54, %v6246_v56  ;;  %v1797_v39 = vmul.f32 %v1790_v54, %v6255_v38  ;;  %v1798_v60 = vmul.f32 %v1790_v54, %v4179_v28  ;;  %s6266_s0 = sld [smem:[#allocation56_spill]] }
 0x2c7   : >> { %v1799_v58 = vadd.f32 %v1791_v44, %v1782_v29  ;;  %v1800_v35 = vadd.f32 %v1792_v16, %v1783_v36  ;;  %v1801_v27 = vadd.f32 %v1793_v30, %v1784_v46  ;;  %v1802_v45 = vadd.f32 %v1794_v42, %v1785_v48 }
 0x2c8   : >> { %v1803_v9 = vadd.f32 %v1795_v26, %v1786_v15  ;;  %v1804_v41 = vadd.f32 %v1796_v57, %v1787_v25  ;;  %v1805_v53 = vadd.f32 %v1797_v39, %v1788_v2  ;;  %v1806_v34 = vadd.f32 %v1798_v60, %v1789_v24 }
 0x2c9   : >> { %v1807_v8 = vmax.f32 %v1799_v58, 0.0  ;;  %v1808_v59 = vmax.f32 %v1800_v35, 0.0  ;;  %v1809_v50 = vmax.f32 %v1801_v27, 0.0  ;;  %v1810_v7 = vmax.f32 %v1802_v45, 0.0 }
 0x2ca   : >> { %v1811_v47 = vmax.f32 %v1803_v9, 0.0  ;;  %v1812_v31 = vmax.f32 %v1804_v41, 0.0  ;;  %v1813_v56 = vmax.f32 %v1805_v53, 0.0  ;;  %v1814_v51 = vmax.f32 %v1806_v34, 0.0 }
 0x2cb   : >> { %v1816_v38 = vmul.f32 %v1815_v43, %v1807_v8  ;;  %v1817_v14 = vmul.f32 %v1815_v43, %v1808_v59  ;;  %v1818_v54 = vmul.f32 %v1815_v43, %v1809_v50  ;;  %v1819_v29 = vmul.f32 %v1815_v43, %v1810_v7 }
 0x2cc   : >> { %v1820_v36 = vmul.f32 %v1815_v43, %v1811_v47  ;;  %v1821_v46 = vmul.f32 %v1815_v43, %v1812_v31  ;;  %v1822_v48 = vmul.f32 %v1815_v43, %v1813_v56  ;;  %v1841_v15 = vstv %s6256_s21  ;;  %s6267_s21 = sld [smem:[#allocation115_spill]] }
 0x2cd   : >> { %v1823_v25 = vmul.f32 %v1815_v43, %v1814_v51  ;;  %v5060_v2 = vadd.f32 %v1816_v38, %v5011_v49  ;;  %v5063_v24 = vadd.f32 %v1817_v14, %v5014_v37  ;;  %v5066_v44 = vadd.f32 %v1818_v54, %v5017_v52 }
 0x2ce   : >> { %v5069_v16 = vadd.f32 %v1819_v29, %v5020_v33  ;;  %v5072_v30 = vadd.f32 %v1820_v36, %v5023_v1  ;;  %v5075_v31 = vadd.f32 %v1821_v46, %v5026_v32  ;;  %v5078_v51 = vadd.f32 %v1822_v48, %v5029_v23 }
 0x2cf   : >> { %v1833_v56 = vmul.f32 %v1832_v55, %v4133_v61  ;;  %v1834_v14 = vmul.f32 %v1832_v55, %v4135_v62  ;;  %v1835_v49 = vmul.f32 %v1832_v55, %v4137_v63  ;;  %v1836_v37 = vmul.f32 %v1832_v55, %v4139_v0 }
 0x2d0   : >> { %v1837_v52 = vmul.f32 %v1832_v55, %v4141_v3  ;;  %v1838_v33 = vmul.f32 %v1832_v55, %v4143_v4  ;;  %v1839_v1 = vmul.f32 %v1832_v55, %v4145_v5  ;;  %v1840_v32 = vmul.f32 %v1832_v55, %v4147_v6 }
 0x2d1   : >> { %v5088_v23 = vadd.f32 %v1823_v25, %v1754_v40  ;;  %v1842_v43 = vadd.f32 %v1841_v15, %v1833_v56  ;;  %v1843_v42 = vadd.f32 %v1841_v15, %v1834_v14  ;;  %v1844_v26 = vadd.f32 %v1841_v15, %v1835_v49  ;;  %v6261_v56 = vld [vmem:[#allocation155_spill] sm:$0xff]  ;;  %v6262_v49 = vld [vmem:[#allocation156_spill] sm:$0xff] }
 0x2d2   : >> { %v1845_v57 = vadd.f32 %v1841_v15, %v1836_v37  ;;  %v1846_v38 = vadd.f32 %v1841_v15, %v1837_v52  ;;  %v1847_v39 = vadd.f32 %v1841_v15, %v1838_v33  ;;  %v1848_v60 = vadd.f32 %v1841_v15, %v1839_v1  ;;  %v6263_v52 = vld [vmem:[#allocation157_spill] sm:$0xff]  ;;  %v6264_v1 = vld [vmem:[#allocation158_spill] sm:$0xff] }
 0x2d3   : >> { %6260 = vst [vmem:[#allocation160_spill] sm:$0xff] %v5088_v23  ;;  %v1849_v58 = vadd.f32 %v1841_v15, %v1840_v32  ;;  %v1850_v35 = vstv %s6257_s26  ;;  %v1867_v27 = vstv %s6258_s4  ;;  %v1892_v45 = vstv %s6259_s5  ;;  %s6268_s26 = sld [smem:[#allocation57_spill]] }
 0x2d4   : >> { %v1851_v9 = vmul.f32 %v1850_v35, %v4149_v10  ;;  %v1852_v41 = vmul.f32 %v1850_v35, %v4151_v11  ;;  %v1853_v53 = vmul.f32 %v1850_v35, %v4153_v12  ;;  %v1854_v40 = vmul.f32 %v1850_v35, %v4155_v13  ;;  %s6269_s4 = sld [smem:[#allocation58_spill]] }
 0x2d5   : >> { %v1855_v55 = vmul.f32 %v1850_v35, %v4157_v17  ;;  %v1856_v34 = vmul.f32 %v1850_v35, %v4159_v18  ;;  %v1857_v8 = vmul.f32 %v1850_v35, %v4161_v19  ;;  %v1858_v59 = vmul.f32 %v1850_v35, %v4163_v20  ;;  %s6270_s5 = sld [smem:[#allocation144_spill]] }
 0x2d6   : >> { %v1859_v50 = vadd.f32 %v1851_v9, %v1842_v43  ;;  %v1860_v7 = vadd.f32 %v1852_v41, %v1843_v42  ;;  %v1861_v47 = vadd.f32 %v1853_v53, %v1844_v26  ;;  %v1862_v54 = vadd.f32 %v1854_v40, %v1845_v57  ;;  %v6265_v43 = vld [vmem:[#allocation159_spill] sm:$0xff] }
 0x2d7   : >> { %v1863_v29 = vadd.f32 %v1855_v55, %v1846_v38  ;;  %v1864_v36 = vadd.f32 %v1856_v34, %v1847_v39  ;;  %v1865_v46 = vadd.f32 %v1857_v8, %v1848_v60  ;;  %v1866_v48 = vadd.f32 %v1858_v59, %v1849_v58 }
 0x2d8   : >> { %v1868_v15 = vmul.f32 %v1867_v27, %v4165_v21  ;;  %v1869_v25 = vmul.f32 %v1867_v27, %v4167_v22  ;;  %v1870_v14 = vmul.f32 %v1867_v27, %v6261_v56  ;;  %v1871_v37 = vmul.f32 %v1867_v27, %v6262_v49 }
 0x2d9   : >> { %v1872_v33 = vmul.f32 %v1867_v27, %v6263_v52  ;;  %v1873_v32 = vmul.f32 %v1867_v27, %v6264_v1  ;;  %v1874_v42 = vmul.f32 %v1867_v27, %v6265_v43  ;;  %v1875_v26 = vmul.f32 %v1867_v27, %v4179_v28 }
 0x2da   : >> { %v1876_v57 = vadd.f32 %v1868_v15, %v1859_v50  ;;  %v1877_v38 = vadd.f32 %v1869_v25, %v1860_v7  ;;  %v1878_v39 = vadd.f32 %v1870_v14, %v1861_v47  ;;  %v1879_v60 = vadd.f32 %v1871_v37, %v1862_v54 }
 0x2db   : >> { %v1880_v58 = vadd.f32 %v1872_v33, %v1863_v29  ;;  %v1881_v35 = vadd.f32 %v1873_v32, %v1864_v36  ;;  %v1882_v9 = vadd.f32 %v1874_v42, %v1865_v46  ;;  %v1883_v41 = vadd.f32 %v1875_v26, %v1866_v48 }
 0x2dc   : >> { %v1884_v53 = vmax.f32 %v1876_v57, 0.0  ;;  %v1885_v40 = vmax.f32 %v1877_v38, 0.0  ;;  %v1886_v55 = vmax.f32 %v1878_v39, 0.0  ;;  %v1887_v34 = vmax.f32 %v1879_v60, 0.0 }
 0x2dd   : >> { %v1888_v8 = vmax.f32 %v1880_v58, 0.0  ;;  %v1889_v59 = vmax.f32 %v1881_v35, 0.0  ;;  %v1890_v23 = vmax.f32 %v1882_v9, 0.0  ;;  %v1891_v1 = vmax.f32 %v1883_v41, 0.0 }
 0x2de   : >> { %v1893_v43 = vmul.f32 %v1892_v45, %v1884_v53  ;;  %v1894_v52 = vmul.f32 %v1892_v45, %v1885_v40  ;;  %v1895_v27 = vmul.f32 %v1892_v45, %v1886_v55  ;;  %v1896_v50 = vmul.f32 %v1892_v45, %v1887_v34 }
 0x2df   : >> { %v1897_v7 = vmul.f32 %v1892_v45, %v1888_v8  ;;  %v1898_v47 = vmul.f32 %v1892_v45, %v1889_v59  ;;  %v1899_v54 = vmul.f32 %v1892_v45, %v1890_v23  ;;  %v1909_v29 = vstv %s6266_s0  ;;  %s6274_s0 = sld [smem:[#allocation59_spill]] }
 0x2e0   : >> { %v5110_v36 = vmul.f32 %v1892_v45, %v1891_v1  ;;  %v5113_v46 = vadd.f32 %v1893_v43, %v5060_v2  ;;  %v5116_v48 = vadd.f32 %v1894_v52, %v5063_v24  ;;  %v5119_v15 = vadd.f32 %v1895_v27, %v5066_v44 }
 0x2e1   : >> { %v5122_v25 = vadd.f32 %v1896_v50, %v5069_v16  ;;  %v5125_v23 = vadd.f32 %v1897_v7, %v5072_v30  ;;  %v5128_v45 = vadd.f32 %v1898_v47, %v5075_v31  ;;  %v5131_v2 = vadd.f32 %v1899_v54, %v5078_v51 }
 0x2e2   : >> { %v1910_v24 = vmul.f32 %v1909_v29, %v4133_v61  ;;  %v1911_v14 = vmul.f32 %v1909_v29, %v4135_v62  ;;  %v1912_v44 = vmul.f32 %v1909_v29, %v4137_v63  ;;  %v1913_v37 = vmul.f32 %v1909_v29, %v4139_v0 }
 0x2e3   : >> { %v1914_v16 = vmul.f32 %v1909_v29, %v4141_v3  ;;  %v1915_v52 = vmul.f32 %v1909_v29, %v4143_v4  ;;  %v1916_v30 = vmul.f32 %v1909_v29, %v4145_v5  ;;  %v1917_v31 = vmul.f32 %v1909_v29, %v4147_v6 }
 0x2e4   : >> { %v1918_v33 = vstv %s6267_s21  ;;  %v1927_v1 = vstv %s6268_s26  ;;  %v1944_v51 = vstv %s6269_s4  ;;  %v1969_v32 = vstv %s6270_s5  ;;  %s6275_s21 = sld [smem:[#allocation116_spill]] }
 0x2e5   : >> { %v1919_v43 = vadd.f32 %v1918_v33, %v1910_v24  ;;  %v1920_v42 = vadd.f32 %v1918_v33, %v1911_v14  ;;  %v1921_v26 = vadd.f32 %v1918_v33, %v1912_v44  ;;  %v1922_v57 = vadd.f32 %v1918_v33, %v1913_v37  ;;  %s6276_s26 = sld [smem:[#allocation60_spill]] }
 0x2e6   : >> { %v1923_v38 = vadd.f32 %v1918_v33, %v1914_v16  ;;  %v1924_v39 = vadd.f32 %v1918_v33, %v1915_v52  ;;  %v1925_v60 = vadd.f32 %v1918_v33, %v1916_v30  ;;  %v1926_v58 = vadd.f32 %v1918_v33, %v1917_v31  ;;  %v6271_v52 = vld [vmem:[#allocation157_spill] sm:$0xff]  ;;  %v6272_v31 = vld [vmem:[#allocation158_spill] sm:$0xff]  ;;  %s6278_s4 = sld [smem:[#allocation61_spill]] }
 0x2e7   : >> { %v1928_v35 = vmul.f32 %v1927_v1, %v4149_v10  ;;  %v1929_v9 = vmul.f32 %v1927_v1, %v4151_v11  ;;  %v1930_v41 = vmul.f32 %v1927_v1, %v4153_v12  ;;  %v1931_v53 = vmul.f32 %v1927_v1, %v4155_v13  ;;  %s6283_s5 = sld [smem:[#allocation145_spill]] }
 0x2e8   : >> { %v1932_v40 = vmul.f32 %v1927_v1, %v4157_v17  ;;  %v1933_v55 = vmul.f32 %v1927_v1, %v4159_v18  ;;  %v1934_v34 = vmul.f32 %v1927_v1, %v4161_v19  ;;  %v1935_v8 = vmul.f32 %v1927_v1, %v4163_v20  ;;  %v6273_v1 = vld [vmem:[#allocation159_spill] sm:$0xff] }
 0x2e9   : >> { %v1936_v59 = vadd.f32 %v1928_v35, %v1919_v43  ;;  %v1937_v27 = vadd.f32 %v1929_v9, %v1920_v42  ;;  %v1938_v50 = vadd.f32 %v1930_v41, %v1921_v26  ;;  %v1939_v7 = vadd.f32 %v1931_v53, %v1922_v57 }
 0x2ea   : >> { %v1940_v47 = vadd.f32 %v1932_v40, %v1923_v38  ;;  %v1941_v54 = vadd.f32 %v1933_v55, %v1924_v39  ;;  %v1942_v29 = vadd.f32 %v1934_v34, %v1925_v60  ;;  %v1943_v24 = vadd.f32 %v1935_v8, %v1926_v58 }
 0x2eb   : >> { %v1945_v14 = vmul.f32 %v1944_v51, %v4165_v21  ;;  %v1946_v44 = vmul.f32 %v1944_v51, %v4167_v22  ;;  %v1947_v37 = vmul.f32 %v1944_v51, %v6261_v56  ;;  %v1948_v16 = vmul.f32 %v1944_v51, %v6262_v49 }
 0x2ec   : >> { %v1949_v30 = vmul.f32 %v1944_v51, %v6271_v52  ;;  %v1950_v33 = vmul.f32 %v1944_v51, %v6272_v31  ;;  %v1951_v43 = vmul.f32 %v1944_v51, %v6273_v1  ;;  %v1952_v42 = vmul.f32 %v1944_v51, %v4179_v28 }
 0x2ed   : >> { %v1953_v26 = vadd.f32 %v1945_v14, %v1936_v59  ;;  %v1954_v57 = vadd.f32 %v1946_v44, %v1937_v27  ;;  %v1955_v38 = vadd.f32 %v1947_v37, %v1938_v50  ;;  %v1956_v39 = vadd.f32 %v1948_v16, %v1939_v7  ;;  %v6277_v27 = vld [vmem:[#allocation160_spill] sm:$0xff] }
 0x2ee   : >> { %v1957_v60 = vadd.f32 %v1949_v30, %v1940_v47  ;;  %v1958_v58 = vadd.f32 %v1950_v33, %v1941_v54  ;;  %v1959_v35 = vadd.f32 %v1951_v43, %v1942_v29  ;;  %v1960_v9 = vadd.f32 %v1952_v42, %v1943_v24 }
 0x2ef   : >> { %v1961_v41 = vmax.f32 %v1953_v26, 0.0  ;;  %v1962_v53 = vmax.f32 %v1954_v57, 0.0  ;;  %v1963_v40 = vmax.f32 %v1955_v38, 0.0  ;;  %v1964_v55 = vmax.f32 %v1956_v39, 0.0 }
 0x2f0   : >> { %v1965_v34 = vmax.f32 %v1957_v60, 0.0  ;;  %v1966_v8 = vmax.f32 %v1958_v58, 0.0  ;;  %v1967_v52 = vmax.f32 %v1959_v35, 0.0  ;;  %v1968_v31 = vmax.f32 %v1960_v9, 0.0 }
 0x2f1   : >> { %v1970_v49 = vmul.f32 %v1969_v32, %v1961_v41  ;;  %v1971_v1 = vmul.f32 %v1969_v32, %v1962_v53  ;;  %v1972_v51 = vmul.f32 %v1969_v32, %v1963_v40  ;;  %v1973_v59 = vmul.f32 %v1969_v32, %v1964_v55 }
 0x2f2   : >> { %v5163_v50 = vadd.f32 %v5110_v36, %v6277_v27  ;;  %v1974_v7 = vmul.f32 %v1969_v32, %v1965_v34  ;;  %v1975_v47 = vmul.f32 %v1969_v32, %v1966_v8  ;;  %v1976_v54 = vmul.f32 %v1969_v32, %v1967_v52 }
 0x2f3   : >> { %v5165_v29 = vmul.f32 %v1969_v32, %v1968_v31  ;;  %v5168_v24 = vadd.f32 %v1970_v49, %v5113_v46  ;;  %v5171_v14 = vadd.f32 %v1971_v1, %v5116_v48  ;;  %v5174_v44 = vadd.f32 %v1972_v51, %v5119_v15 }
 0x2f4   : >> { %v5177_v37 = vadd.f32 %v1973_v59, %v5122_v25  ;;  %v5180_v36 = vadd.f32 %v1974_v7, %v5125_v23  ;;  %v5183_v16 = vadd.f32 %v1975_v47, %v5128_v45  ;;  %v5186_v32 = vadd.f32 %v1976_v54, %v5131_v2 }
 0x2f5   : >> { %v1986_v49 = vstv %s6274_s0  ;;  %v1995_v46 = vstv %s6275_s21  ;;  %v2004_v52 = vstv %s6276_s26  ;;  %v2021_v48 = vstv %s6278_s4  ;;  %s6284_s0 = sld [smem:[#allocation62_spill]] }
 0x2f6   : >> { %v1987_v30 = vmul.f32 %v1986_v49, %v4133_v61  ;;  %v1988_v15 = vmul.f32 %v1986_v49, %v4135_v62  ;;  %v1989_v25 = vmul.f32 %v1986_v49, %v4137_v63  ;;  %v1990_v31 = vmul.f32 %v1986_v49, %v4139_v0  ;;  %s6285_s21 = sld [smem:[#allocation117_spill]] }
 0x2f7   : >> { %v1991_v23 = vmul.f32 %v1986_v49, %v4141_v3  ;;  %v1992_v45 = vmul.f32 %v1986_v49, %v4143_v4  ;;  %v1993_v33 = vmul.f32 %v1986_v49, %v4145_v5  ;;  %v1994_v2 = vmul.f32 %v1986_v49, %v4147_v6  ;;  %s6286_s26 = sld [smem:[#allocation63_spill]] }
 0x2f8   : >> { %v1996_v1 = vadd.f32 %v1995_v46, %v1987_v30  ;;  %v1997_v43 = vadd.f32 %v1995_v46, %v1988_v15  ;;  %v1998_v42 = vadd.f32 %v1995_v46, %v1989_v25  ;;  %v1999_v26 = vadd.f32 %v1995_v46, %v1990_v31  ;;  %v6279_v25 = vld [vmem:[#allocation156_spill] sm:$0xff]  ;;  %s6287_s4 = sld [smem:[#allocation64_spill]] }
 0x2f9   : >> { %v2000_v57 = vadd.f32 %v1995_v46, %v1991_v23  ;;  %v2001_v38 = vadd.f32 %v1995_v46, %v1992_v45  ;;  %v2002_v39 = vadd.f32 %v1995_v46, %v1993_v33  ;;  %v2003_v60 = vadd.f32 %v1995_v46, %v1994_v2  ;;  %v6280_v23 = vld [vmem:[#allocation157_spill] sm:$0xff]  ;;  %v6281_v33 = vld [vmem:[#allocation158_spill] sm:$0xff]  ;;  %v6282_v2 = vld [vmem:[#allocation159_spill] sm:$0xff] }
 0x2fa   : >> { %v2005_v58 = vmul.f32 %v2004_v52, %v4149_v10  ;;  %v2006_v35 = vmul.f32 %v2004_v52, %v4151_v11  ;;  %v2007_v9 = vmul.f32 %v2004_v52, %v4153_v12  ;;  %v2008_v41 = vmul.f32 %v2004_v52, %v4155_v13 }
 0x2fb   : >> { %v2009_v53 = vmul.f32 %v2004_v52, %v4157_v17  ;;  %v2010_v40 = vmul.f32 %v2004_v52, %v4159_v18  ;;  %v2011_v55 = vmul.f32 %v2004_v52, %v4161_v19  ;;  %v2012_v34 = vmul.f32 %v2004_v52, %v4163_v20 }
 0x2fc   : >> { %v2013_v8 = vadd.f32 %v2005_v58, %v1996_v1  ;;  %v2014_v51 = vadd.f32 %v2006_v35, %v1997_v43  ;;  %v2015_v59 = vadd.f32 %v2007_v9, %v1998_v42  ;;  %v2016_v27 = vadd.f32 %v2008_v41, %v1999_v26 }
 0x2fd   : >> { %v2017_v7 = vadd.f32 %v2009_v53, %v2000_v57  ;;  %v2018_v47 = vadd.f32 %v2010_v40, %v2001_v38  ;;  %v2019_v54 = vadd.f32 %v2011_v55, %v2002_v39  ;;  %v2020_v49 = vadd.f32 %v2012_v34, %v2003_v60 }
 0x2fe   : >> { %v2022_v46 = vmul.f32 %v2021_v48, %v4165_v21  ;;  %v2023_v30 = vmul.f32 %v2021_v48, %v4167_v22  ;;  %v2024_v15 = vmul.f32 %v2021_v48, %v6261_v56  ;;  %v2025_v31 = vmul.f32 %v2021_v48, %v6279_v25 }
 0x2ff   : >> { %v2026_v45 = vmul.f32 %v2021_v48, %v6280_v23  ;;  %v2027_v52 = vmul.f32 %v2021_v48, %v6281_v33  ;;  %v2028_v1 = vmul.f32 %v2021_v48, %v6282_v2  ;;  %v2029_v43 = vmul.f32 %v2021_v48, %v4179_v28 }
 0x300   : >> { %v2030_v42 = vadd.f32 %v2022_v46, %v2013_v8  ;;  %v2031_v26 = vadd.f32 %v2023_v30, %v2014_v51  ;;  %v2032_v57 = vadd.f32 %v2024_v15, %v2015_v59  ;;  %v2033_v38 = vadd.f32 %v2025_v31, %v2016_v27 }
 0x301   : >> { %v2034_v39 = vadd.f32 %v2026_v45, %v2017_v7  ;;  %v2035_v60 = vadd.f32 %v2027_v52, %v2018_v47  ;;  %v2036_v58 = vadd.f32 %v2028_v1, %v2019_v54  ;;  %v2037_v35 = vadd.f32 %v2029_v43, %v2020_v49 }
 0x302   : >> { %v2038_v9 = vmax.f32 %v2030_v42, 0.0  ;;  %v2039_v41 = vmax.f32 %v2031_v26, 0.0  ;;  %v2040_v53 = vmax.f32 %v2032_v57, 0.0  ;;  %v2041_v40 = vmax.f32 %v2033_v38, 0.0 }
 0x303   : >> { %v2042_v55 = vmax.f32 %v2034_v39, 0.0  ;;  %v2043_v34 = vmax.f32 %v2035_v60, 0.0  ;;  %v2044_v2 = vmax.f32 %v2036_v58, 0.0  ;;  %v2045_v48 = vmax.f32 %v2037_v35, 0.0 }
 0x304   : >> { %v1985_v8 = vadd.f32 %v5165_v29, %v5163_v50  ;;  %v2046_v51 = vstv %s6283_s5  ;;  %v2063_v59 = vstv %s6284_s0  ;;  %v2072_v27 = vstv %s6285_s21  ;;  %s6288_s5 = sld [smem:[#allocation146_spill]] }
 0x305   : >> { %v2047_v46 = vmul.f32 %v2046_v51, %v2038_v9  ;;  %v2048_v7 = vmul.f32 %v2046_v51, %v2039_v41  ;;  %v2049_v47 = vmul.f32 %v2046_v51, %v2040_v53  ;;  %v2050_v54 = vmul.f32 %v2046_v51, %v2041_v40  ;;  %s6289_s0 = sld [smem:[#allocation65_spill]] }
 0x306   : >> { %v2051_v49 = vmul.f32 %v2046_v51, %v2042_v55  ;;  %v2052_v30 = vmul.f32 %v2046_v51, %v2043_v34  ;;  %v2053_v15 = vmul.f32 %v2046_v51, %v2044_v2  ;;  %v2081_v31 = vstv %s6286_s26  ;;  %s6291_s21 = sld [smem:[#allocation118_spill]] }
 0x307   : >> { %v2054_v45 = vmul.f32 %v2046_v51, %v2045_v48  ;;  %v5223_v52 = vadd.f32 %v2047_v46, %v5168_v24  ;;  %v5226_v1 = vadd.f32 %v2048_v7, %v5171_v14  ;;  %v5229_v50 = vadd.f32 %v2049_v47, %v5174_v44  ;;  %s6292_s26 = sld [smem:[#allocation66_spill]] }
 0x308   : >> { %v5232_v29 = vadd.f32 %v2050_v54, %v5177_v37  ;;  %v5235_v43 = vadd.f32 %v2051_v49, %v5180_v36  ;;  %v5238_v42 = vadd.f32 %v2052_v30, %v5183_v16  ;;  %v5241_v2 = vadd.f32 %v2053_v15, %v5186_v32 }
 0x309   : >> { %v2064_v24 = vmul.f32 %v2063_v59, %v4133_v61  ;;  %v2065_v14 = vmul.f32 %v2063_v59, %v4135_v62  ;;  %v2066_v26 = vmul.f32 %v2063_v59, %v4137_v63  ;;  %v2067_v44 = vmul.f32 %v2063_v59, %v4139_v0 }
 0x30a   : >> { %v2068_v37 = vmul.f32 %v2063_v59, %v4141_v3  ;;  %v2069_v57 = vmul.f32 %v2063_v59, %v4143_v4  ;;  %v2070_v36 = vmul.f32 %v2063_v59, %v4145_v5  ;;  %v2071_v16 = vmul.f32 %v2063_v59, %v4147_v6 }
 0x30b   : >> { %v2073_v38 = vadd.f32 %v2072_v27, %v2064_v24  ;;  %v2074_v39 = vadd.f32 %v2072_v27, %v2065_v14  ;;  %v2075_v32 = vadd.f32 %v2072_v27, %v2066_v26  ;;  %v2076_v60 = vadd.f32 %v2072_v27, %v2067_v44 }
 0x30c   : >> { %v2077_v58 = vadd.f32 %v2072_v27, %v2068_v37  ;;  %v2078_v35 = vadd.f32 %v2072_v27, %v2069_v57  ;;  %v2079_v9 = vadd.f32 %v2072_v27, %v2070_v36  ;;  %v2080_v41 = vadd.f32 %v2072_v27, %v2071_v16 }
 0x30d   : >> { %v2082_v53 = vmul.f32 %v2081_v31, %v4149_v10  ;;  %v2083_v40 = vmul.f32 %v2081_v31, %v4151_v11  ;;  %v2084_v55 = vmul.f32 %v2081_v31, %v4153_v12  ;;  %v2085_v34 = vmul.f32 %v2081_v31, %v4155_v13 }
 0x30e   : >> { %v2086_v48 = vmul.f32 %v2081_v31, %v4157_v17  ;;  %v2087_v51 = vmul.f32 %v2081_v31, %v4159_v18  ;;  %v2088_v59 = vmul.f32 %v2081_v31, %v4161_v19  ;;  %v2089_v46 = vmul.f32 %v2081_v31, %v4163_v20 }
 0x30f   : >> { %v2062_v27 = vadd.f32 %v2054_v45, %v1985_v8  ;;  %v2090_v7 = vadd.f32 %v2082_v53, %v2073_v38  ;;  %v2091_v47 = vadd.f32 %v2083_v40, %v2074_v39  ;;  %v2092_v54 = vadd.f32 %v2084_v55, %v2075_v32  ;;  %v6290_v38 = vld [vmem:[#allocation159_spill] sm:$0xff] }
 0x310   : >> { %v2093_v49 = vadd.f32 %v2085_v34, %v2076_v60  ;;  %v2094_v30 = vadd.f32 %v2086_v48, %v2077_v58  ;;  %v2095_v15 = vadd.f32 %v2087_v51, %v2078_v35  ;;  %v2096_v24 = vadd.f32 %v2088_v59, %v2079_v9 }
 0x311   : >> { %v2097_v14 = vadd.f32 %v2089_v46, %v2080_v41  ;;  %v2098_v26 = vstv %s6287_s4  ;;  %v2123_v44 = vstv %s6288_s5  ;;  %v2140_v37 = vstv %s6289_s0  ;;  %s6293_s4 = sld [smem:[#allocation67_spill]] }
 0x312   : >> { %v2099_v57 = vmul.f32 %v2098_v26, %v4165_v21  ;;  %v2100_v36 = vmul.f32 %v2098_v26, %v4167_v22  ;;  %v2101_v16 = vmul.f32 %v2098_v26, %v6261_v56  ;;  %v2102_v31 = vmul.f32 %v2098_v26, %v6279_v25  ;;  %s6294_s5 = sld [smem:[#allocation147_spill]] }
 0x313   : >> { %v2103_v8 = vmul.f32 %v2098_v26, %v6280_v23  ;;  %v2104_v45 = vmul.f32 %v2098_v26, %v6281_v33  ;;  %v2105_v39 = vmul.f32 %v2098_v26, %v6290_v38  ;;  %v2106_v32 = vmul.f32 %v2098_v26, %v4179_v28  ;;  %s6301_s0 = sld [smem:[#allocation68_spill]] }
 0x314   : >> { %v2107_v60 = vadd.f32 %v2099_v57, %v2090_v7  ;;  %v2108_v58 = vadd.f32 %v2100_v36, %v2091_v47  ;;  %v2109_v35 = vadd.f32 %v2101_v16, %v2092_v54  ;;  %v2110_v9 = vadd.f32 %v2102_v31, %v2093_v49 }
 0x315   : >> { %v2111_v41 = vadd.f32 %v2103_v8, %v2094_v30  ;;  %v2112_v53 = vadd.f32 %v2104_v45, %v2095_v15  ;;  %v2113_v40 = vadd.f32 %v2105_v39, %v2096_v24  ;;  %v2114_v55 = vadd.f32 %v2106_v32, %v2097_v14 }
 0x316   : >> { %v2115_v34 = vmax.f32 %v2107_v60, 0.0  ;;  %v2116_v48 = vmax.f32 %v2108_v58, 0.0  ;;  %v2117_v51 = vmax.f32 %v2109_v35, 0.0  ;;  %v2118_v59 = vmax.f32 %v2110_v9, 0.0 }
 0x317   : >> { %v2119_v46 = vmax.f32 %v2111_v41, 0.0  ;;  %v2120_v23 = vmax.f32 %v2112_v53, 0.0  ;;  %v2121_v33 = vmax.f32 %v2113_v40, 0.0  ;;  %v2122_v25 = vmax.f32 %v2114_v55, 0.0 }
 0x318   : >> { %v2124_v38 = vmul.f32 %v2123_v44, %v2115_v34  ;;  %v2125_v56 = vmul.f32 %v2123_v44, %v2116_v48  ;;  %v2126_v26 = vmul.f32 %v2123_v44, %v2117_v51  ;;  %v2127_v7 = vmul.f32 %v2123_v44, %v2118_v59 }
 0x319   : >> { %v2128_v47 = vmul.f32 %v2123_v44, %v2119_v46  ;;  %v2129_v54 = vmul.f32 %v2123_v44, %v2120_v23  ;;  %v2130_v49 = vmul.f32 %v2123_v44, %v2121_v33  ;;  %v2149_v30 = vstv %s6291_s21  ;;  %s6302_s21 = sld [smem:[#allocation119_spill]] }
 0x31a   : >> { %v2131_v15 = vmul.f32 %v2123_v44, %v2122_v25  ;;  %v5272_v24 = vadd.f32 %v2124_v38, %v5223_v52  ;;  %v5275_v14 = vadd.f32 %v2125_v56, %v5226_v1  ;;  %v5278_v57 = vadd.f32 %v2126_v26, %v5229_v50 }
 0x31b   : >> { %v5281_v36 = vadd.f32 %v2127_v7, %v5232_v29  ;;  %v5284_v16 = vadd.f32 %v2128_v47, %v5235_v43  ;;  %v5287_v23 = vadd.f32 %v2129_v54, %v5238_v42  ;;  %v5290_v25 = vadd.f32 %v2130_v49, %v5241_v2 }
 0x31c   : >> { %v2141_v33 = vmul.f32 %v2140_v37, %v4133_v61  ;;  %v2142_v56 = vmul.f32 %v2140_v37, %v4135_v62  ;;  %v2143_v52 = vmul.f32 %v2140_v37, %v4137_v63  ;;  %v2144_v1 = vmul.f32 %v2140_v37, %v4139_v0 }
 0x31d   : >> { %v2145_v50 = vmul.f32 %v2140_v37, %v4141_v3  ;;  %v2146_v29 = vmul.f32 %v2140_v37, %v4143_v4  ;;  %v2147_v43 = vmul.f32 %v2140_v37, %v4145_v5  ;;  %v2148_v42 = vmul.f32 %v2140_v37, %v4147_v6 }
 0x31e   : >> { %v5300_v2 = vadd.f32 %v2131_v15, %v2062_v27  ;;  %v2150_v44 = vadd.f32 %v2149_v30, %v2141_v33  ;;  %v2151_v31 = vadd.f32 %v2149_v30, %v2142_v56  ;;  %v2152_v8 = vadd.f32 %v2149_v30, %v2143_v52  ;;  %v6296_v33 = vld [vmem:[#allocation155_spill] sm:$0xff]  ;;  %v6297_v52 = vld [vmem:[#allocation156_spill] sm:$0xff] }
 0x31f   : >> { %v2153_v45 = vadd.f32 %v2149_v30, %v2144_v1  ;;  %v2154_v38 = vadd.f32 %v2149_v30, %v2145_v50  ;;  %v2155_v39 = vadd.f32 %v2149_v30, %v2146_v29  ;;  %v2156_v32 = vadd.f32 %v2149_v30, %v2147_v43  ;;  %v6298_v50 = vld [vmem:[#allocation157_spill] sm:$0xff]  ;;  %v6299_v43 = vld [vmem:[#allocation158_spill] sm:$0xff] }
 0x320   : >> { %6295 = vst [vmem:[#allocation160_spill] sm:$0xff] %v5300_v2  ;;  %v2157_v60 = vadd.f32 %v2149_v30, %v2148_v42  ;;  %v2158_v58 = vstv %s6292_s26  ;;  %v2175_v35 = vstv %s6293_s4  ;;  %v2200_v9 = vstv %s6294_s5  ;;  %s6303_s26 = sld [smem:[#allocation69_spill]] }
 0x321   : >> { %v2159_v41 = vmul.f32 %v2158_v58, %v4149_v10  ;;  %v2160_v53 = vmul.f32 %v2158_v58, %v4151_v11  ;;  %v2161_v40 = vmul.f32 %v2158_v58, %v4153_v12  ;;  %v2162_v27 = vmul.f32 %v2158_v58, %v4155_v13  ;;  %s6304_s4 = sld [smem:[#allocation70_spill]] }
 0x322   : >> { %v2163_v37 = vmul.f32 %v2158_v58, %v4157_v17  ;;  %v2164_v55 = vmul.f32 %v2158_v58, %v4159_v18  ;;  %v2165_v34 = vmul.f32 %v2158_v58, %v4161_v19  ;;  %v2166_v48 = vmul.f32 %v2158_v58, %v4163_v20  ;;  %s6305_s5 = sld [smem:[#allocation148_spill]] }
 0x323   : >> { %v2167_v51 = vadd.f32 %v2159_v41, %v2150_v44  ;;  %v2168_v59 = vadd.f32 %v2160_v53, %v2151_v31  ;;  %v2169_v46 = vadd.f32 %v2161_v40, %v2152_v8  ;;  %v2170_v26 = vadd.f32 %v2162_v27, %v2153_v45  ;;  %v6300_v44 = vld [vmem:[#allocation159_spill] sm:$0xff] }
 0x324   : >> { %v2171_v7 = vadd.f32 %v2163_v37, %v2154_v38  ;;  %v2172_v47 = vadd.f32 %v2164_v55, %v2155_v39  ;;  %v2173_v54 = vadd.f32 %v2165_v34, %v2156_v32  ;;  %v2174_v49 = vadd.f32 %v2166_v48, %v2157_v60 }
 0x325   : >> { %v2176_v30 = vmul.f32 %v2175_v35, %v4165_v21  ;;  %v2177_v15 = vmul.f32 %v2175_v35, %v4167_v22  ;;  %v2178_v56 = vmul.f32 %v2175_v35, %v6296_v33  ;;  %v2179_v1 = vmul.f32 %v2175_v35, %v6297_v52 }
 0x326   : >> { %v2180_v29 = vmul.f32 %v2175_v35, %v6298_v50  ;;  %v2181_v42 = vmul.f32 %v2175_v35, %v6299_v43  ;;  %v2182_v31 = vmul.f32 %v2175_v35, %v6300_v44  ;;  %v2183_v8 = vmul.f32 %v2175_v35, %v4179_v28 }
 0x327   : >> { %v2184_v45 = vadd.f32 %v2176_v30, %v2167_v51  ;;  %v2185_v38 = vadd.f32 %v2177_v15, %v2168_v59  ;;  %v2186_v39 = vadd.f32 %v2178_v56, %v2169_v46  ;;  %v2187_v32 = vadd.f32 %v2179_v1, %v2170_v26 }
 0x328   : >> { %v2188_v60 = vadd.f32 %v2180_v29, %v2171_v7  ;;  %v2189_v58 = vadd.f32 %v2181_v42, %v2172_v47  ;;  %v2190_v41 = vadd.f32 %v2182_v31, %v2173_v54  ;;  %v2191_v53 = vadd.f32 %v2183_v8, %v2174_v49 }
 0x329   : >> { %v2192_v40 = vmax.f32 %v2184_v45, 0.0  ;;  %v2193_v27 = vmax.f32 %v2185_v38, 0.0  ;;  %v2194_v37 = vmax.f32 %v2186_v39, 0.0  ;;  %v2195_v55 = vmax.f32 %v2187_v32, 0.0 }
 0x32a   : >> { %v2196_v34 = vmax.f32 %v2188_v60, 0.0  ;;  %v2197_v48 = vmax.f32 %v2189_v58, 0.0  ;;  %v2198_v2 = vmax.f32 %v2190_v41, 0.0  ;;  %v2199_v43 = vmax.f32 %v2191_v53, 0.0 }
 0x32b   : >> { %v2201_v44 = vmul.f32 %v2200_v9, %v2192_v40  ;;  %v2202_v50 = vmul.f32 %v2200_v9, %v2193_v27  ;;  %v2203_v35 = vmul.f32 %v2200_v9, %v2194_v37  ;;  %v2204_v51 = vmul.f32 %v2200_v9, %v2195_v55 }
 0x32c   : >> { %v2205_v59 = vmul.f32 %v2200_v9, %v2196_v34  ;;  %v2206_v46 = vmul.f32 %v2200_v9, %v2197_v48  ;;  %v2207_v26 = vmul.f32 %v2200_v9, %v2198_v2  ;;  %v2217_v7 = vstv %s6301_s0  ;;  %s6309_s0 = sld [smem:[#allocation71_spill]] }
 0x32d   : >> { %v5322_v47 = vmul.f32 %v2200_v9, %v2199_v43  ;;  %v5325_v54 = vadd.f32 %v2201_v44, %v5272_v24  ;;  %v5328_v49 = vadd.f32 %v2202_v50, %v5275_v14  ;;  %v5331_v30 = vadd.f32 %v2203_v35, %v5278_v57 }
 0x32e   : >> { %v5334_v15 = vadd.f32 %v2204_v51, %v5281_v36  ;;  %v5337_v2 = vadd.f32 %v2205_v59, %v5284_v16  ;;  %v5340_v9 = vadd.f32 %v2206_v46, %v5287_v23  ;;  %v5343_v24 = vadd.f32 %v2207_v26, %v5290_v25 }
 0x32f   : >> { %v2218_v14 = vmul.f32 %v2217_v7, %v4133_v61  ;;  %v2219_v56 = vmul.f32 %v2217_v7, %v4135_v62  ;;  %v2220_v57 = vmul.f32 %v2217_v7, %v4137_v63  ;;  %v2221_v1 = vmul.f32 %v2217_v7, %v4139_v0 }
 0x330   : >> { %v2222_v36 = vmul.f32 %v2217_v7, %v4141_v3  ;;  %v2223_v50 = vmul.f32 %v2217_v7, %v4143_v4  ;;  %v2224_v16 = vmul.f32 %v2217_v7, %v4145_v5  ;;  %v2225_v23 = vmul.f32 %v2217_v7, %v4147_v6 }
 0x331   : >> { %v2226_v29 = vstv %s6302_s21  ;;  %v2235_v43 = vstv %s6303_s26  ;;  %v2252_v25 = vstv %s6304_s4  ;;  %v2277_v42 = vstv %s6305_s5  ;;  %s6310_s21 = sld [smem:[#allocation120_spill]] }
 0x332   : >> { %v2227_v44 = vadd.f32 %v2226_v29, %v2218_v14  ;;  %v2228_v31 = vadd.f32 %v2226_v29, %v2219_v56  ;;  %v2229_v8 = vadd.f32 %v2226_v29, %v2220_v57  ;;  %v2230_v45 = vadd.f32 %v2226_v29, %v2221_v1  ;;  %s6311_s26 = sld [smem:[#allocation72_spill]] }
 0x333   : >> { %v2231_v38 = vadd.f32 %v2226_v29, %v2222_v36  ;;  %v2232_v39 = vadd.f32 %v2226_v29, %v2223_v50  ;;  %v2233_v32 = vadd.f32 %v2226_v29, %v2224_v16  ;;  %v2234_v60 = vadd.f32 %v2226_v29, %v2225_v23  ;;  %v6306_v50 = vld [vmem:[#allocation157_spill] sm:$0xff]  ;;  %v6307_v23 = vld [vmem:[#allocation158_spill] sm:$0xff]  ;;  %s6313_s4 = sld [smem:[#allocation73_spill]] }
 0x334   : >> { %v2236_v58 = vmul.f32 %v2235_v43, %v4149_v10  ;;  %v2237_v41 = vmul.f32 %v2235_v43, %v4151_v11  ;;  %v2238_v53 = vmul.f32 %v2235_v43, %v4153_v12  ;;  %v2239_v40 = vmul.f32 %v2235_v43, %v4155_v13  ;;  %s6318_s5 = sld [smem:[#allocation149_spill]] }
 0x335   : >> { %v2240_v27 = vmul.f32 %v2235_v43, %v4157_v17  ;;  %v2241_v37 = vmul.f32 %v2235_v43, %v4159_v18  ;;  %v2242_v55 = vmul.f32 %v2235_v43, %v4161_v19  ;;  %v2243_v34 = vmul.f32 %v2235_v43, %v4163_v20  ;;  %v6308_v43 = vld [vmem:[#allocation159_spill] sm:$0xff] }
 0x336   : >> { %v2244_v48 = vadd.f32 %v2236_v58, %v2227_v44  ;;  %v2245_v35 = vadd.f32 %v2237_v41, %v2228_v31  ;;  %v2246_v51 = vadd.f32 %v2238_v53, %v2229_v8  ;;  %v2247_v59 = vadd.f32 %v2239_v40, %v2230_v45 }
 0x337   : >> { %v2248_v46 = vadd.f32 %v2240_v27, %v2231_v38  ;;  %v2249_v26 = vadd.f32 %v2241_v37, %v2232_v39  ;;  %v2250_v7 = vadd.f32 %v2242_v55, %v2233_v32  ;;  %v2251_v14 = vadd.f32 %v2243_v34, %v2234_v60 }
 0x338   : >> { %v2253_v56 = vmul.f32 %v2252_v25, %v4165_v21  ;;  %v2254_v57 = vmul.f32 %v2252_v25, %v4167_v22  ;;  %v2255_v1 = vmul.f32 %v2252_v25, %v6296_v33  ;;  %v2256_v36 = vmul.f32 %v2252_v25, %v6297_v52 }
 0x339   : >> { %v2257_v16 = vmul.f32 %v2252_v25, %v6306_v50  ;;  %v2258_v29 = vmul.f32 %v2252_v25, %v6307_v23  ;;  %v2259_v44 = vmul.f32 %v2252_v25, %v6308_v43  ;;  %v2260_v31 = vmul.f32 %v2252_v25, %v4179_v28 }
 0x33a   : >> { %v2261_v8 = vadd.f32 %v2253_v56, %v2244_v48  ;;  %v2262_v45 = vadd.f32 %v2254_v57, %v2245_v35  ;;  %v2263_v38 = vadd.f32 %v2255_v1, %v2246_v51  ;;  %v2264_v39 = vadd.f32 %v2256_v36, %v2247_v59  ;;  %v6312_v35 = vld [vmem:[#allocation160_spill] sm:$0xff] }
 0x33b   : >> { %v2265_v32 = vadd.f32 %v2257_v16, %v2248_v46  ;;  %v2266_v60 = vadd.f32 %v2258_v29, %v2249_v26  ;;  %v2267_v58 = vadd.f32 %v2259_v44, %v2250_v7  ;;  %v2268_v41 = vadd.f32 %v2260_v31, %v2251_v14 }
 0x33c   : >> { %v2269_v53 = vmax.f32 %v2261_v8, 0.0  ;;  %v2270_v40 = vmax.f32 %v2262_v45, 0.0  ;;  %v2271_v27 = vmax.f32 %v2263_v38, 0.0  ;;  %v2272_v37 = vmax.f32 %v2264_v39, 0.0 }
 0x33d   : >> { %v2273_v55 = vmax.f32 %v2265_v32, 0.0  ;;  %v2274_v34 = vmax.f32 %v2266_v60, 0.0  ;;  %v2275_v50 = vmax.f32 %v2267_v58, 0.0  ;;  %v2276_v23 = vmax.f32 %v2268_v41, 0.0 }
 0x33e   : >> { %v2278_v52 = vmul.f32 %v2277_v42, %v2269_v53  ;;  %v2279_v43 = vmul.f32 %v2277_v42, %v2270_v40  ;;  %v2280_v25 = vmul.f32 %v2277_v42, %v2271_v27  ;;  %v2281_v48 = vmul.f32 %v2277_v42, %v2272_v37 }
 0x33f   : >> { %v5375_v51 = vadd.f32 %v5322_v47, %v6312_v35  ;;  %v2282_v59 = vmul.f32 %v2277_v42, %v2273_v55  ;;  %v2283_v46 = vmul.f32 %v2277_v42, %v2274_v34  ;;  %v2284_v26 = vmul.f32 %v2277_v42, %v2275_v50 }
 0x340   : >> { %v5377_v7 = vmul.f32 %v2277_v42, %v2276_v23  ;;  %v5380_v14 = vadd.f32 %v2278_v52, %v5325_v54  ;;  %v5383_v56 = vadd.f32 %v2279_v43, %v5328_v49  ;;  %v5386_v57 = vadd.f32 %v2280_v25, %v5331_v30 }
 0x341   : >> { %v5389_v1 = vadd.f32 %v2281_v48, %v5334_v15  ;;  %v5392_v47 = vadd.f32 %v2282_v59, %v5337_v2  ;;  %v5395_v36 = vadd.f32 %v2283_v46, %v5340_v9  ;;  %v5398_v42 = vadd.f32 %v2284_v26, %v5343_v24 }
 0x342   : >> { %v2294_v52 = vstv %s6309_s0  ;;  %v2303_v54 = vstv %s6310_s21  ;;  %v2312_v50 = vstv %s6311_s26  ;;  %v2329_v49 = vstv %s6313_s4  ;;  %s6319_s0 = sld [smem:[#allocation74_spill]] }
 0x343   : >> { %v2295_v16 = vmul.f32 %v2294_v52, %v4133_v61  ;;  %v2296_v30 = vmul.f32 %v2294_v52, %v4135_v62  ;;  %v2297_v15 = vmul.f32 %v2294_v52, %v4137_v63  ;;  %v2298_v23 = vmul.f32 %v2294_v52, %v4139_v0  ;;  %s6320_s21 = sld [smem:[#allocation121_spill]] }
 0x344   : >> { %v2299_v2 = vmul.f32 %v2294_v52, %v4141_v3  ;;  %v2300_v9 = vmul.f32 %v2294_v52, %v4143_v4  ;;  %v2301_v29 = vmul.f32 %v2294_v52, %v4145_v5  ;;  %v2302_v24 = vmul.f32 %v2294_v52, %v4147_v6  ;;  %s6321_s26 = sld [smem:[#allocation75_spill]] }
 0x345   : >> { %v2304_v43 = vadd.f32 %v2303_v54, %v2295_v16  ;;  %v2305_v44 = vadd.f32 %v2303_v54, %v2296_v30  ;;  %v2306_v31 = vadd.f32 %v2303_v54, %v2297_v15  ;;  %v2307_v8 = vadd.f32 %v2303_v54, %v2298_v23  ;;  %v6314_v15 = vld [vmem:[#allocation156_spill] sm:$0xff]  ;;  %s6322_s4 = sld [smem:[#allocation76_spill]] }
 0x346   : >> { %v2308_v45 = vadd.f32 %v2303_v54, %v2299_v2  ;;  %v2309_v38 = vadd.f32 %v2303_v54, %v2300_v9  ;;  %v2310_v39 = vadd.f32 %v2303_v54, %v2301_v29  ;;  %v2311_v32 = vadd.f32 %v2303_v54, %v2302_v24  ;;  %v6315_v2 = vld [vmem:[#allocation157_spill] sm:$0xff]  ;;  %v6316_v29 = vld [vmem:[#allocation158_spill] sm:$0xff]  ;;  %v6317_v24 = vld [vmem:[#allocation159_spill] sm:$0xff] }
 0x347   : >> { %v2313_v60 = vmul.f32 %v2312_v50, %v4149_v10  ;;  %v2314_v58 = vmul.f32 %v2312_v50, %v4151_v11  ;;  %v2315_v41 = vmul.f32 %v2312_v50, %v4153_v12  ;;  %v2316_v53 = vmul.f32 %v2312_v50, %v4155_v13 }
 0x348   : >> { %v2317_v40 = vmul.f32 %v2312_v50, %v4157_v17  ;;  %v2318_v27 = vmul.f32 %v2312_v50, %v4159_v18  ;;  %v2319_v37 = vmul.f32 %v2312_v50, %v4161_v19  ;;  %v2320_v55 = vmul.f32 %v2312_v50, %v4163_v20 }
 0x349   : >> { %v2321_v34 = vadd.f32 %v2313_v60, %v2304_v43  ;;  %v2322_v25 = vadd.f32 %v2314_v58, %v2305_v44  ;;  %v2323_v48 = vadd.f32 %v2315_v41, %v2306_v31  ;;  %v2324_v35 = vadd.f32 %v2316_v53, %v2307_v8 }
 0x34a   : >> { %v2325_v59 = vadd.f32 %v2317_v40, %v2308_v45  ;;  %v2326_v46 = vadd.f32 %v2318_v27, %v2309_v38  ;;  %v2327_v26 = vadd.f32 %v2319_v37, %v2310_v39  ;;  %v2328_v52 = vadd.f32 %v2320_v55, %v2311_v32 }
 0x34b   : >> { %v2330_v54 = vmul.f32 %v2329_v49, %v4165_v21  ;;  %v2331_v16 = vmul.f32 %v2329_v49, %v4167_v22  ;;  %v2332_v30 = vmul.f32 %v2329_v49, %v6296_v33  ;;  %v2333_v23 = vmul.f32 %v2329_v49, %v6314_v15 }
 0x34c   : >> { %v2334_v9 = vmul.f32 %v2329_v49, %v6315_v2  ;;  %v2335_v50 = vmul.f32 %v2329_v49, %v6316_v29  ;;  %v2336_v43 = vmul.f32 %v2329_v49, %v6317_v24  ;;  %v2337_v44 = vmul.f32 %v2329_v49, %v4179_v28 }
 0x34d   : >> { %v2338_v31 = vadd.f32 %v2330_v54, %v2321_v34  ;;  %v2339_v8 = vadd.f32 %v2331_v16, %v2322_v25  ;;  %v2340_v45 = vadd.f32 %v2332_v30, %v2323_v48  ;;  %v2341_v38 = vadd.f32 %v2333_v23, %v2324_v35 }
 0x34e   : >> { %v2342_v39 = vadd.f32 %v2334_v9, %v2325_v59  ;;  %v2343_v32 = vadd.f32 %v2335_v50, %v2326_v46  ;;  %v2344_v60 = vadd.f32 %v2336_v43, %v2327_v26  ;;  %v2345_v58 = vadd.f32 %v2337_v44, %v2328_v52 }
 0x34f   : >> { %v2346_v41 = vmax.f32 %v2338_v31, 0.0  ;;  %v2347_v53 = vmax.f32 %v2339_v8, 0.0  ;;  %v2348_v40 = vmax.f32 %v2340_v45, 0.0  ;;  %v2349_v27 = vmax.f32 %v2341_v38, 0.0 }
 0x350   : >> { %v2350_v37 = vmax.f32 %v2342_v39, 0.0  ;;  %v2351_v55 = vmax.f32 %v2343_v32, 0.0  ;;  %v2352_v24 = vmax.f32 %v2344_v60, 0.0  ;;  %v2353_v49 = vmax.f32 %v2345_v58, 0.0 }
 0x351   : >> { %v2293_v34 = vadd.f32 %v5377_v7, %v5375_v51  ;;  %v2354_v25 = vstv %s6318_s5  ;;  %v2371_v48 = vstv %s6319_s0  ;;  %v2380_v35 = vstv %s6320_s21  ;;  %s6323_s5 = sld [smem:[#allocation77_spill]] }
 0x352   : >> { %v2355_v54 = vmul.f32 %v2354_v25, %v2346_v41  ;;  %v2356_v59 = vmul.f32 %v2354_v25, %v2347_v53  ;;  %v2357_v46 = vmul.f32 %v2354_v25, %v2348_v40  ;;  %v2358_v26 = vmul.f32 %v2354_v25, %v2349_v27  ;;  %s6325_s0 = sld [smem:[#allocation122_spill]] }
 0x353   : >> { %v2359_v52 = vmul.f32 %v2354_v25, %v2350_v37  ;;  %v2360_v16 = vmul.f32 %v2354_v25, %v2351_v55  ;;  %v2361_v30 = vmul.f32 %v2354_v25, %v2352_v24  ;;  %v2389_v23 = vstv %s6321_s26  ;;  %s6326_s21 = sld [smem:[#allocation78_spill]] }
 0x354   : >> { %v2362_v9 = vmul.f32 %v2354_v25, %v2353_v49  ;;  %v5435_v50 = vadd.f32 %v2355_v54, %v5380_v14  ;;  %v5438_v43 = vadd.f32 %v2356_v59, %v5383_v56  ;;  %v5441_v51 = vadd.f32 %v2357_v46, %v5386_v57  ;;  %s6327_s26 = sld [smem:[#allocation79_spill]] }
 0x355   : >> { %v5444_v7 = vadd.f32 %v2358_v26, %v5389_v1  ;;  %v5447_v44 = vadd.f32 %v2359_v52, %v5392_v47  ;;  %v5450_v31 = vadd.f32 %v2360_v16, %v5395_v36  ;;  %v5453_v24 = vadd.f32 %v2361_v30, %v5398_v42 }
 0x356   : >> { %v2372_v14 = vmul.f32 %v2371_v48, %v4133_v61  ;;  %v2373_v56 = vmul.f32 %v2371_v48, %v4135_v62  ;;  %v2374_v8 = vmul.f32 %v2371_v48, %v4137_v63  ;;  %v2375_v57 = vmul.f32 %v2371_v48, %v4139_v0 }
 0x357   : >> { %v2376_v1 = vmul.f32 %v2371_v48, %v4141_v3  ;;  %v2377_v45 = vmul.f32 %v2371_v48, %v4143_v4  ;;  %v2378_v47 = vmul.f32 %v2371_v48, %v4145_v5  ;;  %v2379_v36 = vmul.f32 %v2371_v48, %v4147_v6 }
 0x358   : >> { %v2381_v38 = vadd.f32 %v2380_v35, %v2372_v14  ;;  %v2382_v39 = vadd.f32 %v2380_v35, %v2373_v56  ;;  %v2383_v42 = vadd.f32 %v2380_v35, %v2374_v8  ;;  %v2384_v32 = vadd.f32 %v2380_v35, %v2375_v57 }
 0x359   : >> { %v2385_v60 = vadd.f32 %v2380_v35, %v2376_v1  ;;  %v2386_v58 = vadd.f32 %v2380_v35, %v2377_v45  ;;  %v2387_v41 = vadd.f32 %v2380_v35, %v2378_v47  ;;  %v2388_v53 = vadd.f32 %v2380_v35, %v2379_v36 }
 0x35a   : >> { %v2390_v40 = vmul.f32 %v2389_v23, %v4149_v10  ;;  %v2391_v27 = vmul.f32 %v2389_v23, %v4151_v11  ;;  %v2392_v37 = vmul.f32 %v2389_v23, %v4153_v12  ;;  %v2393_v55 = vmul.f32 %v2389_v23, %v4155_v13 }
 0x35b   : >> { %v2394_v49 = vmul.f32 %v2389_v23, %v4157_v17  ;;  %v2395_v25 = vmul.f32 %v2389_v23, %v4159_v18  ;;  %v2396_v48 = vmul.f32 %v2389_v23, %v4161_v19  ;;  %v2397_v54 = vmul.f32 %v2389_v23, %v4163_v20 }
 0x35c   : >> { %v2370_v35 = vadd.f32 %v2362_v9, %v2293_v34  ;;  %v2398_v59 = vadd.f32 %v2390_v40, %v2381_v38  ;;  %v2399_v46 = vadd.f32 %v2391_v27, %v2382_v39  ;;  %v2400_v26 = vadd.f32 %v2392_v37, %v2383_v42  ;;  %v6324_v38 = vld [vmem:[#allocation159_spill] sm:$0xff] }
 0x35d   : >> { %v2401_v52 = vadd.f32 %v2393_v55, %v2384_v32  ;;  %v2402_v16 = vadd.f32 %v2394_v49, %v2385_v60  ;;  %v2403_v30 = vadd.f32 %v2395_v25, %v2386_v58  ;;  %v2404_v14 = vadd.f32 %v2396_v48, %v2387_v41 }
 0x35e   : >> { %v2405_v56 = vadd.f32 %v2397_v54, %v2388_v53  ;;  %v2406_v8 = vstv %s6322_s4  ;;  %v2431_v57 = vstv %s4079_s2  ;;  %v2448_v1 = vstv %s6323_s5  ;;  %s6334_s4 = sld [smem:[#allocation80_spill]] }
 0x35f   : >> { %v2407_v45 = vmul.f32 %v2406_v8, %v4165_v21  ;;  %v2408_v47 = vmul.f32 %v2406_v8, %v4167_v22  ;;  %v2409_v36 = vmul.f32 %v2406_v8, %v6296_v33  ;;  %v2410_v23 = vmul.f32 %v2406_v8, %v6314_v15  ;;  %s6335_s5 = sld [smem:[#allocation123_spill]] }
 0x360   : >> { %v2411_v34 = vmul.f32 %v2406_v8, %v6315_v2  ;;  %v2412_v9 = vmul.f32 %v2406_v8, %v6316_v29  ;;  %v2413_v39 = vmul.f32 %v2406_v8, %v6324_v38  ;;  %v2414_v42 = vmul.f32 %v2406_v8, %v4179_v28 }
 0x361   : >> { %v2415_v32 = vadd.f32 %v2407_v45, %v2398_v59  ;;  %v2416_v60 = vadd.f32 %v2408_v47, %v2399_v46  ;;  %v2417_v58 = vadd.f32 %v2409_v36, %v2400_v26  ;;  %v2418_v41 = vadd.f32 %v2410_v23, %v2401_v52 }
 0x362   : >> { %v2419_v53 = vadd.f32 %v2411_v34, %v2402_v16  ;;  %v2420_v40 = vadd.f32 %v2412_v9, %v2403_v30  ;;  %v2421_v27 = vadd.f32 %v2413_v39, %v2404_v14  ;;  %v2422_v37 = vadd.f32 %v2414_v42, %v2405_v56 }
 0x363   : >> { %v2423_v55 = vmax.f32 %v2415_v32, 0.0  ;;  %v2424_v49 = vmax.f32 %v2416_v60, 0.0  ;;  %v2425_v25 = vmax.f32 %v2417_v58, 0.0  ;;  %v2426_v48 = vmax.f32 %v2418_v41, 0.0 }
 0x364   : >> { %v2427_v54 = vmax.f32 %v2419_v53, 0.0  ;;  %v2428_v2 = vmax.f32 %v2420_v40, 0.0  ;;  %v2429_v29 = vmax.f32 %v2421_v27, 0.0  ;;  %v2430_v15 = vmax.f32 %v2422_v37, 0.0 }
 0x365   : >> { %v2432_v38 = vmul.f32 %v2431_v57, %v2423_v55  ;;  %v2433_v33 = vmul.f32 %v2431_v57, %v2424_v49  ;;  %v2434_v8 = vmul.f32 %v2431_v57, %v2425_v25  ;;  %v2435_v59 = vmul.f32 %v2431_v57, %v2426_v48 }
 0x366   : >> { %v2436_v46 = vmul.f32 %v2431_v57, %v2427_v54  ;;  %v2437_v26 = vmul.f32 %v2431_v57, %v2428_v2  ;;  %v2438_v52 = vmul.f32 %v2431_v57, %v2429_v29  ;;  %v2457_v16 = vstv %s6325_s0  ;;  %s6336_s0 = sld [smem:[#allocation81_spill]] }
 0x367   : >> { %v2439_v30 = vmul.f32 %v2431_v57, %v2430_v15  ;;  %v5484_v14 = vadd.f32 %v2432_v38, %v5435_v50  ;;  %v5487_v56 = vadd.f32 %v2433_v33, %v5438_v43  ;;  %v5490_v45 = vadd.f32 %v2434_v8, %v5441_v51 }
 0x368   : >> { %v5493_v47 = vadd.f32 %v2435_v59, %v5444_v7  ;;  %v5496_v36 = vadd.f32 %v2436_v46, %v5447_v44  ;;  %v5499_v2 = vadd.f32 %v2437_v26, %v5450_v31  ;;  %v5502_v15 = vadd.f32 %v2438_v52, %v5453_v24 }
 0x369   : >> { %v2449_v29 = vmul.f32 %v2448_v1, %v4133_v61  ;;  %v2450_v33 = vmul.f32 %v2448_v1, %v4135_v62  ;;  %v2451_v50 = vmul.f32 %v2448_v1, %v4137_v63  ;;  %v2452_v43 = vmul.f32 %v2448_v1, %v4139_v0 }
 0x36a   : >> { %v2453_v51 = vmul.f32 %v2448_v1, %v4141_v3  ;;  %v2454_v7 = vmul.f32 %v2448_v1, %v4143_v4  ;;  %v2455_v44 = vmul.f32 %v2448_v1, %v4145_v5  ;;  %v2456_v31 = vmul.f32 %v2448_v1, %v4147_v6 }
 0x36b   : >> { %v5512_v24 = vadd.f32 %v2439_v30, %v2370_v35  ;;  %v2458_v57 = vadd.f32 %v2457_v16, %v2449_v29  ;;  %v2459_v23 = vadd.f32 %v2457_v16, %v2450_v33  ;;  %v2460_v34 = vadd.f32 %v2457_v16, %v2451_v50  ;;  %v6329_v29 = vld [vmem:[#allocation155_spill] sm:$0xff]  ;;  %v6330_v50 = vld [vmem:[#allocation156_spill] sm:$0xff] }
 0x36c   : >> { %v2461_v9 = vadd.f32 %v2457_v16, %v2452_v43  ;;  %v2462_v38 = vadd.f32 %v2457_v16, %v2453_v51  ;;  %v2463_v39 = vadd.f32 %v2457_v16, %v2454_v7  ;;  %v2464_v42 = vadd.f32 %v2457_v16, %v2455_v44  ;;  %v6331_v51 = vld [vmem:[#allocation157_spill] sm:$0xff]  ;;  %v6332_v44 = vld [vmem:[#allocation158_spill] sm:$0xff] }
 0x36d   : >> { %6328 = vst [vmem:[#allocation160_spill] sm:$0xff] %v5512_v24  ;;  %v2465_v32 = vadd.f32 %v2457_v16, %v2456_v31  ;;  %v2466_v60 = vstv %s6326_s21  ;;  %v2483_v58 = vstv %s6327_s26  ;;  %v2508_v41 = vstv %s4081_s25  ;;  %s6337_s21 = sld [smem:[#allocation82_spill]] }
 0x36e   : >> { %v2467_v53 = vmul.f32 %v2466_v60, %v4149_v10  ;;  %v2468_v40 = vmul.f32 %v2466_v60, %v4151_v11  ;;  %v2469_v27 = vmul.f32 %v2466_v60, %v4153_v12  ;;  %v2470_v35 = vmul.f32 %v2466_v60, %v4155_v13  ;;  %s6341_s26 = sld [smem:[#allocation83_spill]] }
 0x36f   : >> { %v2471_v1 = vmul.f32 %v2466_v60, %v4157_v17  ;;  %v2472_v37 = vmul.f32 %v2466_v60, %v4159_v18  ;;  %v2473_v55 = vmul.f32 %v2466_v60, %v4161_v19  ;;  %v2474_v49 = vmul.f32 %v2466_v60, %v4163_v20 }
 0x370   : >> { %v2475_v25 = vadd.f32 %v2467_v53, %v2458_v57  ;;  %v2476_v48 = vadd.f32 %v2468_v40, %v2459_v23  ;;  %v2477_v54 = vadd.f32 %v2469_v27, %v2460_v34  ;;  %v2478_v8 = vadd.f32 %v2470_v35, %v2461_v9  ;;  %v6333_v57 = vld [vmem:[#allocation159_spill] sm:$0xff] }
 0x371   : >> { %v2479_v59 = vadd.f32 %v2471_v1, %v2462_v38  ;;  %v2480_v46 = vadd.f32 %v2472_v37, %v2463_v39  ;;  %v2481_v26 = vadd.f32 %v2473_v55, %v2464_v42  ;;  %v2482_v52 = vadd.f32 %v2474_v49, %v2465_v32 }
 0x372   : >> { %v2484_v16 = vmul.f32 %v2483_v58, %v4165_v21  ;;  %v2485_v30 = vmul.f32 %v2483_v58, %v4167_v22  ;;  %v2486_v33 = vmul.f32 %v2483_v58, %v6329_v29  ;;  %v2487_v43 = vmul.f32 %v2483_v58, %v6330_v50 }
 0x373   : >> { %v2488_v7 = vmul.f32 %v2483_v58, %v6331_v51  ;;  %v2489_v31 = vmul.f32 %v2483_v58, %v6332_v44  ;;  %v2490_v23 = vmul.f32 %v2483_v58, %v6333_v57  ;;  %v2491_v34 = vmul.f32 %v2483_v58, %v4179_v28 }
 0x374   : >> { %v2492_v9 = vadd.f32 %v2484_v16, %v2475_v25  ;;  %v2493_v38 = vadd.f32 %v2485_v30, %v2476_v48  ;;  %v2494_v39 = vadd.f32 %v2486_v33, %v2477_v54  ;;  %v2495_v42 = vadd.f32 %v2487_v43, %v2478_v8 }
 0x375   : >> { %v2496_v32 = vadd.f32 %v2488_v7, %v2479_v59  ;;  %v2497_v60 = vadd.f32 %v2489_v31, %v2480_v46  ;;  %v2498_v53 = vadd.f32 %v2490_v23, %v2481_v26  ;;  %v2499_v40 = vadd.f32 %v2491_v34, %v2482_v52 }
 0x376   : >> { %v2500_v27 = vmax.f32 %v2492_v9, 0.0  ;;  %v2501_v35 = vmax.f32 %v2493_v38, 0.0  ;;  %v2502_v1 = vmax.f32 %v2494_v39, 0.0  ;;  %v2503_v37 = vmax.f32 %v2495_v42, 0.0 }
 0x377   : >> { %v2504_v55 = vmax.f32 %v2496_v32, 0.0  ;;  %v2505_v49 = vmax.f32 %v2497_v60, 0.0  ;;  %v2506_v24 = vmax.f32 %v2498_v53, 0.0  ;;  %v2507_v44 = vmax.f32 %v2499_v40, 0.0 }
 0x378   : >> { %v2509_v57 = vmul.f32 %v2508_v41, %v2500_v27  ;;  %v2510_v51 = vmul.f32 %v2508_v41, %v2501_v35  ;;  %v2511_v58 = vmul.f32 %v2508_v41, %v2502_v1  ;;  %v2512_v25 = vmul.f32 %v2508_v41, %v2503_v37 }
 0x379   : >> { %v2513_v48 = vmul.f32 %v2508_v41, %v2504_v55  ;;  %v2514_v54 = vmul.f32 %v2508_v41, %v2505_v49  ;;  %v2515_v8 = vmul.f32 %v2508_v41, %v2506_v24  ;;  %v2525_v59 = vstv %s6334_s4  ;;  %s6342_s4 = sld [smem:[#allocation124_spill]] }
 0x37a   : >> { %v5534_v46 = vmul.f32 %v2508_v41, %v2507_v44  ;;  %v5537_v26 = vadd.f32 %v2509_v57, %v5484_v14  ;;  %v5540_v52 = vadd.f32 %v2510_v51, %v5487_v56  ;;  %v5543_v16 = vadd.f32 %v2511_v58, %v5490_v45 }
 0x37b   : >> { %v5546_v30 = vadd.f32 %v2512_v25, %v5493_v47  ;;  %v5549_v24 = vadd.f32 %v2513_v48, %v5496_v36  ;;  %v5552_v41 = vadd.f32 %v2514_v54, %v5499_v2  ;;  %v5555_v14 = vadd.f32 %v2515_v8, %v5502_v15 }
 0x37c   : >> { %v2526_v56 = vmul.f32 %v2525_v59, %v4133_v61  ;;  %v2527_v33 = vmul.f32 %v2525_v59, %v4135_v62  ;;  %v2528_v45 = vmul.f32 %v2525_v59, %v4137_v63  ;;  %v2529_v43 = vmul.f32 %v2525_v59, %v4139_v0 }
 0x37d   : >> { %v2530_v47 = vmul.f32 %v2525_v59, %v4141_v3  ;;  %v2531_v51 = vmul.f32 %v2525_v59, %v4143_v4  ;;  %v2532_v36 = vmul.f32 %v2525_v59, %v4145_v5  ;;  %v2533_v2 = vmul.f32 %v2525_v59, %v4147_v6 }
 0x37e   : >> { %v2534_v7 = vstv %s6335_s5  ;;  %v2543_v44 = vstv %s6336_s0  ;;  %v2560_v15 = vstv %s6337_s21  ;;  %v2585_v31 = vstv %s4083_s8  ;;  %s6343_s5 = sld [smem:[#allocation84_spill]] }
 0x37f   : >> { %v2535_v57 = vadd.f32 %v2534_v7, %v2526_v56  ;;  %v2536_v23 = vadd.f32 %v2534_v7, %v2527_v33  ;;  %v2537_v34 = vadd.f32 %v2534_v7, %v2528_v45  ;;  %v2538_v9 = vadd.f32 %v2534_v7, %v2529_v43  ;;  %s6345_s0 = sld [smem:[#allocation85_spill]] }
 0x380   : >> { %v2539_v38 = vadd.f32 %v2534_v7, %v2530_v47  ;;  %v2540_v39 = vadd.f32 %v2534_v7, %v2531_v51  ;;  %v2541_v42 = vadd.f32 %v2534_v7, %v2532_v36  ;;  %v2542_v32 = vadd.f32 %v2534_v7, %v2533_v2  ;;  %v6338_v51 = vld [vmem:[#allocation157_spill] sm:$0xff]  ;;  %v6339_v2 = vld [vmem:[#allocation158_spill] sm:$0xff]  ;;  %s6350_s21 = sld [smem:[#allocation86_spill]] }
 0x381   : >> { %v2544_v60 = vmul.f32 %v2543_v44, %v4149_v10  ;;  %v2545_v53 = vmul.f32 %v2543_v44, %v4151_v11  ;;  %v2546_v40 = vmul.f32 %v2543_v44, %v4153_v12  ;;  %v2547_v27 = vmul.f32 %v2543_v44, %v4155_v13 }
 0x382   : >> { %v2548_v35 = vmul.f32 %v2543_v44, %v4157_v17  ;;  %v2549_v1 = vmul.f32 %v2543_v44, %v4159_v18  ;;  %v2550_v37 = vmul.f32 %v2543_v44, %v4161_v19  ;;  %v2551_v55 = vmul.f32 %v2543_v44, %v4163_v20  ;;  %v6340_v44 = vld [vmem:[#allocation159_spill] sm:$0xff] }
 0x383   : >> { %v2552_v49 = vadd.f32 %v2544_v60, %v2535_v57  ;;  %v2553_v58 = vadd.f32 %v2545_v53, %v2536_v23  ;;  %v2554_v25 = vadd.f32 %v2546_v40, %v2537_v34  ;;  %v2555_v48 = vadd.f32 %v2547_v27, %v2538_v9 }
 0x384   : >> { %v2556_v54 = vadd.f32 %v2548_v35, %v2539_v38  ;;  %v2557_v8 = vadd.f32 %v2549_v1, %v2540_v39  ;;  %v2558_v59 = vadd.f32 %v2550_v37, %v2541_v42  ;;  %v2559_v56 = vadd.f32 %v2551_v55, %v2542_v32 }
 0x385   : >> { %v2561_v33 = vmul.f32 %v2560_v15, %v4165_v21  ;;  %v2562_v45 = vmul.f32 %v2560_v15, %v4167_v22  ;;  %v2563_v43 = vmul.f32 %v2560_v15, %v6329_v29  ;;  %v2564_v47 = vmul.f32 %v2560_v15, %v6330_v50 }
 0x386   : >> { %v2565_v36 = vmul.f32 %v2560_v15, %v6338_v51  ;;  %v2566_v7 = vmul.f32 %v2560_v15, %v6339_v2  ;;  %v2567_v57 = vmul.f32 %v2560_v15, %v6340_v44  ;;  %v2568_v23 = vmul.f32 %v2560_v15, %v4179_v28 }
 0x387   : >> { %v2569_v34 = vadd.f32 %v2561_v33, %v2552_v49  ;;  %v2570_v9 = vadd.f32 %v2562_v45, %v2553_v58  ;;  %v2571_v38 = vadd.f32 %v2563_v43, %v2554_v25  ;;  %v2572_v39 = vadd.f32 %v2564_v47, %v2555_v48  ;;  %v6344_v58 = vld [vmem:[#allocation160_spill] sm:$0xff] }
 0x388   : >> { %v2573_v42 = vadd.f32 %v2565_v36, %v2556_v54  ;;  %v2574_v32 = vadd.f32 %v2566_v7, %v2557_v8  ;;  %v2575_v60 = vadd.f32 %v2567_v57, %v2558_v59  ;;  %v2576_v53 = vadd.f32 %v2568_v23, %v2559_v56 }
 0x389   : >> { %v2577_v40 = vmax.f32 %v2569_v34, 0.0  ;;  %v2578_v27 = vmax.f32 %v2570_v9, 0.0  ;;  %v2579_v35 = vmax.f32 %v2571_v38, 0.0  ;;  %v2580_v1 = vmax.f32 %v2572_v39, 0.0 }
 0x38a   : >> { %v2581_v37 = vmax.f32 %v2573_v42, 0.0  ;;  %v2582_v55 = vmax.f32 %v2574_v32, 0.0  ;;  %v2583_v51 = vmax.f32 %v2575_v60, 0.0  ;;  %v2584_v2 = vmax.f32 %v2576_v53, 0.0 }
 0x38b   : >> { %v2586_v50 = vmul.f32 %v2585_v31, %v2577_v40  ;;  %v2587_v44 = vmul.f32 %v2585_v31, %v2578_v27  ;;  %v2588_v15 = vmul.f32 %v2585_v31, %v2579_v35  ;;  %v2589_v49 = vmul.f32 %v2585_v31, %v2580_v1 }
 0x38c   : >> { %v5587_v25 = vadd.f32 %v5534_v46, %v6344_v58  ;;  %v2590_v48 = vmul.f32 %v2585_v31, %v2581_v37  ;;  %v2591_v54 = vmul.f32 %v2585_v31, %v2582_v55  ;;  %v2592_v8 = vmul.f32 %v2585_v31, %v2583_v51 }
 0x38d   : >> { %v5589_v59 = vmul.f32 %v2585_v31, %v2584_v2  ;;  %v5592_v56 = vadd.f32 %v2586_v50, %v5537_v26  ;;  %v5595_v33 = vadd.f32 %v2587_v44, %v5540_v52  ;;  %v5598_v45 = vadd.f32 %v2588_v15, %v5543_v16 }
 0x38e   : >> { %v5601_v43 = vadd.f32 %v2589_v49, %v5546_v30  ;;  %v5604_v46 = vadd.f32 %v2590_v48, %v5549_v24  ;;  %v5607_v47 = vadd.f32 %v2591_v54, %v5552_v41  ;;  %v5610_v31 = vadd.f32 %v2592_v8, %v5555_v14 }
 0x38f   : >> { %v2602_v50 = vstv %s6341_s26  ;;  %v2611_v26 = vstv %s6342_s4  ;;  %v2620_v51 = vstv %s6343_s5  ;;  %v2637_v52 = vstv %s6345_s0  ;;  %s6351_s26 = sld [smem:[#allocation125_spill]] }
 0x390   : >> { %v2603_v36 = vmul.f32 %v2602_v50, %v4133_v61  ;;  %v2604_v16 = vmul.f32 %v2602_v50, %v4135_v62  ;;  %v2605_v30 = vmul.f32 %v2602_v50, %v4137_v63  ;;  %v2606_v2 = vmul.f32 %v2602_v50, %v4139_v0  ;;  %s6352_s4 = sld [smem:[#allocation87_spill]] }
 0x391   : >> { %v2607_v24 = vmul.f32 %v2602_v50, %v4141_v3  ;;  %v2608_v41 = vmul.f32 %v2602_v50, %v4143_v4  ;;  %v2609_v7 = vmul.f32 %v2602_v50, %v4145_v5  ;;  %v2610_v14 = vmul.f32 %v2602_v50, %v4147_v6  ;;  %s6353_s5 = sld [smem:[#allocation88_spill]] }
 0x392   : >> { %v2612_v44 = vadd.f32 %v2611_v26, %v2603_v36  ;;  %v2613_v57 = vadd.f32 %v2611_v26, %v2604_v16  ;;  %v2614_v23 = vadd.f32 %v2611_v26, %v2605_v30  ;;  %v2615_v34 = vadd.f32 %v2611_v26, %v2606_v2  ;;  %v6346_v30 = vld [vmem:[#allocation156_spill] sm:$0xff]  ;;  %s6354_s0 = sld [smem:[#allocation89_spill]] }
 0x393   : >> { %v2616_v9 = vadd.f32 %v2611_v26, %v2607_v24  ;;  %v2617_v38 = vadd.f32 %v2611_v26, %v2608_v41  ;;  %v2618_v39 = vadd.f32 %v2611_v26, %v2609_v7  ;;  %v2619_v42 = vadd.f32 %v2611_v26, %v2610_v14  ;;  %v6347_v24 = vld [vmem:[#allocation157_spill] sm:$0xff]  ;;  %v6348_v7 = vld [vmem:[#allocation158_spill] sm:$0xff]  ;;  %v6349_v14 = vld [vmem:[#allocation159_spill] sm:$0xff] }
 0x394   : >> { %v2621_v32 = vmul.f32 %v2620_v51, %v4149_v10  ;;  %v2622_v60 = vmul.f32 %v2620_v51, %v4151_v11  ;;  %v2623_v53 = vmul.f32 %v2620_v51, %v4153_v12  ;;  %v2624_v40 = vmul.f32 %v2620_v51, %v4155_v13 }
 0x395   : >> { %v2625_v27 = vmul.f32 %v2620_v51, %v4157_v17  ;;  %v2626_v35 = vmul.f32 %v2620_v51, %v4159_v18  ;;  %v2627_v1 = vmul.f32 %v2620_v51, %v4161_v19  ;;  %v2628_v37 = vmul.f32 %v2620_v51, %v4163_v20 }
 0x396   : >> { %v2629_v55 = vadd.f32 %v2621_v32, %v2612_v44  ;;  %v2630_v15 = vadd.f32 %v2622_v60, %v2613_v57  ;;  %v2631_v49 = vadd.f32 %v2623_v53, %v2614_v23  ;;  %v2632_v58 = vadd.f32 %v2624_v40, %v2615_v34 }
 0x397   : >> { %v2633_v48 = vadd.f32 %v2625_v27, %v2616_v9  ;;  %v2634_v54 = vadd.f32 %v2626_v35, %v2617_v38  ;;  %v2635_v8 = vadd.f32 %v2627_v1, %v2618_v39  ;;  %v2636_v50 = vadd.f32 %v2628_v37, %v2619_v42 }
 0x398   : >> { %v2638_v26 = vmul.f32 %v2637_v52, %v4165_v21  ;;  %v2639_v36 = vmul.f32 %v2637_v52, %v4167_v22  ;;  %v2640_v16 = vmul.f32 %v2637_v52, %v6329_v29  ;;  %v2641_v2 = vmul.f32 %v2637_v52, %v6346_v30 }
 0x399   : >> { %v2642_v41 = vmul.f32 %v2637_v52, %v6347_v24  ;;  %v2643_v51 = vmul.f32 %v2637_v52, %v6348_v7  ;;  %v2644_v44 = vmul.f32 %v2637_v52, %v6349_v14  ;;  %v2645_v57 = vmul.f32 %v2637_v52, %v4179_v28 }
 0x39a   : >> { %v2646_v23 = vadd.f32 %v2638_v26, %v2629_v55  ;;  %v2647_v34 = vadd.f32 %v2639_v36, %v2630_v15  ;;  %v2648_v9 = vadd.f32 %v2640_v16, %v2631_v49  ;;  %v2649_v38 = vadd.f32 %v2641_v2, %v2632_v58 }
 0x39b   : >> { %v2650_v39 = vadd.f32 %v2642_v41, %v2633_v48  ;;  %v2651_v42 = vadd.f32 %v2643_v51, %v2634_v54  ;;  %v2652_v32 = vadd.f32 %v2644_v44, %v2635_v8  ;;  %v2653_v60 = vadd.f32 %v2645_v57, %v2636_v50 }
 0x39c   : >> { %v2654_v53 = vmax.f32 %v2646_v23, 0.0  ;;  %v2655_v40 = vmax.f32 %v2647_v34, 0.0  ;;  %v2656_v27 = vmax.f32 %v2648_v9, 0.0  ;;  %v2657_v35 = vmax.f32 %v2649_v38, 0.0 }
 0x39d   : >> { %v2658_v1 = vmax.f32 %v2650_v39, 0.0  ;;  %v2659_v37 = vmax.f32 %v2651_v42, 0.0  ;;  %v2660_v14 = vmax.f32 %v2652_v32, 0.0  ;;  %v2661_v52 = vmax.f32 %v2653_v60, 0.0 }
 0x39e   : >> { %v2601_v55 = vadd.f32 %v5589_v59, %v5587_v25  ;;  %v2662_v15 = vstv %s4085_s29  ;;  %v2679_v49 = vstv %s6350_s21  ;;  %v2688_v58 = vstv %s6351_s26  ;;  %s6356_s21 = sld [smem:[#allocation126_spill]] }
 0x39f   : >> { %v2663_v26 = vmul.f32 %v2662_v15, %v2654_v53  ;;  %v2664_v48 = vmul.f32 %v2662_v15, %v2655_v40  ;;  %v2665_v54 = vmul.f32 %v2662_v15, %v2656_v27  ;;  %v2666_v8 = vmul.f32 %v2662_v15, %v2657_v35  ;;  %s6357_s26 = sld [smem:[#allocation90_spill]] }
 0x3a0   : >> { %v2667_v50 = vmul.f32 %v2662_v15, %v2658_v1  ;;  %v2668_v36 = vmul.f32 %v2662_v15, %v2659_v37  ;;  %v2669_v16 = vmul.f32 %v2662_v15, %v2660_v14  ;;  %v2697_v2 = vstv %s6352_s4  ;;  %s6358_s4 = sld [smem:[#allocation91_spill]] }
 0x3a1   : >> { %v2670_v41 = vmul.f32 %v2662_v15, %v2661_v52  ;;  %v5647_v51 = vadd.f32 %v2663_v26, %v5592_v56  ;;  %v5650_v44 = vadd.f32 %v2664_v48, %v5595_v33  ;;  %v5653_v25 = vadd.f32 %v2665_v54, %v5598_v45 }
 0x3a2   : >> { %v5656_v59 = vadd.f32 %v2666_v8, %v5601_v43  ;;  %v5659_v57 = vadd.f32 %v2667_v50, %v5604_v46  ;;  %v5662_v23 = vadd.f32 %v2668_v36, %v5607_v47  ;;  %v5665_v14 = vadd.f32 %v2669_v16, %v5610_v31 }
 0x3a3   : >> { %v2680_v56 = vmul.f32 %v2679_v49, %v4133_v61  ;;  %v2681_v33 = vmul.f32 %v2679_v49, %v4135_v62  ;;  %v2682_v34 = vmul.f32 %v2679_v49, %v4137_v63  ;;  %v2683_v45 = vmul.f32 %v2679_v49, %v4139_v0 }
 0x3a4   : >> { %v2684_v43 = vmul.f32 %v2679_v49, %v4141_v3  ;;  %v2685_v9 = vmul.f32 %v2679_v49, %v4143_v4  ;;  %v2686_v46 = vmul.f32 %v2679_v49, %v4145_v5  ;;  %v2687_v47 = vmul.f32 %v2679_v49, %v4147_v6 }
 0x3a5   : >> { %v2689_v38 = vadd.f32 %v2688_v58, %v2680_v56  ;;  %v2690_v39 = vadd.f32 %v2688_v58, %v2681_v33  ;;  %v2691_v31 = vadd.f32 %v2688_v58, %v2682_v34  ;;  %v2692_v42 = vadd.f32 %v2688_v58, %v2683_v45 }
 0x3a6   : >> { %v2693_v32 = vadd.f32 %v2688_v58, %v2684_v43  ;;  %v2694_v60 = vadd.f32 %v2688_v58, %v2685_v9  ;;  %v2695_v53 = vadd.f32 %v2688_v58, %v2686_v46  ;;  %v2696_v40 = vadd.f32 %v2688_v58, %v2687_v47 }
 0x3a7   : >> { %v2698_v27 = vmul.f32 %v2697_v2, %v4149_v10  ;;  %v2699_v35 = vmul.f32 %v2697_v2, %v4151_v11  ;;  %v2700_v1 = vmul.f32 %v2697_v2, %v4153_v12  ;;  %v2701_v37 = vmul.f32 %v2697_v2, %v4155_v13 }
 0x3a8   : >> { %v2702_v52 = vmul.f32 %v2697_v2, %v4157_v17  ;;  %v2703_v15 = vmul.f32 %v2697_v2, %v4159_v18  ;;  %v2704_v49 = vmul.f32 %v2697_v2, %v4161_v19  ;;  %v2705_v26 = vmul.f32 %v2697_v2, %v4163_v20 }
 0x3a9   : >> { %v2678_v58 = vadd.f32 %v2670_v41, %v2601_v55  ;;  %v2706_v48 = vadd.f32 %v2698_v27, %v2689_v38  ;;  %v2707_v54 = vadd.f32 %v2699_v35, %v2690_v39  ;;  %v2708_v8 = vadd.f32 %v2700_v1, %v2691_v31  ;;  %v6355_v38 = vld [vmem:[#allocation159_spill] sm:$0xff] }
 0x3aa   : >> { %v2709_v50 = vadd.f32 %v2701_v37, %v2692_v42  ;;  %v2710_v36 = vadd.f32 %v2702_v52, %v2693_v32  ;;  %v2711_v16 = vadd.f32 %v2703_v15, %v2694_v60  ;;  %v2712_v56 = vadd.f32 %v2704_v49, %v2695_v53 }
 0x3ab   : >> { %v2713_v33 = vadd.f32 %v2705_v26, %v2696_v40  ;;  %v2714_v34 = vstv %s6353_s5  ;;  %v2739_v45 = vstv %s4087_s27  ;;  %v2756_v43 = vstv %s6354_s0  ;;  %s6359_s5 = sld [smem:[#allocation150_spill]] }
 0x3ac   : >> { %v2715_v9 = vmul.f32 %v2714_v34, %v4165_v21  ;;  %v2716_v46 = vmul.f32 %v2714_v34, %v4167_v22  ;;  %v2717_v47 = vmul.f32 %v2714_v34, %v6329_v29  ;;  %v2718_v2 = vmul.f32 %v2714_v34, %v6346_v30  ;;  %s6366_s0 = sld [smem:[#allocation92_spill]] }
 0x3ad   : >> { %v2719_v55 = vmul.f32 %v2714_v34, %v6347_v24  ;;  %v2720_v41 = vmul.f32 %v2714_v34, %v6348_v7  ;;  %v2721_v39 = vmul.f32 %v2714_v34, %v6355_v38  ;;  %v2722_v31 = vmul.f32 %v2714_v34, %v4179_v28 }
 0x3ae   : >> { %v2723_v42 = vadd.f32 %v2715_v9, %v2706_v48  ;;  %v2724_v32 = vadd.f32 %v2716_v46, %v2707_v54  ;;  %v2725_v60 = vadd.f32 %v2717_v47, %v2708_v8  ;;  %v2726_v53 = vadd.f32 %v2718_v2, %v2709_v50 }
 0x3af   : >> { %v2727_v40 = vadd.f32 %v2719_v55, %v2710_v36  ;;  %v2728_v27 = vadd.f32 %v2720_v41, %v2711_v16  ;;  %v2729_v35 = vadd.f32 %v2721_v39, %v2712_v56  ;;  %v2730_v1 = vadd.f32 %v2722_v31, %v2713_v33 }
 0x3b0   : >> { %v2731_v37 = vmax.f32 %v2723_v42, 0.0  ;;  %v2732_v52 = vmax.f32 %v2724_v32, 0.0  ;;  %v2733_v15 = vmax.f32 %v2725_v60, 0.0  ;;  %v2734_v49 = vmax.f32 %v2726_v53, 0.0 }
 0x3b1   : >> { %v2735_v26 = vmax.f32 %v2727_v40, 0.0  ;;  %v2736_v24 = vmax.f32 %v2728_v27, 0.0  ;;  %v2737_v7 = vmax.f32 %v2729_v35, 0.0  ;;  %v2738_v30 = vmax.f32 %v2730_v1, 0.0 }
 0x3b2   : >> { %v2740_v38 = vmul.f32 %v2739_v45, %v2731_v37  ;;  %v2741_v29 = vmul.f32 %v2739_v45, %v2732_v52  ;;  %v2742_v34 = vmul.f32 %v2739_v45, %v2733_v15  ;;  %v2743_v48 = vmul.f32 %v2739_v45, %v2734_v49 }
 0x3b3   : >> { %v2744_v54 = vmul.f32 %v2739_v45, %v2735_v26  ;;  %v2745_v8 = vmul.f32 %v2739_v45, %v2736_v24  ;;  %v2746_v50 = vmul.f32 %v2739_v45, %v2737_v7  ;;  %v2765_v36 = vstv %s6356_s21  ;;  %s6367_s21 = sld [smem:[#allocation127_spill]] }
 0x3b4   : >> { %v2747_v16 = vmul.f32 %v2739_v45, %v2738_v30  ;;  %v5696_v56 = vadd.f32 %v2740_v38, %v5647_v51  ;;  %v5699_v33 = vadd.f32 %v2741_v29, %v5650_v44  ;;  %v5702_v9 = vadd.f32 %v2742_v34, %v5653_v25 }
 0x3b5   : >> { %v5705_v46 = vadd.f32 %v2743_v48, %v5656_v59  ;;  %v5708_v47 = vadd.f32 %v2744_v54, %v5659_v57  ;;  %v5711_v24 = vadd.f32 %v2745_v8, %v5662_v23  ;;  %v5714_v30 = vadd.f32 %v2746_v50, %v5665_v14 }
 0x3b6   : >> { %v2757_v7 = vmul.f32 %v2756_v43, %v4133_v61  ;;  %v2758_v29 = vmul.f32 %v2756_v43, %v4135_v62  ;;  %v2759_v51 = vmul.f32 %v2756_v43, %v4137_v63  ;;  %v2760_v44 = vmul.f32 %v2756_v43, %v4139_v0 }
 0x3b7   : >> { %v2761_v25 = vmul.f32 %v2756_v43, %v4141_v3  ;;  %v2762_v59 = vmul.f32 %v2756_v43, %v4143_v4  ;;  %v2763_v57 = vmul.f32 %v2756_v43, %v4145_v5  ;;  %v2764_v23 = vmul.f32 %v2756_v43, %v4147_v6 }
 0x3b8   : >> { %v5724_v14 = vadd.f32 %v2747_v16, %v2678_v58  ;;  %v2766_v45 = vadd.f32 %v2765_v36, %v2757_v7  ;;  %v2767_v2 = vadd.f32 %v2765_v36, %v2758_v29  ;;  %v2768_v55 = vadd.f32 %v2765_v36, %v2759_v51  ;;  %v6361_v7 = vld [vmem:[#allocation155_spill] sm:$0xff]  ;;  %v6362_v51 = vld [vmem:[#allocation156_spill] sm:$0xff] }
 0x3b9   : >> { %v2769_v41 = vadd.f32 %v2765_v36, %v2760_v44  ;;  %v2770_v38 = vadd.f32 %v2765_v36, %v2761_v25  ;;  %v2771_v39 = vadd.f32 %v2765_v36, %v2762_v59  ;;  %v2772_v31 = vadd.f32 %v2765_v36, %v2763_v57  ;;  %v6363_v25 = vld [vmem:[#allocation157_spill] sm:$0xff]  ;;  %v6364_v57 = vld [vmem:[#allocation158_spill] sm:$0xff] }
 0x3ba   : >> { %6360 = vst [vmem:[#allocation160_spill] sm:$0xff] %v5724_v14  ;;  %v2773_v42 = vadd.f32 %v2765_v36, %v2764_v23  ;;  %v2774_v32 = vstv %s6357_s26  ;;  %v2791_v60 = vstv %s6358_s4  ;;  %v2816_v53 = vstv %s6359_s5  ;;  %s6368_s26 = sld [smem:[#allocation93_spill]] }
 0x3bb   : >> { %v2775_v40 = vmul.f32 %v2774_v32, %v4149_v10  ;;  %v2776_v27 = vmul.f32 %v2774_v32, %v4151_v11  ;;  %v2777_v35 = vmul.f32 %v2774_v32, %v4153_v12  ;;  %v2778_v58 = vmul.f32 %v2774_v32, %v4155_v13  ;;  %s6369_s4 = sld [smem:[#allocation94_spill]] }
 0x3bc   : >> { %v2779_v43 = vmul.f32 %v2774_v32, %v4157_v17  ;;  %v2780_v1 = vmul.f32 %v2774_v32, %v4159_v18  ;;  %v2781_v37 = vmul.f32 %v2774_v32, %v4161_v19  ;;  %v2782_v52 = vmul.f32 %v2774_v32, %v4163_v20  ;;  %s6370_s5 = sld [smem:[#allocation151_spill]] }
 0x3bd   : >> { %v2783_v15 = vadd.f32 %v2775_v40, %v2766_v45  ;;  %v2784_v49 = vadd.f32 %v2776_v27, %v2767_v2  ;;  %v2785_v26 = vadd.f32 %v2777_v35, %v2768_v55  ;;  %v2786_v34 = vadd.f32 %v2778_v58, %v2769_v41  ;;  %v6365_v45 = vld [vmem:[#allocation159_spill] sm:$0xff] }
 0x3be   : >> { %v2787_v48 = vadd.f32 %v2779_v43, %v2770_v38  ;;  %v2788_v54 = vadd.f32 %v2780_v1, %v2771_v39  ;;  %v2789_v8 = vadd.f32 %v2781_v37, %v2772_v31  ;;  %v2790_v50 = vadd.f32 %v2782_v52, %v2773_v42 }
 0x3bf   : >> { %v2792_v36 = vmul.f32 %v2791_v60, %v4165_v21  ;;  %v2793_v16 = vmul.f32 %v2791_v60, %v4167_v22  ;;  %v2794_v29 = vmul.f32 %v2791_v60, %v6361_v7  ;;  %v2795_v44 = vmul.f32 %v2791_v60, %v6362_v51 }
 0x3c0   : >> { %v2796_v59 = vmul.f32 %v2791_v60, %v6363_v25  ;;  %v2797_v23 = vmul.f32 %v2791_v60, %v6364_v57  ;;  %v2798_v2 = vmul.f32 %v2791_v60, %v6365_v45  ;;  %v2799_v55 = vmul.f32 %v2791_v60, %v4179_v28 }
 0x3c1   : >> { %v2800_v41 = vadd.f32 %v2792_v36, %v2783_v15  ;;  %v2801_v38 = vadd.f32 %v2793_v16, %v2784_v49  ;;  %v2802_v39 = vadd.f32 %v2794_v29, %v2785_v26  ;;  %v2803_v31 = vadd.f32 %v2795_v44, %v2786_v34 }
 0x3c2   : >> { %v2804_v42 = vadd.f32 %v2796_v59, %v2787_v48  ;;  %v2805_v32 = vadd.f32 %v2797_v23, %v2788_v54  ;;  %v2806_v40 = vadd.f32 %v2798_v2, %v2789_v8  ;;  %v2807_v27 = vadd.f32 %v2799_v55, %v2790_v50 }
 0x3c3   : >> { %v2808_v35 = vmax.f32 %v2800_v41, 0.0  ;;  %v2809_v58 = vmax.f32 %v2801_v38, 0.0  ;;  %v2810_v43 = vmax.f32 %v2802_v39, 0.0  ;;  %v2811_v1 = vmax.f32 %v2803_v31, 0.0 }
 0x3c4   : >> { %v2812_v37 = vmax.f32 %v2804_v42, 0.0  ;;  %v2813_v52 = vmax.f32 %v2805_v32, 0.0  ;;  %v2814_v14 = vmax.f32 %v2806_v40, 0.0  ;;  %v2815_v57 = vmax.f32 %v2807_v27, 0.0 }
 0x3c5   : >> { %v2817_v45 = vmul.f32 %v2816_v53, %v2808_v35  ;;  %v2818_v25 = vmul.f32 %v2816_v53, %v2809_v58  ;;  %v2819_v60 = vmul.f32 %v2816_v53, %v2810_v43  ;;  %v2820_v15 = vmul.f32 %v2816_v53, %v2811_v1 }
 0x3c6   : >> { %v2821_v49 = vmul.f32 %v2816_v53, %v2812_v37  ;;  %v2822_v26 = vmul.f32 %v2816_v53, %v2813_v52  ;;  %v2823_v34 = vmul.f32 %v2816_v53, %v2814_v14  ;;  %v2833_v48 = vstv %s6366_s0  ;;  %s6374_s0 = sld [smem:[#allocation95_spill]] }
 0x3c7   : >> { %v5746_v54 = vmul.f32 %v2816_v53, %v2815_v57  ;;  %v5749_v8 = vadd.f32 %v2817_v45, %v5696_v56  ;;  %v5752_v50 = vadd.f32 %v2818_v25, %v5699_v33  ;;  %v5755_v36 = vadd.f32 %v2819_v60, %v5702_v9 }
 0x3c8   : >> { %v5758_v16 = vadd.f32 %v2820_v15, %v5705_v46  ;;  %v5761_v14 = vadd.f32 %v2821_v49, %v5708_v47  ;;  %v5764_v53 = vadd.f32 %v2822_v26, %v5711_v24  ;;  %v5767_v56 = vadd.f32 %v2823_v34, %v5714_v30 }
 0x3c9   : >> { %v2834_v33 = vmul.f32 %v2833_v48, %v4133_v61  ;;  %v2835_v29 = vmul.f32 %v2833_v48, %v4135_v62  ;;  %v2836_v9 = vmul.f32 %v2833_v48, %v4137_v63  ;;  %v2837_v44 = vmul.f32 %v2833_v48, %v4139_v0 }
 0x3ca   : >> { %v2838_v46 = vmul.f32 %v2833_v48, %v4141_v3  ;;  %v2839_v25 = vmul.f32 %v2833_v48, %v4143_v4  ;;  %v2840_v47 = vmul.f32 %v2833_v48, %v4145_v5  ;;  %v2841_v24 = vmul.f32 %v2833_v48, %v4147_v6 }
 0x3cb   : >> { %v2842_v59 = vstv %s6367_s21  ;;  %v2851_v57 = vstv %s6368_s26  ;;  %v2868_v30 = vstv %s6369_s4  ;;  %v2893_v23 = vstv %s6370_s5  ;;  %s6375_s21 = sld [smem:[#allocation128_spill]] }
 0x3cc   : >> { %v2843_v45 = vadd.f32 %v2842_v59, %v2834_v33  ;;  %v2844_v2 = vadd.f32 %v2842_v59, %v2835_v29  ;;  %v2845_v55 = vadd.f32 %v2842_v59, %v2836_v9  ;;  %v2846_v41 = vadd.f32 %v2842_v59, %v2837_v44  ;;  %s6376_s26 = sld [smem:[#allocation96_spill]] }
 0x3cd   : >> { %v2847_v38 = vadd.f32 %v2842_v59, %v2838_v46  ;;  %v2848_v39 = vadd.f32 %v2842_v59, %v2839_v25  ;;  %v2849_v31 = vadd.f32 %v2842_v59, %v2840_v47  ;;  %v2850_v42 = vadd.f32 %v2842_v59, %v2841_v24  ;;  %v6371_v25 = vld [vmem:[#allocation157_spill] sm:$0xff]  ;;  %v6372_v24 = vld [vmem:[#allocation158_spill] sm:$0xff]  ;;  %s6378_s4 = sld [smem:[#allocation97_spill]] }
 0x3ce   : >> { %v2852_v32 = vmul.f32 %v2851_v57, %v4149_v10  ;;  %v2853_v40 = vmul.f32 %v2851_v57, %v4151_v11  ;;  %v2854_v27 = vmul.f32 %v2851_v57, %v4153_v12  ;;  %v2855_v35 = vmul.f32 %v2851_v57, %v4155_v13  ;;  %s6383_s5 = sld [smem:[#allocation152_spill]] }
 0x3cf   : >> { %v2856_v58 = vmul.f32 %v2851_v57, %v4157_v17  ;;  %v2857_v43 = vmul.f32 %v2851_v57, %v4159_v18  ;;  %v2858_v1 = vmul.f32 %v2851_v57, %v4161_v19  ;;  %v2859_v37 = vmul.f32 %v2851_v57, %v4163_v20  ;;  %v6373_v57 = vld [vmem:[#allocation159_spill] sm:$0xff] }
 0x3d0   : >> { %v2860_v52 = vadd.f32 %v2852_v32, %v2843_v45  ;;  %v2861_v60 = vadd.f32 %v2853_v40, %v2844_v2  ;;  %v2862_v15 = vadd.f32 %v2854_v27, %v2845_v55  ;;  %v2863_v49 = vadd.f32 %v2855_v35, %v2846_v41 }
 0x3d1   : >> { %v2864_v26 = vadd.f32 %v2856_v58, %v2847_v38  ;;  %v2865_v34 = vadd.f32 %v2857_v43, %v2848_v39  ;;  %v2866_v48 = vadd.f32 %v2858_v1, %v2849_v31  ;;  %v2867_v33 = vadd.f32 %v2859_v37, %v2850_v42 }
 0x3d2   : >> { %v2869_v29 = vmul.f32 %v2868_v30, %v4165_v21  ;;  %v2870_v9 = vmul.f32 %v2868_v30, %v4167_v22  ;;  %v2871_v44 = vmul.f32 %v2868_v30, %v6361_v7  ;;  %v2872_v46 = vmul.f32 %v2868_v30, %v6362_v51 }
 0x3d3   : >> { %v2873_v47 = vmul.f32 %v2868_v30, %v6371_v25  ;;  %v2874_v59 = vmul.f32 %v2868_v30, %v6372_v24  ;;  %v2875_v45 = vmul.f32 %v2868_v30, %v6373_v57  ;;  %v2876_v2 = vmul.f32 %v2868_v30, %v4179_v28 }
 0x3d4   : >> { %v2877_v55 = vadd.f32 %v2869_v29, %v2860_v52  ;;  %v2878_v41 = vadd.f32 %v2870_v9, %v2861_v60  ;;  %v2879_v38 = vadd.f32 %v2871_v44, %v2862_v15  ;;  %v2880_v39 = vadd.f32 %v2872_v46, %v2863_v49  ;;  %v6377_v60 = vld [vmem:[#allocation160_spill] sm:$0xff] }
 0x3d5   : >> { %v2881_v31 = vadd.f32 %v2873_v47, %v2864_v26  ;;  %v2882_v42 = vadd.f32 %v2874_v59, %v2865_v34  ;;  %v2883_v32 = vadd.f32 %v2875_v45, %v2866_v48  ;;  %v2884_v40 = vadd.f32 %v2876_v2, %v2867_v33 }
 0x3d6   : >> { %v2885_v27 = vmax.f32 %v2877_v55, 0.0  ;;  %v2886_v35 = vmax.f32 %v2878_v41, 0.0  ;;  %v2887_v58 = vmax.f32 %v2879_v38, 0.0  ;;  %v2888_v43 = vmax.f32 %v2880_v39, 0.0 }
 0x3d7   : >> { %v2889_v1 = vmax.f32 %v2881_v31, 0.0  ;;  %v2890_v37 = vmax.f32 %v2882_v42, 0.0  ;;  %v2891_v25 = vmax.f32 %v2883_v32, 0.0  ;;  %v2892_v24 = vmax.f32 %v2884_v40, 0.0 }
 0x3d8   : >> { %v2894_v51 = vmul.f32 %v2893_v23, %v2885_v27  ;;  %v2895_v57 = vmul.f32 %v2893_v23, %v2886_v35  ;;  %v2896_v30 = vmul.f32 %v2893_v23, %v2887_v58  ;;  %v2897_v52 = vmul.f32 %v2893_v23, %v2888_v43 }
 0x3d9   : >> { %v5799_v15 = vadd.f32 %v5746_v54, %v6377_v60  ;;  %v2898_v49 = vmul.f32 %v2893_v23, %v2889_v1  ;;  %v2899_v26 = vmul.f32 %v2893_v23, %v2890_v37  ;;  %v2900_v34 = vmul.f32 %v2893_v23, %v2891_v25 }
 0x3da   : >> { %v5801_v48 = vmul.f32 %v2893_v23, %v2892_v24  ;;  %v5804_v33 = vadd.f32 %v2894_v51, %v5749_v8  ;;  %v5807_v29 = vadd.f32 %v2895_v57, %v5752_v50  ;;  %v5810_v9 = vadd.f32 %v2896_v30, %v5755_v36 }
 0x3db   : >> { %v5813_v44 = vadd.f32 %v2897_v52, %v5758_v16  ;;  %v5816_v54 = vadd.f32 %v2898_v49, %v5761_v14  ;;  %v5819_v46 = vadd.f32 %v2899_v26, %v5764_v53  ;;  %v5822_v23 = vadd.f32 %v2900_v34, %v5767_v56 }
 0x3dc   : >> { %v2910_v51 = vstv %s6374_s0  ;;  %v2919_v8 = vstv %s6375_s21  ;;  %v2928_v25 = vstv %s6376_s26  ;;  %v2945_v50 = vstv %s6378_s4  ;;  %s6384_s0 = sld [smem:[#allocation98_spill]] }
 0x3dd   : >> { %v2911_v47 = vmul.f32 %v2910_v51, %v4133_v61  ;;  %v2912_v36 = vmul.f32 %v2910_v51, %v4135_v62  ;;  %v2913_v16 = vmul.f32 %v2910_v51, %v4137_v63  ;;  %v2914_v24 = vmul.f32 %v2910_v51, %v4139_v0  ;;  %s6385_s21 = sld [smem:[#allocation129_spill]] }
 0x3de   : >> { %v2915_v14 = vmul.f32 %v2910_v51, %v4141_v3  ;;  %v2916_v53 = vmul.f32 %v2910_v51, %v4143_v4  ;;  %v2917_v59 = vmul.f32 %v2910_v51, %v4145_v5  ;;  %v2918_v56 = vmul.f32 %v2910_v51, %v4147_v6  ;;  %s6386_s26 = sld [smem:[#allocation99_spill]] }
 0x3df   : >> { %v2920_v57 = vadd.f32 %v2919_v8, %v2911_v47  ;;  %v2921_v45 = vadd.f32 %v2919_v8, %v2912_v36  ;;  %v2922_v2 = vadd.f32 %v2919_v8, %v2913_v16  ;;  %v2923_v55 = vadd.f32 %v2919_v8, %v2914_v24  ;;  %v6379_v16 = vld [vmem:[#allocation156_spill] sm:$0xff]  ;;  %s6387_s4 = sld [smem:[#allocation100_spill]] }
 0x3e0   : >> { %v2924_v41 = vadd.f32 %v2919_v8, %v2915_v14  ;;  %v2925_v38 = vadd.f32 %v2919_v8, %v2916_v53  ;;  %v2926_v39 = vadd.f32 %v2919_v8, %v2917_v59  ;;  %v2927_v31 = vadd.f32 %v2919_v8, %v2918_v56  ;;  %v6380_v14 = vld [vmem:[#allocation157_spill] sm:$0xff]  ;;  %v6381_v59 = vld [vmem:[#allocation158_spill] sm:$0xff]  ;;  %v6382_v56 = vld [vmem:[#allocation159_spill] sm:$0xff] }
 0x3e1   : >> { %v2929_v42 = vmul.f32 %v2928_v25, %v4149_v10  ;;  %v2930_v32 = vmul.f32 %v2928_v25, %v4151_v11  ;;  %v2931_v40 = vmul.f32 %v2928_v25, %v4153_v12  ;;  %v2932_v27 = vmul.f32 %v2928_v25, %v4155_v13 }
 0x3e2   : >> { %v2933_v35 = vmul.f32 %v2928_v25, %v4157_v17  ;;  %v2934_v58 = vmul.f32 %v2928_v25, %v4159_v18  ;;  %v2935_v43 = vmul.f32 %v2928_v25, %v4161_v19  ;;  %v2936_v1 = vmul.f32 %v2928_v25, %v4163_v20 }
 0x3e3   : >> { %v2937_v37 = vadd.f32 %v2929_v42, %v2920_v57  ;;  %v2938_v30 = vadd.f32 %v2930_v32, %v2921_v45  ;;  %v2939_v52 = vadd.f32 %v2931_v40, %v2922_v2  ;;  %v2940_v60 = vadd.f32 %v2932_v27, %v2923_v55 }
 0x3e4   : >> { %v2941_v49 = vadd.f32 %v2933_v35, %v2924_v41  ;;  %v2942_v26 = vadd.f32 %v2934_v58, %v2925_v38  ;;  %v2943_v34 = vadd.f32 %v2935_v43, %v2926_v39  ;;  %v2944_v51 = vadd.f32 %v2936_v1, %v2927_v31 }
 0x3e5   : >> { %v2946_v8 = vmul.f32 %v2945_v50, %v4165_v21  ;;  %v2947_v47 = vmul.f32 %v2945_v50, %v4167_v22  ;;  %v2948_v36 = vmul.f32 %v2945_v50, %v6361_v7  ;;  %v2949_v24 = vmul.f32 %v2945_v50, %v6379_v16 }
 0x3e6   : >> { %v2950_v53 = vmul.f32 %v2945_v50, %v6380_v14  ;;  %v2951_v25 = vmul.f32 %v2945_v50, %v6381_v59  ;;  %v2952_v57 = vmul.f32 %v2945_v50, %v6382_v56  ;;  %v2953_v45 = vmul.f32 %v2945_v50, %v4179_v28 }
 0x3e7   : >> { %v2954_v2 = vadd.f32 %v2946_v8, %v2937_v37  ;;  %v2955_v55 = vadd.f32 %v2947_v47, %v2938_v30  ;;  %v2956_v41 = vadd.f32 %v2948_v36, %v2939_v52  ;;  %v2957_v38 = vadd.f32 %v2949_v24, %v2940_v60 }
 0x3e8   : >> { %v2958_v39 = vadd.f32 %v2950_v53, %v2941_v49  ;;  %v2959_v31 = vadd.f32 %v2951_v25, %v2942_v26  ;;  %v2960_v42 = vadd.f32 %v2952_v57, %v2943_v34  ;;  %v2961_v32 = vadd.f32 %v2953_v45, %v2944_v51 }
 0x3e9   : >> { %v2962_v40 = vmax.f32 %v2954_v2, 0.0  ;;  %v2963_v27 = vmax.f32 %v2955_v55, 0.0  ;;  %v2964_v35 = vmax.f32 %v2956_v41, 0.0  ;;  %v2965_v58 = vmax.f32 %v2957_v38, 0.0 }
 0x3ea   : >> { %v2966_v43 = vmax.f32 %v2958_v39, 0.0  ;;  %v2967_v1 = vmax.f32 %v2959_v31, 0.0  ;;  %v2968_v56 = vmax.f32 %v2960_v42, 0.0  ;;  %v2969_v50 = vmax.f32 %v2961_v32, 0.0 }
 0x3eb   : >> { %v2909_v37 = vadd.f32 %v5801_v48, %v5799_v15  ;;  %v2970_v30 = vstv %s6383_s5  ;;  %v2987_v52 = vstv %s6384_s0  ;;  %v2996_v60 = vstv %s6385_s21  ;;  %s6388_s5 = sld [smem:[#allocation153_spill]] }
 0x3ec   : >> { %v2971_v8 = vmul.f32 %v2970_v30, %v2962_v40  ;;  %v2972_v49 = vmul.f32 %v2970_v30, %v2963_v27  ;;  %v2973_v26 = vmul.f32 %v2970_v30, %v2964_v35  ;;  %v2974_v34 = vmul.f32 %v2970_v30, %v2965_v58  ;;  %s6389_s0 = sld [smem:[#allocation154_spill]] }
 0x3ed   : >> { %v2975_v51 = vmul.f32 %v2970_v30, %v2966_v43  ;;  %v2976_v47 = vmul.f32 %v2970_v30, %v2967_v1  ;;  %v2977_v36 = vmul.f32 %v2970_v30, %v2968_v56  ;;  %v3005_v24 = vstv %s6386_s26  ;;  %s6391_s21 = sld [smem:[#allocation16_spill]]  ;;  %s3396_s26 = sshll.u32 %s4105_s23, 5 }
 0x3ee   : >> { %v2978_v53 = vmul.f32 %v2970_v30, %v2969_v50  ;;  %v5859_v25 = vadd.f32 %v2971_v8, %v5804_v33  ;;  %v5862_v57 = vadd.f32 %v2972_v49, %v5807_v29  ;;  %v5865_v15 = vadd.f32 %v2973_v26, %v5810_v9  ;;  %v6390_v49 = vld [vmem:[#allocation159_spill] sm:$0xff] }
 0x3ef   : >> { %v5868_v48 = vadd.f32 %v2974_v34, %v5813_v44  ;;  %v5871_v45 = vadd.f32 %v2975_v51, %v5816_v54  ;;  %v5874_v2 = vadd.f32 %v2976_v47, %v5819_v46  ;;  %v5877_v56 = vadd.f32 %v2977_v36, %v5822_v23 }
 0x3f0   : >> { %v2988_v33 = vmul.f32 %v2987_v52, %v4133_v61  ;;  %v2989_v29 = vmul.f32 %v2987_v52, %v4135_v62  ;;  %v2990_v55 = vmul.f32 %v2987_v52, %v4137_v63  ;;  %v2991_v9 = vmul.f32 %v2987_v52, %v4139_v0 }
 0x3f1   : >> { %v2992_v44 = vmul.f32 %v2987_v52, %v4141_v3  ;;  %v2993_v41 = vmul.f32 %v2987_v52, %v4143_v4  ;;  %v2994_v54 = vmul.f32 %v2987_v52, %v4145_v5  ;;  %v2995_v46 = vmul.f32 %v2987_v52, %v4147_v6 }
 0x3f2   : >> { %v2997_v38 = vadd.f32 %v2996_v60, %v2988_v33  ;;  %v2998_v39 = vadd.f32 %v2996_v60, %v2989_v29  ;;  %v2999_v23 = vadd.f32 %v2996_v60, %v2990_v55  ;;  %v3000_v31 = vadd.f32 %v2996_v60, %v2991_v9 }
 0x3f3   : >> { %v3001_v42 = vadd.f32 %v2996_v60, %v2992_v44  ;;  %v3002_v61 = vadd.f32 %v2996_v60, %v2993_v41  ;;  %v3003_v32 = vadd.f32 %v2996_v60, %v2994_v54  ;;  %v3004_v62 = vadd.f32 %v2996_v60, %v2995_v46 }
 0x3f4   : >> { %v3006_v63 = vmul.f32 %v3005_v24, %v4149_v10  ;;  %v3007_v0 = vmul.f32 %v3005_v24, %v4151_v11  ;;  %v3008_v3 = vmul.f32 %v3005_v24, %v4153_v12  ;;  %v3009_v4 = vmul.f32 %v3005_v24, %v4155_v13 }
 0x3f5   : >> { %v3010_v5 = vmul.f32 %v3005_v24, %v4157_v17  ;;  %v3011_v6 = vmul.f32 %v3005_v24, %v4159_v18  ;;  %v3012_v40 = vmul.f32 %v3005_v24, %v4161_v19  ;;  %v3013_v27 = vmul.f32 %v3005_v24, %v4163_v20 }
 0x3f6   : >> { %v2986_v35 = vadd.f32 %v2978_v53, %v2909_v37  ;;  %v3014_v58 = vadd.f32 %v3006_v63, %v2997_v38  ;;  %v3015_v10 = vadd.f32 %v3007_v0, %v2998_v39  ;;  %v3016_v43 = vadd.f32 %v3008_v3, %v2999_v23 }
 0x3f7   : >> { %v3017_v11 = vadd.f32 %v3009_v4, %v3000_v31  ;;  %v3018_v1 = vadd.f32 %v3010_v5, %v3001_v42  ;;  %v3019_v50 = vadd.f32 %v3011_v6, %v3002_v61  ;;  %v3020_v12 = vadd.f32 %v3012_v40, %v3003_v32 }
 0x3f8   : >> { %v3021_v30 = vadd.f32 %v3013_v27, %v3004_v62  ;;  %v3022_v52 = vstv %s6387_s4  ;;  %v3047_v13 = vstv %s6388_s5  ;;  %v3064_v60 = vstv %s6389_s0  ;;  %s3074_s4 = scalar_lea.vmem %s6391_s21, %s3396_s26 }
 0x3f9   : >> { %v3023_v17 = vmul.f32 %v3022_v52, %v4165_v21  ;;  %v3024_v18 = vmul.f32 %v3022_v52, %v4167_v22  ;;  %v3025_v19 = vmul.f32 %v3022_v52, %v6361_v7  ;;  %v3026_v20 = vmul.f32 %v3022_v52, %v6379_v16 }
 0x3fa   : >> { %v3027_v37 = vmul.f32 %v3022_v52, %v6380_v14  ;;  %v3028_v8 = vmul.f32 %v3022_v52, %v6381_v59  ;;  %v3029_v26 = vmul.f32 %v3022_v52, %v6390_v49  ;;  %v3030_v34 = vmul.f32 %v3022_v52, %v4179_v28 }
 0x3fb   : >> { %v3031_v51 = vadd.f32 %v3023_v17, %v3014_v58  ;;  %v3032_v47 = vadd.f32 %v3024_v18, %v3015_v10  ;;  %v3033_v36 = vadd.f32 %v3025_v19, %v3016_v43  ;;  %v3034_v24 = vadd.f32 %v3026_v20, %v3017_v11 }
 0x3fc   : >> { %v3035_v53 = vadd.f32 %v3027_v37, %v3018_v1  ;;  %v3036_v21 = vadd.f32 %v3028_v8, %v3019_v50  ;;  %v3037_v22 = vadd.f32 %v3029_v26, %v3020_v12  ;;  %v3038_v33 = vadd.f32 %v3030_v34, %v3021_v30 }
 0x3fd   : >> { %v3039_v7 = vmax.f32 %v3031_v51, 0.0  ;;  %v3040_v29 = vmax.f32 %v3032_v47, 0.0  ;;  %v3041_v16 = vmax.f32 %v3033_v36, 0.0  ;;  %v3042_v55 = vmax.f32 %v3034_v24, 0.0 }
 0x3fe   : >> { %v3043_v14 = vmax.f32 %v3035_v53, 0.0  ;;  %v3044_v9 = vmax.f32 %v3036_v21, 0.0  ;;  %v3045_v59 = vmax.f32 %v3037_v22, 0.0  ;;  %v3046_v44 = vmax.f32 %v3038_v33, 0.0 }
 0x3ff   : >> { %v3048_v41 = vmul.f32 %v3047_v13, %v3039_v7  ;;  %v3049_v28 = vmul.f32 %v3047_v13, %v3040_v29  ;;  %v3050_v54 = vmul.f32 %v3047_v13, %v3041_v16  ;;  %v3051_v46 = vmul.f32 %v3047_v13, %v3042_v55 }
 0x400   : >> { %v3052_v38 = vmul.f32 %v3047_v13, %v3043_v14  ;;  %v3053_v39 = vmul.f32 %v3047_v13, %v3044_v9  ;;  %v3054_v23 = vmul.f32 %v3047_v13, %v3045_v59  ;;  %v3055_v31 = vmul.f32 %v3047_v13, %v3046_v44 }
 0x401   : >> { %v3056_v42 = vadd.f32 %v3048_v41, %v5859_v25  ;;  %v3057_v61 = vadd.f32 %v3049_v28, %v5862_v57  ;;  %v3058_v32 = vadd.f32 %v3050_v54, %v5865_v15  ;;  %v3059_v62 = vadd.f32 %v3051_v46, %v5868_v48 }
 0x402   : >> { %v3060_v63 = vadd.f32 %v3052_v38, %v5871_v45  ;;  %v3061_v0 = vadd.f32 %v3053_v39, %v5874_v2  ;;  %v3062_v3 = vadd.f32 %v3054_v23, %v5877_v56  ;;  %v3063_v40 = vadd.f32 %v3055_v31, %v2986_v35 }
 0x403   : >> { %v3065_v4 = vadd.f32 %v3064_v60, %v3056_v42  ;;  %v3066_v5 = vadd.f32 %v3064_v60, %v3057_v61  ;;  %v3067_v6 = vadd.f32 %v3064_v60, %v3058_v32  ;;  %v3068_v27 = vadd.f32 %v3064_v60, %v3059_v62 }
 0x404   : >> { %v3069_v58 = vadd.f32 %v3064_v60, %v3060_v63  ;;  %v3070_v25 = vadd.f32 %v3064_v60, %v3061_v0  ;;  %v3071_v57 = vadd.f32 %v3064_v60, %v3062_v3  ;;  %v3072_v15 = vadd.f32 %v3064_v60, %v3063_v40 }
 0x405   : >> { %3075 = vst [vmem:[%s3074_s4] sm:$0xff] %v3065_v4 }
 0x406   : >> { %3076 = vst [vmem:[%s3074_s4 + $0x8] sm:$0xff] %v3066_v5 }
 0x407   : >> { %3077 = vst [vmem:[%s3074_s4 + $0x10] sm:$0xff] %v3067_v6 }
 0x408   : >> { %3078 = vst [vmem:[%s3074_s4 + $0x18] sm:$0xff] %v3068_v27  ;;  %550 = sbr.rel (!%p548_p12) target bundleno = 404 (0x194), region = 123 }
 0x409   : >> { %3079 = vst [vmem:[%s3074_s4 + $0x20] sm:$0xff] %v3069_v58 }
 0x40a   : >> { %3080 = vst [vmem:[%s3074_s4 + $0x28] sm:$0xff] %v3070_v25 }
 0x40b   : >> { %3081 = vst [vmem:[%s3074_s4 + $0x30] sm:$0xff] %v3071_v57 }
 0x40c   : >> { %3082 = vst [vmem:[%s3074_s4 + $0x38] sm:$0xff] %v3072_v15 }
 0x40d PF: > { %s6392_s22 = sld [smem:[#allocation14_spill]] }
 0x40e   : > { %s6393_s20 = sld [smem:[#allocation13_spill]] }
 0x40f   : > { %s6394_s21 = sld [smem:[#allocation15_spill]] }
 0x413   : > { %p16_p13 = scmp.ge.s32.totalorder %s6392_s22, 4  }
 0x415   :  { %18 = sbr.rel (!%p16_p13) target bundleno = 11 (0xb), region = 134 }
 0x41a   :  { %3107 = vsyncpa [#allocation4], 1 }
 0x41b   :  { %3109 = vsyncpa [#allocation4 + $0x1], 1 }
 0x41c   :  { %3110 = vsyncpa [#allocation5], 1 }
 0x41d   :  { %3112 = vsyncpa [#allocation5 + $0x1], 1 }
 0x41e   :  { %3113 = vsyncpa [#allocation8], 1 }

</bundles_post_ra>
